<compile_context>
chip_gen: v7x
topology: tpu7x:2x2x1
jax: 0.10.0
libtpu: 0.0.40
codegen_flags: <defaults>
</compile_context>

<pallas_src>
import functools

import jax
import jax.numpy as jnp
from jax.experimental import pallas as pl
from jax.experimental.pallas import tpu as pltpu


# ----------------------------- in-kernel helpers -----------------------------

def _recip(x):
    # EUP approximate reciprocal + one Newton step -> ~f32-exact, VPU-cheap.
    r = pl.reciprocal(x, approx=True)
    return r * (2.0 - x * r)


def _erf_approx(x):
    # Abramowitz & Stegun 7.1.26 rational approximation (max abs err ~1.5e-7).
    a1, a2, a3, a4, a5 = 0.254829592, -0.284496736, 1.421413741, -1.453152027, 1.061405429
    p = 0.3275911
    z = jnp.abs(x)
    t = _recip(1.0 + p * z)
    poly = ((((a5 * t + a4) * t + a3) * t + a2) * t + a1) * t
    y = 1.0 - poly * jnp.exp(-z * z)
    return jnp.where(x >= 0.0, y, -y)


def _gelu_exact(x):
    # PyTorch nn.GELU() default == exact erf GELU.
    return 0.5 * x * (1.0 + _erf_approx(x * 0.7071067811865476))


def _layer_norm(v, g, b, eps=1e-5):
    mu = jnp.mean(v, axis=-1, keepdims=True)
    c = v - mu
    var = jnp.mean(c * c, axis=-1, keepdims=True)
    return c * jax.lax.rsqrt(var + eps) * g + b


# --------------------------------- kernel ------------------------------------

def vit_encoder_kernel(x_ref,
                       ln1g_ref, ln1b_ref,
                       wqkv_ref, bqkv_ref,
                       ln2g_ref, ln2b_ref,
                       w1_ref, b1_ref, w2_ref, b2_ref,
                       o_ref,
                       x_sc, attn_sc,
                       *, num_head, num_encoder, batch_per_step, seq_len):
    R, D = x_sc.shape                      # R = batch_per_step * seq_len rows
    H = w1_ref.shape[1]
    S = seq_len
    Bt = batch_per_step
    dh = D // num_head
    scale = 1.0 / (float(dh) ** 0.5)       # 1 / sqrt(sub_dim)

    # Head grouping: process G heads per group so the attention-output store is
    # >=128 lanes wide when possible (full D at the tiny test shape).
    G = min(num_head, max(1, 128 // max(dh, 1)))
    while num_head % G:
        G -= 1
    gw = G * dh
    n_groups = num_head // G

    # MLP hidden-dim chunking (never materialize the full (R, H) hidden tensor).
    Hc = H
    if H > 512:
        for cand in (512, 384, 256, 128):
            if H % cand == 0:
                Hc = cand
                break

    # Activation for this grid step lives in VMEM scratch across the layer loop.
    x_sc[...] = x_ref[...]

    def layer_body(_, carry):
        x = x_sc[...]                                                # (R, D) f32

        # ---- LayerNorm1 + fused QKV projection (bf16 MXU, f32 accumulate) -----
        x1 = _layer_norm(x, ln1g_ref[...], ln1b_ref[...])
        qkv = jnp.dot(x1.astype(jnp.bfloat16), wqkv_ref[...],
                      preferred_element_type=jnp.float32) + bqkv_ref[...]   # (R, 3D)
        qkvb = qkv.astype(jnp.bfloat16)     # single cast; slices feed the MXU

        # ---- multi-head self-attention (per batch element, per head group) ----
        for bi in range(Bt):                # static loops: Bt, n_groups, G small
            r0 = bi * S
            for g in range(n_groups):
                c0 = g * gw
                outs = []
                for h in range(G):
                    lo = c0 + h * dh
                    qh = qkvb[r0:r0 + S, lo:lo + dh]
                    kh = qkvb[r0:r0 + S, D + lo:D + lo + dh]
                    vh = qkvb[r0:r0 + S, 2 * D + lo:2 * D + lo + dh]
                    # q @ k^T with no explicit transpose: contract the last dims.
                    s = jax.lax.dot_general(qh, kh, (((1,), (1,)), ((), ())),
                                            preferred_element_type=jnp.float32) * scale
                    s = s - jnp.max(s, axis=-1, keepdims=True)
                    p = jnp.exp(s)
                    p = p * _recip(jnp.sum(p, axis=-1, keepdims=True))
                    outs.append(jnp.dot(p.astype(jnp.bfloat16), vh,
                                        preferred_element_type=jnp.float32))
                grp = outs[0] if G == 1 else jnp.concatenate(outs, axis=-1)
                attn_sc[r0:r0 + S, c0:c0 + gw] = grp    # one wide store per group

        src = x + attn_sc[...]              # dropout (dp1) == identity at inference

        # ---- LayerNorm2 + hidden-chunked MLP accumulated into the residual ----
        x2b = _layer_norm(src, ln2g_ref[...], ln2b_ref[...]).astype(jnp.bfloat16)
        x_sc[...] = src + b2_ref[...]       # residual + final bias (dp2 == identity)
        for c0 in range(0, H, Hc):
            hc = _gelu_exact(
                jnp.dot(x2b, w1_ref[:, c0:c0 + Hc],
                        preferred_element_type=jnp.float32) + b1_ref[:, c0:c0 + Hc])
            x_sc[...] = x_sc[...] + jnp.dot(hc.astype(jnp.bfloat16),
                                            w2_ref[c0:c0 + Hc, :],
                                            preferred_element_type=jnp.float32)
        return carry

    jax.lax.fori_loop(0, num_encoder, layer_body, 0)
    o_ref[...] = x_sc[...].astype(o_ref.dtype)


# --------------------------------- wrapper -----------------------------------

def _pick_batch_tile(B, S):
    # Largest divisor of B keeping Bt*S <= 256 rows (bounds vreg / VMEM pressure)
    # while keeping the row block a multiple of 8 (or the whole array).
    best = 1
    for bt in range(1, B + 1):
        if B % bt:
            continue
        rows = bt * S
        if rows > 256:
            break
        if bt == B or rows % 8 == 0:
            best = bt
    return best
    # TODO(synk): pad S to a multiple of 8 for sequence lengths like 197 when B > 1.


def _vmem_limit_bytes(R, D, H):
    Hc = min(H, 512)
    weights = 2 * (3 * D * D + 2 * D * H) + 4 * (3 * D + H + 5 * D)   # bf16 W + f32 b/LN
    acts = 4 * R * (4 * D + 3 * D + Hc)                               # scratch + temps
    want = 2 * weights + 3 * acts + (4 << 20)
    try:
        cap = int(pltpu.get_tpu_info().vmem_capacity_bytes * 0.9)
    except Exception:
        cap = 48 << 20
    return int(min(max(want, 32 << 20), cap))


def _cost_estimate(B, S, D, H, num_head, num_encoder):
    N = B * S
    flops_layer = (2 * N * D * (3 * D)        # fused QKV projection
                   + 4 * B * S * S * D        # scores + PV over all heads
                   + 4 * N * D * H)           # both MLP matmuls
    trans_layer = N * H + B * num_head * S * S
    bytes_acc = (N * D * 4 * 2
                 + 2 * (3 * D * D + 2 * D * H)
                 + 4 * (3 * D + H + 5 * D))
    return pl.CostEstimate(flops=num_encoder * flops_layer,
                           transcendentals=num_encoder * trans_layer,
                           bytes_accessed=bytes_acc)


def _make_encoder_call(B, S, D, H, num_head, num_encoder, Bt, buffered_weights):
    R = Bt * S

    def wspec(shape):
        idx = lambda i: (0, 0)
        if buffered_weights:
            # Constant index map -> the block never changes; one VMEM buffer suffices.
            return pl.BlockSpec(shape, idx, pipeline_mode=pl.Buffered(1))
        return pl.BlockSpec(shape, idx)

    in_specs = [
        pl.BlockSpec((R, D), lambda i: (i, 0)),   # x rows (Bt batch elems x S tokens)
        wspec((1, D)), wspec((1, D)),             # ln1 gamma / beta
        wspec((D, 3 * D)), wspec((1, 3 * D)),     # fused Wqkv (bf16) / bqkv (f32)
        wspec((1, D)), wspec((1, D)),             # ln2 gamma / beta
        wspec((D, H)), wspec((1, H)),             # W1 (bf16) / b1
        wspec((H, D)), wspec((1, D)),             # W2 (bf16) / b2
    ]
    kernel = functools.partial(vit_encoder_kernel,
                               num_head=num_head, num_encoder=num_encoder,
                               batch_per_step=Bt, seq_len=S)
    return pl.pallas_call(
        kernel,
        out_shape=jax.ShapeDtypeStruct((B * S, D), jnp.float32),
        grid=(B // Bt,),
        in_specs=in_specs,
        out_specs=pl.BlockSpec((R, D), lambda i: (i, 0)),
        scratch_shapes=[pltpu.VMEM((R, D), jnp.float32),    # activation carry
                        pltpu.VMEM((R, D), jnp.float32)],   # attention output
        compiler_params=pltpu.CompilerParams(
            dimension_semantics=("parallel",),
            vmem_limit_bytes=_vmem_limit_bytes(R, D, H)),
        cost_estimate=_cost_estimate(B, S, D, H, num_head, num_encoder),
    )


def vit_encoder_forward(x, params, num_encoder, num_head, up_scale):
    (ln1g, ln1b, wq, bq, wk, bk, wv, bv, ln2g, ln2b, w1, b1, w2, b2) = params
    B, S, D = x.shape
    H = D * up_scale
    assert D % num_head == 0

    # Fuse Q/K/V once and store MXU-side weights in bf16 (halves DMA bytes + VMEM).
    wqkv = jnp.concatenate([wq, wk, wv], axis=1).astype(jnp.bfloat16)   # (D, 3D)
    bqkv = jnp.concatenate([bq, bk, bv], axis=1)                        # (1, 3D) f32
    w1b = w1.astype(jnp.bfloat16)
    w2b = w2.astype(jnp.bfloat16)

    Bt = _pick_batch_tile(B, S)
    x2d = x.reshape(B * S, D)               # lane-dense 2-D layout (rows = batch*seq)
    args = (x2d, ln1g, ln1b, wqkv, bqkv, ln2g, ln2b, w1b, b1, w2b, b2)

    last_err = None
    for buffered in (True, False):          # fall back if Buffered(1) is unsupported
        try:
            call = _make_encoder_call(B, S, D, H, num_head, num_encoder, Bt, buffered)
            out2d = jax.block_until_ready(call(*args))
            return out2d.reshape(B, S, D)
        except Exception as e:              # pragma: no cover - defensive fallback
            last_err = e
    raise last_err


# ----------------------------- pure-JAX reference ----------------------------

def _ref_layer(x, params, num_head, matmul_dtype=jnp.float32):
    """One encoder layer; matmul operands cast to `matmul_dtype`, f32 accumulation."""
    (ln1g, ln1b, wq, bq, wk, bk, wv, bv, ln2g, ln2b, w1, b1, w2, b2) = params
    f32 = jnp.float32
    md = matmul_dtype

    def ln(v, g, b):
        mu = v.mean(-1, keepdims=True)
        var = ((v - mu) ** 2).mean(-1, keepdims=True)
        return (v - mu) / jnp.sqrt(var + 1e-5) * g + b

    def mm(a, w, bias):
        return jnp.einsum('bsd,df->bsf', a.astype(md), w.astype(md),
                          preferred_element_type=f32) + bias

    B, S, D = x.shape
    dh = D // num_head
    x1 = ln(x, ln1g, ln1b)
    q, k, v = mm(x1, wq, bq), mm(x1, wk, bk), mm(x1, wv, bv)
    split = lambda t: t.reshape(B, S, num_head, dh).transpose(0, 2, 1, 3)
    qh, kh, vh = split(q), split(k), split(v)
    s = jnp.einsum('bhqd,bhkd->bhqk', qh.astype(md), kh.astype(md),
                   preferred_element_type=f32) / jnp.sqrt(jnp.float32(dh))
    p = jax.nn.softmax(s, axis=-1)
    a = jnp.einsum('bhqk,bhkd->bhqd', p.astype(md), vh.astype(md),
                   preferred_element_type=f32)
    a = a.transpose(0, 2, 1, 3).reshape(B, S, D)
    src = x + a
    x2 = ln(src, ln2g, ln2b)
    h = jax.nn.gelu(mm(x2, w1, b1), approximate=False)
    return src + mm(h, w2, b2)


# ----------------------------------- main ------------------------------------

if __name__ == "__main__":
    B, S, D = 2, 8, 32          # batch, sequence length, embed dim (in_c)
    NUM_HEAD, UP_SCALE = 4, 4
    NUM_ENCODER = 2

    key = jax.random.PRNGKey(0)
    keys = jax.random.split(key, 6)

    def linear_params(k, fan_in, fan_out):
        # deterministic init mimicking torch.nn.Linear: U(-1/sqrt(fan_in), 1/sqrt(fan_in))
        kw, kb = jax.random.split(k)
        bound = 1.0 / (fan_in ** 0.5)
        w = jax.random.uniform(kw, (fan_in, fan_out), jnp.float32, -bound, bound)
        b = jax.random.uniform(kb, (1, fan_out), jnp.float32, -bound, bound)
        return w, b

    wq, bq = linear_params(keys[0], D, D)
    wk, bk = linear_params(keys[1], D, D)
    wv, bv = linear_params(keys[2], D, D)
    w1, b1 = linear_params(keys[3], D, D * UP_SCALE)
    w2, b2 = linear_params(keys[4], D * UP_SCALE, D)
    ln1g = jnp.ones((1, D), jnp.float32); ln1b = jnp.zeros((1, D), jnp.float32)
    ln2g = jnp.ones((1, D), jnp.float32); ln2b = jnp.zeros((1, D), jnp.float32)

    params = (ln1g, ln1b, wq, bq, wk, bk, wv, bv, ln2g, ln2b, w1, b1, w2, b2)

    x = jax.random.normal(keys[5], (B, S, D), jnp.float32)

    out = vit_encoder_forward(x, params, NUM_ENCODER, NUM_HEAD, UP_SCALE)
    out = jax.block_until_ready(out)

    # References: (a) bf16-MXU-matched (tight check of kernel plumbing),
    #             (b) pure f32 (fidelity to the original PyTorch semantics,
    #                 tolerance covers bf16 operand quantization).
    ref_bf16, ref_f32 = x, x
    for _ in range(NUM_ENCODER):
        ref_bf16 = _ref_layer(ref_bf16, params, NUM_HEAD, matmul_dtype=jnp.bfloat16)
        ref_f32 = _ref_layer(ref_f32, params, NUM_HEAD, matmul_dtype=jnp.float32)

    assert out.shape == (B, S, D)
    err_bf = float(jnp.max(jnp.abs(out - ref_bf16)))
    err_f32 = float(jnp.max(jnp.abs(out - ref_f32)))
    assert jnp.allclose(out, ref_bf16, atol=2e-3, rtol=2e-3), err_bf
    assert jnp.allclose(out, ref_f32, atol=5e-2, rtol=5e-2), err_f32
    print("KERNEL_OK")
</pallas_src>

<mosaic_0001>
module attributes {stable_mosaic.version = 11 : i64} {
  func.func @vit_encoder_kernel(%arg0: i32, %arg1: memref<16x32xf32, #tpu.memory_space<vmem>>, %arg2: memref<1x32xf32, #tpu.memory_space<vmem>>, %arg3: memref<1x32xf32, #tpu.memory_space<vmem>>, %arg4: memref<32x96xbf16, #tpu.memory_space<vmem>>, %arg5: memref<1x96xf32, #tpu.memory_space<vmem>>, %arg6: memref<1x32xf32, #tpu.memory_space<vmem>>, %arg7: memref<1x32xf32, #tpu.memory_space<vmem>>, %arg8: memref<32x128xbf16, #tpu.memory_space<vmem>>, %arg9: memref<1x128xf32, #tpu.memory_space<vmem>>, %arg10: memref<128x32xbf16, #tpu.memory_space<vmem>>, %arg11: memref<1x32xf32, #tpu.memory_space<vmem>>, %arg12: memref<16x32xf32, #tpu.memory_space<vmem>>, %arg13: memref<16x32xf32, #tpu.memory_space<vmem>>, %arg14: memref<16x32xf32, #tpu.memory_space<vmem>>) attributes {dimension_semantics = [#tpu.dimension_semantics<parallel>], iteration_bounds = array<i64: 1>, scalar_prefetch = 0 : i64, scratch_operands = 2 : i64, tpu.core_type = #tpu.core_type<tc>, window_params = [{transform_indices = @transform_0, window_bounds = array<i64: 16, 32>}, {pipeline_mode = #tpu.pipeline_mode<synchronous>, transform_indices = @transform_1, window_bounds = array<i64: 1, 32>}, {pipeline_mode = #tpu.pipeline_mode<synchronous>, transform_indices = @transform_2, window_bounds = array<i64: 1, 32>}, {pipeline_mode = #tpu.pipeline_mode<synchronous>, transform_indices = @transform_3, window_bounds = array<i64: 32, 96>}, {pipeline_mode = #tpu.pipeline_mode<synchronous>, transform_indices = @transform_4, window_bounds = array<i64: 1, 96>}, {pipeline_mode = #tpu.pipeline_mode<synchronous>, transform_indices = @transform_5, window_bounds = array<i64: 1, 32>}, {pipeline_mode = #tpu.pipeline_mode<synchronous>, transform_indices = @transform_6, window_bounds = array<i64: 1, 32>}, {pipeline_mode = #tpu.pipeline_mode<synchronous>, transform_indices = @transform_7, window_bounds = array<i64: 32, 128>}, {pipeline_mode = #tpu.pipeline_mode<synchronous>, transform_indices = @transform_8, window_bounds = array<i64: 1, 128>}, {pipeline_mode = #tpu.pipeline_mode<synchronous>, transform_indices = @transform_9, window_bounds = array<i64: 128, 32>}, {pipeline_mode = #tpu.pipeline_mode<synchronous>, transform_indices = @transform_10, window_bounds = array<i64: 1, 32>}, {transform_indices = @transform_11, window_bounds = array<i64: 16, 32>}]} {
    %c0 = arith.constant 0 : index
    %c0_0 = arith.constant 0 : index
    %0 = vector.load %arg1[%c0, %c0_0] : memref<16x32xf32, #tpu.memory_space<vmem>>, vector<16x32xf32>
    %c0_1 = arith.constant 0 : index
    %c0_2 = arith.constant 0 : index
    %1 = vector.load %arg13[%c0_1, %c0_2] : memref<16x32xf32, #tpu.memory_space<vmem>>, vector<16x32xf32>
    tpu.vector_store %arg13[%c0_1, %c0_2], %0 {strides = array<i32>} : memref<16x32xf32, #tpu.memory_space<vmem>>, vector<16x32xf32>,
    %c0_i32 = arith.constant 0 : i32
    %c2_i32 = arith.constant 2 : i32
    %2 = arith.addi %c0_i32, %c2_i32 : i32
    %c1_i32 = arith.constant 1 : i32
    scf.for %arg15 = %c0_i32 to %2 step %c1_i32  : i32 {
      %c0_7 = arith.constant 0 : index
      %c0_8 = arith.constant 0 : index
      %5 = vector.load %arg13[%c0_7, %c0_8] : memref<16x32xf32, #tpu.memory_space<vmem>>, vector<16x32xf32>
      %c0_9 = arith.constant 0 : index
      %c0_10 = arith.constant 0 : index
      %6 = vector.load %arg2[%c0_9, %c0_10] : memref<1x32xf32, #tpu.memory_space<vmem>>, vector<1x32xf32>
      %c0_11 = arith.constant 0 : index
      %c0_12 = arith.constant 0 : index
      %7 = vector.load %arg3[%c0_11, %c0_12] : memref<1x32xf32, #tpu.memory_space<vmem>>, vector<1x32xf32>
      %cst = arith.constant dense<0.000000e+00> : vector<16xf32>
      %8 = vector.multi_reduction <add>, %5, %cst [1] : vector<16x32xf32> to vector<16xf32>
      %9 = vector.shape_cast %8 : vector<16xf32> to vector<16x1xf32>
      %cst_13 = arith.constant 3.200000e+01 : f32
      %10 = vector.broadcast %cst_13 : f32 to vector<16x1xf32>
      %11 = arith.divf %9, %10 : vector<16x1xf32>
      %12 = vector.broadcast %11 : vector<16x1xf32> to vector<16x32xf32>
      %13 = arith.subf %5, %12 : vector<16x32xf32>
      %14 = arith.mulf %13, %13 : vector<16x32xf32>
      %cst_14 = arith.constant dense<0.000000e+00> : vector<16xf32>
      %15 = vector.multi_reduction <add>, %14, %cst_14 [1] : vector<16x32xf32> to vector<16xf32>
      %16 = vector.shape_cast %15 : vector<16xf32> to vector<16x1xf32>
      %cst_15 = arith.constant 3.200000e+01 : f32
      %17 = vector.broadcast %cst_15 : f32 to vector<16x1xf32>
      %18 = arith.divf %16, %17 : vector<16x1xf32>
      %cst_16 = arith.constant 9.99999974E-6 : f32
      %19 = vector.broadcast %cst_16 : f32 to vector<16x1xf32>
      %20 = arith.addf %18, %19 : vector<16x1xf32>
      %21 = math.rsqrt %20 : vector<16x1xf32>
      %22 = vector.broadcast %21 : vector<16x1xf32> to vector<16x32xf32>
      %23 = arith.mulf %13, %22 : vector<16x32xf32>
      %24 = vector.broadcast %6 : vector<1x32xf32> to vector<16x32xf32>
      %25 = arith.mulf %23, %24 : vector<16x32xf32>
      %26 = vector.broadcast %7 : vector<1x32xf32> to vector<16x32xf32>
      %27 = arith.addf %25, %26 : vector<16x32xf32>
      %28 = arith.truncf %27 : vector<16x32xf32> to vector<16x32xbf16>
      %c0_17 = arith.constant 0 : index
      %c0_18 = arith.constant 0 : index
      %29 = vector.load %arg4[%c0_17, %c0_18] : memref<32x96xbf16, #tpu.memory_space<vmem>>, vector<32x96xbf16>
      %cst_19 = arith.constant dense<0.000000e+00> : vector<16x96xf32>
      %30 = tpu.matmul %28, %29, %cst_19 {dimension_numbers = #tpu.dot_dimension_numbers<[1], [0], [0], [1], [0, 0, 1, 1], [], []>} : vector<16x32xbf16>, vector<32x96xbf16>, vector<16x96xf32> -> vector<16x96xf32>
      %c0_20 = arith.constant 0 : index
      %c0_21 = arith.constant 0 : index
      %31 = vector.load %arg5[%c0_20, %c0_21] : memref<1x96xf32, #tpu.memory_space<vmem>>, vector<1x96xf32>
      %32 = vector.broadcast %31 : vector<1x96xf32> to vector<16x96xf32>
      %33 = arith.addf %30, %32 : vector<16x96xf32>
      %34 = arith.truncf %33 : vector<16x96xf32> to vector<16x96xbf16>
      %35 = vector.extract_strided_slice %34 {offsets = [0, 0], sizes = [8, 8], strides = [1, 1]} : vector<16x96xbf16> to vector<8x8xbf16>
      %36 = vector.extract_strided_slice %34 {offsets = [0, 32], sizes = [8, 8], strides = [1, 1]} : vector<16x96xbf16> to vector<8x8xbf16>
      %37 = vector.extract_strided_slice %34 {offsets = [0, 64], sizes = [8, 8], strides = [1, 1]} : vector<16x96xbf16> to vector<8x8xbf16>
      %cst_22 = arith.constant dense<0.000000e+00> : vector<8x8xf32>
      %38 = tpu.matmul %35, %36, %cst_22 {dimension_numbers = #tpu.dot_dimension_numbers<[1], [1], [0], [0], [0, 0, 1, 0], [], []>} : vector<8x8xbf16>, vector<8x8xbf16>, vector<8x8xf32> -> vector<8x8xf32>
      %cst_23 = arith.constant 0.353553385 : f32
      %39 = vector.broadcast %cst_23 : f32 to vector<8x8xf32>
      %40 = arith.mulf %38, %39 : vector<8x8xf32>
      %cst_24 = arith.constant dense<0xFF800000> : vector<8xf32>
      %41 = vector.multi_reduction <maximumf>, %40, %cst_24 [1] : vector<8x8xf32> to vector<8xf32>
      %42 = vector.shape_cast %41 : vector<8xf32> to vector<8x1xf32>
      %43 = vector.broadcast %42 : vector<8x1xf32> to vector<8x8xf32>
      %44 = arith.subf %40, %43 : vector<8x8xf32>
      %45 = math.exp %44 : vector<8x8xf32>
      %cst_25 = arith.constant dense<0.000000e+00> : vector<8xf32>
      %46 = vector.multi_reduction <add>, %45, %cst_25 [1] : vector<8x8xf32> to vector<8xf32>
      %47 = vector.shape_cast %46 : vector<8xf32> to vector<8x1xf32>
      %48 = tpu.reciprocal %47 {approx = true} : vector<8x1xf32> -> vector<8x1xf32>
      %49 = arith.mulf %47, %48 : vector<8x1xf32>
      %cst_26 = arith.constant 2.000000e+00 : f32
      %50 = vector.broadcast %cst_26 : f32 to vector<8x1xf32>
      %51 = arith.subf %50, %49 : vector<8x1xf32>
      %52 = arith.mulf %48, %51 : vector<8x1xf32>
      %53 = vector.broadcast %52 : vector<8x1xf32> to vector<8x8xf32>
      %54 = arith.mulf %45, %53 : vector<8x8xf32>
      %55 = arith.truncf %54 : vector<8x8xf32> to vector<8x8xbf16>
      %cst_27 = arith.constant dense<0.000000e+00> : vector<8x8xf32>
      %56 = tpu.matmul %55, %37, %cst_27 {dimension_numbers = #tpu.dot_dimension_numbers<[1], [0], [0], [1], [0, 0, 1, 1], [], []>} : vector<8x8xbf16>, vector<8x8xbf16>, vector<8x8xf32> -> vector<8x8xf32>
      %57 = vector.extract_strided_slice %34 {offsets = [0, 8], sizes = [8, 8], strides = [1, 1]} : vector<16x96xbf16> to vector<8x8xbf16>
      %58 = vector.extract_strided_slice %34 {offsets = [0, 40], sizes = [8, 8], strides = [1, 1]} : vector<16x96xbf16> to vector<8x8xbf16>
      %59 = vector.extract_strided_slice %34 {offsets = [0, 72], sizes = [8, 8], strides = [1, 1]} : vector<16x96xbf16> to vector<8x8xbf16>
      %cst_28 = arith.constant dense<0.000000e+00> : vector<8x8xf32>
      %60 = tpu.matmul %57, %58, %cst_28 {dimension_numbers = #tpu.dot_dimension_numbers<[1], [1], [0], [0], [0, 0, 1, 0], [], []>} : vector<8x8xbf16>, vector<8x8xbf16>, vector<8x8xf32> -> vector<8x8xf32>
      %cst_29 = arith.constant 0.353553385 : f32
      %61 = vector.broadcast %cst_29 : f32 to vector<8x8xf32>
      %62 = arith.mulf %60, %61 : vector<8x8xf32>
      %cst_30 = arith.constant dense<0xFF800000> : vector<8xf32>
      %63 = vector.multi_reduction <maximumf>, %62, %cst_30 [1] : vector<8x8xf32> to vector<8xf32>
      %64 = vector.shape_cast %63 : vector<8xf32> to vector<8x1xf32>
      %65 = vector.broadcast %64 : vector<8x1xf32> to vector<8x8xf32>
      %66 = arith.subf %62, %65 : vector<8x8xf32>
      %67 = math.exp %66 : vector<8x8xf32>
      %cst_31 = arith.constant dense<0.000000e+00> : vector<8xf32>
      %68 = vector.multi_reduction <add>, %67, %cst_31 [1] : vector<8x8xf32> to vector<8xf32>
      %69 = vector.shape_cast %68 : vector<8xf32> to vector<8x1xf32>
      %70 = tpu.reciprocal %69 {approx = true} : vector<8x1xf32> -> vector<8x1xf32>
      %71 = arith.mulf %69, %70 : vector<8x1xf32>
      %cst_32 = arith.constant 2.000000e+00 : f32
      %72 = vector.broadcast %cst_32 : f32 to vector<8x1xf32>
      %73 = arith.subf %72, %71 : vector<8x1xf32>
      %74 = arith.mulf %70, %73 : vector<8x1xf32>
      %75 = vector.broadcast %74 : vector<8x1xf32> to vector<8x8xf32>
      %76 = arith.mulf %67, %75 : vector<8x8xf32>
      %77 = arith.truncf %76 : vector<8x8xf32> to vector<8x8xbf16>
      %cst_33 = arith.constant dense<0.000000e+00> : vector<8x8xf32>
      %78 = tpu.matmul %77, %59, %cst_33 {dimension_numbers = #tpu.dot_dimension_numbers<[1], [0], [0], [1], [0, 0, 1, 1], [], []>} : vector<8x8xbf16>, vector<8x8xbf16>, vector<8x8xf32> -> vector<8x8xf32>
      %79 = vector.extract_strided_slice %34 {offsets = [0, 16], sizes = [8, 8], strides = [1, 1]} : vector<16x96xbf16> to vector<8x8xbf16>
      %80 = vector.extract_strided_slice %34 {offsets = [0, 48], sizes = [8, 8], strides = [1, 1]} : vector<16x96xbf16> to vector<8x8xbf16>
      %81 = vector.extract_strided_slice %34 {offsets = [0, 80], sizes = [8, 8], strides = [1, 1]} : vector<16x96xbf16> to vector<8x8xbf16>
      %cst_34 = arith.constant dense<0.000000e+00> : vector<8x8xf32>
      %82 = tpu.matmul %79, %80, %cst_34 {dimension_numbers = #tpu.dot_dimension_numbers<[1], [1], [0], [0], [0, 0, 1, 0], [], []>} : vector<8x8xbf16>, vector<8x8xbf16>, vector<8x8xf32> -> vector<8x8xf32>
      %cst_35 = arith.constant 0.353553385 : f32
      %83 = vector.broadcast %cst_35 : f32 to vector<8x8xf32>
      %84 = arith.mulf %82, %83 : vector<8x8xf32>
      %cst_36 = arith.constant dense<0xFF800000> : vector<8xf32>
      %85 = vector.multi_reduction <maximumf>, %84, %cst_36 [1] : vector<8x8xf32> to vector<8xf32>
      %86 = vector.shape_cast %85 : vector<8xf32> to vector<8x1xf32>
      %87 = vector.broadcast %86 : vector<8x1xf32> to vector<8x8xf32>
      %88 = arith.subf %84, %87 : vector<8x8xf32>
      %89 = math.exp %88 : vector<8x8xf32>
      %cst_37 = arith.constant dense<0.000000e+00> : vector<8xf32>
      %90 = vector.multi_reduction <add>, %89, %cst_37 [1] : vector<8x8xf32> to vector<8xf32>
      %91 = vector.shape_cast %90 : vector<8xf32> to vector<8x1xf32>
      %92 = tpu.reciprocal %91 {approx = true} : vector<8x1xf32> -> vector<8x1xf32>
      %93 = arith.mulf %91, %92 : vector<8x1xf32>
      %cst_38 = arith.constant 2.000000e+00 : f32
      %94 = vector.broadcast %cst_38 : f32 to vector<8x1xf32>
      %95 = arith.subf %94, %93 : vector<8x1xf32>
      %96 = arith.mulf %92, %95 : vector<8x1xf32>
      %97 = vector.broadcast %96 : vector<8x1xf32> to vector<8x8xf32>
      %98 = arith.mulf %89, %97 : vector<8x8xf32>
      %99 = arith.truncf %98 : vector<8x8xf32> to vector<8x8xbf16>
      %cst_39 = arith.constant dense<0.000000e+00> : vector<8x8xf32>
      %100 = tpu.matmul %99, %81, %cst_39 {dimension_numbers = #tpu.dot_dimension_numbers<[1], [0], [0], [1], [0, 0, 1, 1], [], []>} : vector<8x8xbf16>, vector<8x8xbf16>, vector<8x8xf32> -> vector<8x8xf32>
      %101 = vector.extract_strided_slice %34 {offsets = [0, 24], sizes = [8, 8], strides = [1, 1]} : vector<16x96xbf16> to vector<8x8xbf16>
      %102 = vector.extract_strided_slice %34 {offsets = [0, 56], sizes = [8, 8], strides = [1, 1]} : vector<16x96xbf16> to vector<8x8xbf16>
      %103 = vector.extract_strided_slice %34 {offsets = [0, 88], sizes = [8, 8], strides = [1, 1]} : vector<16x96xbf16> to vector<8x8xbf16>
      %cst_40 = arith.constant dense<0.000000e+00> : vector<8x8xf32>
      %104 = tpu.matmul %101, %102, %cst_40 {dimension_numbers = #tpu.dot_dimension_numbers<[1], [1], [0], [0], [0, 0, 1, 0], [], []>} : vector<8x8xbf16>, vector<8x8xbf16>, vector<8x8xf32> -> vector<8x8xf32>
      %cst_41 = arith.constant 0.353553385 : f32
      %105 = vector.broadcast %cst_41 : f32 to vector<8x8xf32>
      %106 = arith.mulf %104, %105 : vector<8x8xf32>
      %cst_42 = arith.constant dense<0xFF800000> : vector<8xf32>
      %107 = vector.multi_reduction <maximumf>, %106, %cst_42 [1] : vector<8x8xf32> to vector<8xf32>
      %108 = vector.shape_cast %107 : vector<8xf32> to vector<8x1xf32>
      %109 = vector.broadcast %108 : vector<8x1xf32> to vector<8x8xf32>
      %110 = arith.subf %106, %109 : vector<8x8xf32>
      %111 = math.exp %110 : vector<8x8xf32>
      %cst_43 = arith.constant dense<0.000000e+00> : vector<8xf32>
      %112 = vector.multi_reduction <add>, %111, %cst_43 [1] : vector<8x8xf32> to vector<8xf32>
      %113 = vector.shape_cast %112 : vector<8xf32> to vector<8x1xf32>
      %114 = tpu.reciprocal %113 {approx = true} : vector<8x1xf32> -> vector<8x1xf32>
      %115 = arith.mulf %113, %114 : vector<8x1xf32>
      %cst_44 = arith.constant 2.000000e+00 : f32
      %116 = vector.broadcast %cst_44 : f32 to vector<8x1xf32>
      %117 = arith.subf %116, %115 : vector<8x1xf32>
      %118 = arith.mulf %114, %117 : vector<8x1xf32>
      %119 = vector.broadcast %118 : vector<8x1xf32> to vector<8x8xf32>
      %120 = arith.mulf %111, %119 : vector<8x8xf32>
      %121 = arith.truncf %120 : vector<8x8xf32> to vector<8x8xbf16>
      %cst_45 = arith.constant dense<0.000000e+00> : vector<8x8xf32>
      %122 = tpu.matmul %121, %103, %cst_45 {dimension_numbers = #tpu.dot_dimension_numbers<[1], [0], [0], [1], [0, 0, 1, 1], [], []>} : vector<8x8xbf16>, vector<8x8xbf16>, vector<8x8xf32> -> vector<8x8xf32>
      %123 = tpu.concatenate %56, %78, %100, %122 in 1 : vector<8x8xf32>, vector<8x8xf32>, vector<8x8xf32>, vector<8x8xf32> -> vector<8x32xf32>
      %c0_46 = arith.constant 0 : index
      %c0_47 = arith.constant 0 : index
      %124 = vector.load %arg14[%c0_46, %c0_47] : memref<16x32xf32, #tpu.memory_space<vmem>>, vector<8x32xf32>
      tpu.vector_store %arg14[%c0_46, %c0_47], %123 {strides = array<i32>} : memref<16x32xf32, #tpu.memory_space<vmem>>, vector<8x32xf32>,
      %125 = vector.extract_strided_slice %34 {offsets = [8, 0], sizes = [8, 8], strides = [1, 1]} : vector<16x96xbf16> to vector<8x8xbf16>
      %126 = vector.extract_strided_slice %34 {offsets = [8, 32], sizes = [8, 8], strides = [1, 1]} : vector<16x96xbf16> to vector<8x8xbf16>
      %127 = vector.extract_strided_slice %34 {offsets = [8, 64], sizes = [8, 8], strides = [1, 1]} : vector<16x96xbf16> to vector<8x8xbf16>
      %cst_48 = arith.constant dense<0.000000e+00> : vector<8x8xf32>
      %128 = tpu.matmul %125, %126, %cst_48 {dimension_numbers = #tpu.dot_dimension_numbers<[1], [1], [0], [0], [0, 0, 1, 0], [], []>} : vector<8x8xbf16>, vector<8x8xbf16>, vector<8x8xf32> -> vector<8x8xf32>
      %cst_49 = arith.constant 0.353553385 : f32
      %129 = vector.broadcast %cst_49 : f32 to vector<8x8xf32>
      %130 = arith.mulf %128, %129 : vector<8x8xf32>
      %cst_50 = arith.constant dense<0xFF800000> : vector<8xf32>
      %131 = vector.multi_reduction <maximumf>, %130, %cst_50 [1] : vector<8x8xf32> to vector<8xf32>
      %132 = vector.shape_cast %131 : vector<8xf32> to vector<8x1xf32>
      %133 = vector.broadcast %132 : vector<8x1xf32> to vector<8x8xf32>
      %134 = arith.subf %130, %133 : vector<8x8xf32>
      %135 = math.exp %134 : vector<8x8xf32>
      %cst_51 = arith.constant dense<0.000000e+00> : vector<8xf32>
      %136 = vector.multi_reduction <add>, %135, %cst_51 [1] : vector<8x8xf32> to vector<8xf32>
      %137 = vector.shape_cast %136 : vector<8xf32> to vector<8x1xf32>
      %138 = tpu.reciprocal %137 {approx = true} : vector<8x1xf32> -> vector<8x1xf32>
      %139 = arith.mulf %137, %138 : vector<8x1xf32>
      %cst_52 = arith.constant 2.000000e+00 : f32
      %140 = vector.broadcast %cst_52 : f32 to vector<8x1xf32>
      %141 = arith.subf %140, %139 : vector<8x1xf32>
      %142 = arith.mulf %138, %141 : vector<8x1xf32>
      %143 = vector.broadcast %142 : vector<8x1xf32> to vector<8x8xf32>
      %144 = arith.mulf %135, %143 : vector<8x8xf32>
      %145 = arith.truncf %144 : vector<8x8xf32> to vector<8x8xbf16>
      %cst_53 = arith.constant dense<0.000000e+00> : vector<8x8xf32>
      %146 = tpu.matmul %145, %127, %cst_53 {dimension_numbers = #tpu.dot_dimension_numbers<[1], [0], [0], [1], [0, 0, 1, 1], [], []>} : vector<8x8xbf16>, vector<8x8xbf16>, vector<8x8xf32> -> vector<8x8xf32>
      %147 = vector.extract_strided_slice %34 {offsets = [8, 8], sizes = [8, 8], strides = [1, 1]} : vector<16x96xbf16> to vector<8x8xbf16>
      %148 = vector.extract_strided_slice %34 {offsets = [8, 40], sizes = [8, 8], strides = [1, 1]} : vector<16x96xbf16> to vector<8x8xbf16>
      %149 = vector.extract_strided_slice %34 {offsets = [8, 72], sizes = [8, 8], strides = [1, 1]} : vector<16x96xbf16> to vector<8x8xbf16>
      %cst_54 = arith.constant dense<0.000000e+00> : vector<8x8xf32>
      %150 = tpu.matmul %147, %148, %cst_54 {dimension_numbers = #tpu.dot_dimension_numbers<[1], [1], [0], [0], [0, 0, 1, 0], [], []>} : vector<8x8xbf16>, vector<8x8xbf16>, vector<8x8xf32> -> vector<8x8xf32>
      %cst_55 = arith.constant 0.353553385 : f32
      %151 = vector.broadcast %cst_55 : f32 to vector<8x8xf32>
      %152 = arith.mulf %150, %151 : vector<8x8xf32>
      %cst_56 = arith.constant dense<0xFF800000> : vector<8xf32>
      %153 = vector.multi_reduction <maximumf>, %152, %cst_56 [1] : vector<8x8xf32> to vector<8xf32>
      %154 = vector.shape_cast %153 : vector<8xf32> to vector<8x1xf32>
      %155 = vector.broadcast %154 : vector<8x1xf32> to vector<8x8xf32>
      %156 = arith.subf %152, %155 : vector<8x8xf32>
      %157 = math.exp %156 : vector<8x8xf32>
      %cst_57 = arith.constant dense<0.000000e+00> : vector<8xf32>
      %158 = vector.multi_reduction <add>, %157, %cst_57 [1] : vector<8x8xf32> to vector<8xf32>
      %159 = vector.shape_cast %158 : vector<8xf32> to vector<8x1xf32>
      %160 = tpu.reciprocal %159 {approx = true} : vector<8x1xf32> -> vector<8x1xf32>
      %161 = arith.mulf %159, %160 : vector<8x1xf32>
      %cst_58 = arith.constant 2.000000e+00 : f32
      %162 = vector.broadcast %cst_58 : f32 to vector<8x1xf32>
      %163 = arith.subf %162, %161 : vector<8x1xf32>
      %164 = arith.mulf %160, %163 : vector<8x1xf32>
      %165 = vector.broadcast %164 : vector<8x1xf32> to vector<8x8xf32>
      %166 = arith.mulf %157, %165 : vector<8x8xf32>
      %167 = arith.truncf %166 : vector<8x8xf32> to vector<8x8xbf16>
      %cst_59 = arith.constant dense<0.000000e+00> : vector<8x8xf32>
      %168 = tpu.matmul %167, %149, %cst_59 {dimension_numbers = #tpu.dot_dimension_numbers<[1], [0], [0], [1], [0, 0, 1, 1], [], []>} : vector<8x8xbf16>, vector<8x8xbf16>, vector<8x8xf32> -> vector<8x8xf32>
      %169 = vector.extract_strided_slice %34 {offsets = [8, 16], sizes = [8, 8], strides = [1, 1]} : vector<16x96xbf16> to vector<8x8xbf16>
      %170 = vector.extract_strided_slice %34 {offsets = [8, 48], sizes = [8, 8], strides = [1, 1]} : vector<16x96xbf16> to vector<8x8xbf16>
      %171 = vector.extract_strided_slice %34 {offsets = [8, 80], sizes = [8, 8], strides = [1, 1]} : vector<16x96xbf16> to vector<8x8xbf16>
      %cst_60 = arith.constant dense<0.000000e+00> : vector<8x8xf32>
      %172 = tpu.matmul %169, %170, %cst_60 {dimension_numbers = #tpu.dot_dimension_numbers<[1], [1], [0], [0], [0, 0, 1, 0], [], []>} : vector<8x8xbf16>, vector<8x8xbf16>, vector<8x8xf32> -> vector<8x8xf32>
      %cst_61 = arith.constant 0.353553385 : f32
      %173 = vector.broadcast %cst_61 : f32 to vector<8x8xf32>
      %174 = arith.mulf %172, %173 : vector<8x8xf32>
      %cst_62 = arith.constant dense<0xFF800000> : vector<8xf32>
      %175 = vector.multi_reduction <maximumf>, %174, %cst_62 [1] : vector<8x8xf32> to vector<8xf32>
      %176 = vector.shape_cast %175 : vector<8xf32> to vector<8x1xf32>
      %177 = vector.broadcast %176 : vector<8x1xf32> to vector<8x8xf32>
      %178 = arith.subf %174, %177 : vector<8x8xf32>
      %179 = math.exp %178 : vector<8x8xf32>
      %cst_63 = arith.constant dense<0.000000e+00> : vector<8xf32>
      %180 = vector.multi_reduction <add>, %179, %cst_63 [1] : vector<8x8xf32> to vector<8xf32>
      %181 = vector.shape_cast %180 : vector<8xf32> to vector<8x1xf32>
      %182 = tpu.reciprocal %181 {approx = true} : vector<8x1xf32> -> vector<8x1xf32>
      %183 = arith.mulf %181, %182 : vector<8x1xf32>
      %cst_64 = arith.constant 2.000000e+00 : f32
      %184 = vector.broadcast %cst_64 : f32 to vector<8x1xf32>
      %185 = arith.subf %184, %183 : vector<8x1xf32>
      %186 = arith.mulf %182, %185 : vector<8x1xf32>
      %187 = vector.broadcast %186 : vector<8x1xf32> to vector<8x8xf32>
      %188 = arith.mulf %179, %187 : vector<8x8xf32>
      %189 = arith.truncf %188 : vector<8x8xf32> to vector<8x8xbf16>
      %cst_65 = arith.constant dense<0.000000e+00> : vector<8x8xf32>
      %190 = tpu.matmul %189, %171, %cst_65 {dimension_numbers = #tpu.dot_dimension_numbers<[1], [0], [0], [1], [0, 0, 1, 1], [], []>} : vector<8x8xbf16>, vector<8x8xbf16>, vector<8x8xf32> -> vector<8x8xf32>
      %191 = vector.extract_strided_slice %34 {offsets = [8, 24], sizes = [8, 8], strides = [1, 1]} : vector<16x96xbf16> to vector<8x8xbf16>
      %192 = vector.extract_strided_slice %34 {offsets = [8, 56], sizes = [8, 8], strides = [1, 1]} : vector<16x96xbf16> to vector<8x8xbf16>
      %193 = vector.extract_strided_slice %34 {offsets = [8, 88], sizes = [8, 8], strides = [1, 1]} : vector<16x96xbf16> to vector<8x8xbf16>
      %cst_66 = arith.constant dense<0.000000e+00> : vector<8x8xf32>
      %194 = tpu.matmul %191, %192, %cst_66 {dimension_numbers = #tpu.dot_dimension_numbers<[1], [1], [0], [0], [0, 0, 1, 0], [], []>} : vector<8x8xbf16>, vector<8x8xbf16>, vector<8x8xf32> -> vector<8x8xf32>
      %cst_67 = arith.constant 0.353553385 : f32
      %195 = vector.broadcast %cst_67 : f32 to vector<8x8xf32>
      %196 = arith.mulf %194, %195 : vector<8x8xf32>
      %cst_68 = arith.constant dense<0xFF800000> : vector<8xf32>
      %197 = vector.multi_reduction <maximumf>, %196, %cst_68 [1] : vector<8x8xf32> to vector<8xf32>
      %198 = vector.shape_cast %197 : vector<8xf32> to vector<8x1xf32>
      %199 = vector.broadcast %198 : vector<8x1xf32> to vector<8x8xf32>
      %200 = arith.subf %196, %199 : vector<8x8xf32>
      %201 = math.exp %200 : vector<8x8xf32>
      %cst_69 = arith.constant dense<0.000000e+00> : vector<8xf32>
      %202 = vector.multi_reduction <add>, %201, %cst_69 [1] : vector<8x8xf32> to vector<8xf32>
      %203 = vector.shape_cast %202 : vector<8xf32> to vector<8x1xf32>
      %204 = tpu.reciprocal %203 {approx = true} : vector<8x1xf32> -> vector<8x1xf32>
      %205 = arith.mulf %203, %204 : vector<8x1xf32>
      %cst_70 = arith.constant 2.000000e+00 : f32
      %206 = vector.broadcast %cst_70 : f32 to vector<8x1xf32>
      %207 = arith.subf %206, %205 : vector<8x1xf32>
      %208 = arith.mulf %204, %207 : vector<8x1xf32>
      %209 = vector.broadcast %208 : vector<8x1xf32> to vector<8x8xf32>
      %210 = arith.mulf %201, %209 : vector<8x8xf32>
      %211 = arith.truncf %210 : vector<8x8xf32> to vector<8x8xbf16>
      %cst_71 = arith.constant dense<0.000000e+00> : vector<8x8xf32>
      %212 = tpu.matmul %211, %193, %cst_71 {dimension_numbers = #tpu.dot_dimension_numbers<[1], [0], [0], [1], [0, 0, 1, 1], [], []>} : vector<8x8xbf16>, vector<8x8xbf16>, vector<8x8xf32> -> vector<8x8xf32>
      %213 = tpu.concatenate %146, %168, %190, %212 in 1 : vector<8x8xf32>, vector<8x8xf32>, vector<8x8xf32>, vector<8x8xf32> -> vector<8x32xf32>
      %c8 = arith.constant 8 : index
      %c0_72 = arith.constant 0 : index
      %214 = vector.load %arg14[%c8, %c0_72] : memref<16x32xf32, #tpu.memory_space<vmem>>, vector<8x32xf32>
      tpu.vector_store %arg14[%c8, %c0_72], %213 {strides = array<i32>} : memref<16x32xf32, #tpu.memory_space<vmem>>, vector<8x32xf32>,
      %c0_73 = arith.constant 0 : index
      %c0_74 = arith.constant 0 : index
      %215 = vector.load %arg14[%c0_73, %c0_74] : memref<16x32xf32, #tpu.memory_space<vmem>>, vector<16x32xf32>
      %216 = arith.addf %5, %215 : vector<16x32xf32>
      %c0_75 = arith.constant 0 : index
      %c0_76 = arith.constant 0 : index
      %217 = vector.load %arg6[%c0_75, %c0_76] : memref<1x32xf32, #tpu.memory_space<vmem>>, vector<1x32xf32>
      %c0_77 = arith.constant 0 : index
      %c0_78 = arith.constant 0 : index
      %218 = vector.load %arg7[%c0_77, %c0_78] : memref<1x32xf32, #tpu.memory_space<vmem>>, vector<1x32xf32>
      %cst_79 = arith.constant dense<0.000000e+00> : vector<16xf32>
      %219 = vector.multi_reduction <add>, %216, %cst_79 [1] : vector<16x32xf32> to vector<16xf32>
      %220 = vector.shape_cast %219 : vector<16xf32> to vector<16x1xf32>
      %cst_80 = arith.constant 3.200000e+01 : f32
      %221 = vector.broadcast %cst_80 : f32 to vector<16x1xf32>
      %222 = arith.divf %220, %221 : vector<16x1xf32>
      %223 = vector.broadcast %222 : vector<16x1xf32> to vector<16x32xf32>
      %224 = arith.subf %216, %223 : vector<16x32xf32>
      %225 = arith.mulf %224, %224 : vector<16x32xf32>
      %cst_81 = arith.constant dense<0.000000e+00> : vector<16xf32>
      %226 = vector.multi_reduction <add>, %225, %cst_81 [1] : vector<16x32xf32> to vector<16xf32>
      %227 = vector.shape_cast %226 : vector<16xf32> to vector<16x1xf32>
      %cst_82 = arith.constant 3.200000e+01 : f32
      %228 = vector.broadcast %cst_82 : f32 to vector<16x1xf32>
      %229 = arith.divf %227, %228 : vector<16x1xf32>
      %cst_83 = arith.constant 9.99999974E-6 : f32
      %230 = vector.broadcast %cst_83 : f32 to vector<16x1xf32>
      %231 = arith.addf %229, %230 : vector<16x1xf32>
      %232 = math.rsqrt %231 : vector<16x1xf32>
      %233 = vector.broadcast %232 : vector<16x1xf32> to vector<16x32xf32>
      %234 = arith.mulf %224, %233 : vector<16x32xf32>
      %235 = vector.broadcast %217 : vector<1x32xf32> to vector<16x32xf32>
      %236 = arith.mulf %234, %235 : vector<16x32xf32>
      %237 = vector.broadcast %218 : vector<1x32xf32> to vector<16x32xf32>
      %238 = arith.addf %236, %237 : vector<16x32xf32>
      %239 = arith.truncf %238 : vector<16x32xf32> to vector<16x32xbf16>
      %c0_84 = arith.constant 0 : index
      %c0_85 = arith.constant 0 : index
      %240 = vector.load %arg11[%c0_84, %c0_85] : memref<1x32xf32, #tpu.memory_space<vmem>>, vector<1x32xf32>
      %241 = vector.broadcast %240 : vector<1x32xf32> to vector<16x32xf32>
      %242 = arith.addf %216, %241 : vector<16x32xf32>
      %c0_86 = arith.constant 0 : index
      %c0_87 = arith.constant 0 : index
      %243 = vector.load %arg13[%c0_86, %c0_87] : memref<16x32xf32, #tpu.memory_space<vmem>>, vector<16x32xf32>
      tpu.vector_store %arg13[%c0_86, %c0_87], %242 {strides = array<i32>} : memref<16x32xf32, #tpu.memory_space<vmem>>, vector<16x32xf32>,
      %c0_88 = arith.constant 0 : index
      %c0_89 = arith.constant 0 : index
      %244 = vector.load %arg8[%c0_88, %c0_89] : memref<32x128xbf16, #tpu.memory_space<vmem>>, vector<32x128xbf16>
      %cst_90 = arith.constant dense<0.000000e+00> : vector<16x128xf32>
      %245 = tpu.matmul %239, %244, %cst_90 {dimension_numbers = #tpu.dot_dimension_numbers<[1], [0], [0], [1], [0, 0, 1, 1], [], []>} : vector<16x32xbf16>, vector<32x128xbf16>, vector<16x128xf32> -> vector<16x128xf32>
      %c0_91 = arith.constant 0 : index
      %c0_92 = arith.constant 0 : index
      %246 = vector.load %arg9[%c0_91, %c0_92] : memref<1x128xf32, #tpu.memory_space<vmem>>, vector<1x128xf32>
      %247 = vector.broadcast %246 : vector<1x128xf32> to vector<16x128xf32>
      %248 = arith.addf %245, %247 : vector<16x128xf32>
      %cst_93 = arith.constant 5.000000e-01 : f32
      %249 = vector.broadcast %cst_93 : f32 to vector<16x128xf32>
      %250 = arith.mulf %249, %248 : vector<16x128xf32>
      %cst_94 = arith.constant 0.707106769 : f32
      %251 = vector.broadcast %cst_94 : f32 to vector<16x128xf32>
      %252 = arith.mulf %248, %251 : vector<16x128xf32>
      %253 = math.absf %252 : vector<16x128xf32>
      %cst_95 = arith.constant 0.327591091 : f32
      %254 = vector.broadcast %cst_95 : f32 to vector<16x128xf32>
      %255 = arith.mulf %254, %253 : vector<16x128xf32>
      %cst_96 = arith.constant 1.000000e+00 : f32
      %256 = vector.broadcast %cst_96 : f32 to vector<16x128xf32>
      %257 = arith.addf %256, %255 : vector<16x128xf32>
      %258 = tpu.reciprocal %257 {approx = true} : vector<16x128xf32> -> vector<16x128xf32>
      %259 = arith.mulf %257, %258 : vector<16x128xf32>
      %cst_97 = arith.constant 2.000000e+00 : f32
      %260 = vector.broadcast %cst_97 : f32 to vector<16x128xf32>
      %261 = arith.subf %260, %259 : vector<16x128xf32>
      %262 = arith.mulf %258, %261 : vector<16x128xf32>
      %cst_98 = arith.constant 1.06140542 : f32
      %263 = vector.broadcast %cst_98 : f32 to vector<16x128xf32>
      %264 = arith.mulf %263, %262 : vector<16x128xf32>
      %cst_99 = arith.constant -1.45315206 : f32
      %265 = vector.broadcast %cst_99 : f32 to vector<16x128xf32>
      %266 = arith.addf %264, %265 : vector<16x128xf32>
      %267 = arith.mulf %266, %262 : vector<16x128xf32>
      %cst_100 = arith.constant 1.42141378 : f32
      %268 = vector.broadcast %cst_100 : f32 to vector<16x128xf32>
      %269 = arith.addf %267, %268 : vector<16x128xf32>
      %270 = arith.mulf %269, %262 : vector<16x128xf32>
      %cst_101 = arith.constant -0.284496725 : f32
      %271 = vector.broadcast %cst_101 : f32 to vector<16x128xf32>
      %272 = arith.addf %270, %271 : vector<16x128xf32>
      %273 = arith.mulf %272, %262 : vector<16x128xf32>
      %cst_102 = arith.constant 0.254829586 : f32
      %274 = vector.broadcast %cst_102 : f32 to vector<16x128xf32>
      %275 = arith.addf %273, %274 : vector<16x128xf32>
      %276 = arith.mulf %275, %262 : vector<16x128xf32>
      %cst_103 = arith.constant 0.000000e+00 : f32
      %277 = vector.broadcast %cst_103 : f32 to vector<16x128xf32>
      %278 = arith.subf %277, %253 : vector<16x128xf32>
      %279 = arith.mulf %278, %253 : vector<16x128xf32>
      %280 = math.exp %279 : vector<16x128xf32>
      %281 = arith.mulf %276, %280 : vector<16x128xf32>
      %cst_104 = arith.constant 1.000000e+00 : f32
      %282 = vector.broadcast %cst_104 : f32 to vector<16x128xf32>
      %283 = arith.subf %282, %281 : vector<16x128xf32>
      %cst_105 = arith.constant 0.000000e+00 : f32
      %284 = vector.broadcast %cst_105 : f32 to vector<16x128xf32>
      %285 = arith.cmpf oge, %252, %284 : vector<16x128xf32>
      %cst_106 = arith.constant 0.000000e+00 : f32
      %286 = vector.broadcast %cst_106 : f32 to vector<16x128xf32>
      %287 = arith.subf %286, %283 : vector<16x128xf32>
      %288 = arith.select %285, %283, %287 : vector<16x128xi1>, vector<16x128xf32>
      %cst_107 = arith.constant 1.000000e+00 : f32
      %289 = vector.broadcast %cst_107 : f32 to vector<16x128xf32>
      %290 = arith.addf %289, %288 : vector<16x128xf32>
      %291 = arith.mulf %250, %290 : vector<16x128xf32>
      %c0_108 = arith.constant 0 : index
      %c0_109 = arith.constant 0 : index
      %292 = vector.load %arg13[%c0_108, %c0_109] : memref<16x32xf32, #tpu.memory_space<vmem>>, vector<16x32xf32>
      %293 = arith.truncf %291 : vector<16x128xf32> to vector<16x128xbf16>
      %c0_110 = arith.constant 0 : index
      %c0_111 = arith.constant 0 : index
      %294 = vector.load %arg10[%c0_110, %c0_111] : memref<128x32xbf16, #tpu.memory_space<vmem>>, vector<128x32xbf16>
      %cst_112 = arith.constant dense<0.000000e+00> : vector<16x32xf32>
      %295 = tpu.matmul %293, %294, %cst_112 {dimension_numbers = #tpu.dot_dimension_numbers<[1], [0], [0], [1], [0, 0, 1, 1], [], []>} : vector<16x128xbf16>, vector<128x32xbf16>, vector<16x32xf32> -> vector<16x32xf32>
      %296 = arith.addf %292, %295 : vector<16x32xf32>
      %c0_113 = arith.constant 0 : index
      %c0_114 = arith.constant 0 : index
      %297 = vector.load %arg13[%c0_113, %c0_114] : memref<16x32xf32, #tpu.memory_space<vmem>>, vector<16x32xf32>
      tpu.vector_store %arg13[%c0_113, %c0_114], %296 {strides = array<i32>} : memref<16x32xf32, #tpu.memory_space<vmem>>, vector<16x32xf32>,
    }
    %c0_3 = arith.constant 0 : index
    %c0_4 = arith.constant 0 : index
    %3 = vector.load %arg13[%c0_3, %c0_4] : memref<16x32xf32, #tpu.memory_space<vmem>>, vector<16x32xf32>
    %c0_5 = arith.constant 0 : index
    %c0_6 = arith.constant 0 : index
    %4 = vector.load %arg12[%c0_5, %c0_6] : memref<16x32xf32, #tpu.memory_space<vmem>>, vector<16x32xf32>
    tpu.vector_store %arg12[%c0_5, %c0_6], %3 {strides = array<i32>} : memref<16x32xf32, #tpu.memory_space<vmem>>, vector<16x32xf32>,
    return
  }
  func.func @transform_0(%arg0: i32) -> (i32, i32) {
    %c0_i32 = arith.constant 0 : i32
    %c0_i32_0 = arith.constant 0 : i32
    return %arg0, %c0_i32 : i32, i32
  }
  func.func @transform_1(%arg0: i32) -> (i32, i32) {
    %c0_i32 = arith.constant 0 : i32
    %c0_i32_0 = arith.constant 0 : i32
    %c0_i32_1 = arith.constant 0 : i32
    return %c0_i32, %c0_i32_0 : i32, i32
  }
  func.func @transform_2(%arg0: i32) -> (i32, i32) {
    %c0_i32 = arith.constant 0 : i32
    %c0_i32_0 = arith.constant 0 : i32
    %c0_i32_1 = arith.constant 0 : i32
    return %c0_i32, %c0_i32_0 : i32, i32
  }
  func.func @transform_3(%arg0: i32) -> (i32, i32) {
    %c0_i32 = arith.constant 0 : i32
    %c0_i32_0 = arith.constant 0 : i32
    %c0_i32_1 = arith.constant 0 : i32
    return %c0_i32, %c0_i32_0 : i32, i32
  }
  func.func @transform_4(%arg0: i32) -> (i32, i32) {
    %c0_i32 = arith.constant 0 : i32
    %c0_i32_0 = arith.constant 0 : i32
    %c0_i32_1 = arith.constant 0 : i32
    return %c0_i32, %c0_i32_0 : i32, i32
  }
  func.func @transform_5(%arg0: i32) -> (i32, i32) {
    %c0_i32 = arith.constant 0 : i32
    %c0_i32_0 = arith.constant 0 : i32
    %c0_i32_1 = arith.constant 0 : i32
    return %c0_i32, %c0_i32_0 : i32, i32
  }
  func.func @transform_6(%arg0: i32) -> (i32, i32) {
    %c0_i32 = arith.constant 0 : i32
    %c0_i32_0 = arith.constant 0 : i32
    %c0_i32_1 = arith.constant 0 : i32
    return %c0_i32, %c0_i32_0 : i32, i32
  }
  func.func @transform_7(%arg0: i32) -> (i32, i32) {
    %c0_i32 = arith.constant 0 : i32
    %c0_i32_0 = arith.constant 0 : i32
    %c0_i32_1 = arith.constant 0 : i32
    return %c0_i32, %c0_i32_0 : i32, i32
  }
  func.func @transform_8(%arg0: i32) -> (i32, i32) {
    %c0_i32 = arith.constant 0 : i32
    %c0_i32_0 = arith.constant 0 : i32
    %c0_i32_1 = arith.constant 0 : i32
    return %c0_i32, %c0_i32_0 : i32, i32
  }
  func.func @transform_9(%arg0: i32) -> (i32, i32) {
    %c0_i32 = arith.constant 0 : i32
    %c0_i32_0 = arith.constant 0 : i32
    %c0_i32_1 = arith.constant 0 : i32
    return %c0_i32, %c0_i32_0 : i32, i32
  }
  func.func @transform_10(%arg0: i32) -> (i32, i32) {
    %c0_i32 = arith.constant 0 : i32
    %c0_i32_0 = arith.constant 0 : i32
    %c0_i32_1 = arith.constant 0 : i32
    return %c0_i32, %c0_i32_0 : i32, i32
  }
  func.func @transform_11(%arg0: i32) -> (i32, i32) {
    %c0_i32 = arith.constant 0 : i32
    %c0_i32_0 = arith.constant 0 : i32
    return %arg0, %c0_i32 : i32, i32
  }
}

module attributes {stable_mosaic.version = 11 : i64} {
  func.func @vit_encoder_kernel(%arg0: i32, %arg1: memref<16x32xf32, #tpu.memory_space<vmem>>, %arg2: memref<1x32xf32, #tpu.memory_space<vmem>>, %arg3: memref<1x32xf32, #tpu.memory_space<vmem>>, %arg4: memref<32x96xbf16, #tpu.memory_space<vmem>>, %arg5: memref<1x96xf32, #tpu.memory_space<vmem>>, %arg6: memref<1x32xf32, #tpu.memory_space<vmem>>, %arg7: memref<1x32xf32, #tpu.memory_space<vmem>>, %arg8: memref<32x128xbf16, #tpu.memory_space<vmem>>, %arg9: memref<1x128xf32, #tpu.memory_space<vmem>>, %arg10: memref<128x32xbf16, #tpu.memory_space<vmem>>, %arg11: memref<1x32xf32, #tpu.memory_space<vmem>>, %arg12: memref<16x32xf32, #tpu.memory_space<vmem>>, %arg13: memref<16x32xf32, #tpu.memory_space<vmem>>, %arg14: memref<16x32xf32, #tpu.memory_space<vmem>>) attributes {dimension_semantics = [#tpu.dimension_semantics<parallel>], iteration_bounds = array<i64: 1>, scalar_prefetch = 0 : i64, scratch_operands = 2 : i64, tpu.core_type = #tpu.core_type<tc>, window_params = [{transform_indices = @transform_0, window_bounds = array<i64: 16, 32>}, {pipeline_mode = #tpu.pipeline_mode<synchronous>, transform_indices = @transform_1, window_bounds = array<i64: 1, 32>}, {pipeline_mode = #tpu.pipeline_mode<synchronous>, transform_indices = @transform_2, window_bounds = array<i64: 1, 32>}, {pipeline_mode = #tpu.pipeline_mode<synchronous>, transform_indices = @transform_3, window_bounds = array<i64: 32, 96>}, {pipeline_mode = #tpu.pipeline_mode<synchronous>, transform_indices = @transform_4, window_bounds = array<i64: 1, 96>}, {pipeline_mode = #tpu.pipeline_mode<synchronous>, transform_indices = @transform_5, window_bounds = array<i64: 1, 32>}, {pipeline_mode = #tpu.pipeline_mode<synchronous>, transform_indices = @transform_6, window_bounds = array<i64: 1, 32>}, {pipeline_mode = #tpu.pipeline_mode<synchronous>, transform_indices = @transform_7, window_bounds = array<i64: 32, 128>}, {pipeline_mode = #tpu.pipeline_mode<synchronous>, transform_indices = @transform_8, window_bounds = array<i64: 1, 128>}, {pipeline_mode = #tpu.pipeline_mode<synchronous>, transform_indices = @transform_9, window_bounds = array<i64: 128, 32>}, {pipeline_mode = #tpu.pipeline_mode<synchronous>, transform_indices = @transform_10, window_bounds = array<i64: 1, 32>}, {transform_indices = @transform_11, window_bounds = array<i64: 16, 32>}]} {
    %c0 = arith.constant 0 : index
    %c0_0 = arith.constant 0 : index
    %0 = vector.load %arg1[%c0, %c0_0] : memref<16x32xf32, #tpu.memory_space<vmem>>, vector<16x32xf32>
    %c0_1 = arith.constant 0 : index
    %c0_2 = arith.constant 0 : index
    %1 = vector.load %arg13[%c0_1, %c0_2] : memref<16x32xf32, #tpu.memory_space<vmem>>, vector<16x32xf32>
    tpu.vector_store %arg13[%c0_1, %c0_2], %0 {strides = array<i32>} : memref<16x32xf32, #tpu.memory_space<vmem>>, vector<16x32xf32>,
    %c0_i32 = arith.constant 0 : i32
    %c2_i32 = arith.constant 2 : i32
    %2 = arith.addi %c0_i32, %c2_i32 : i32
    %c1_i32 = arith.constant 1 : i32
    scf.for %arg15 = %c0_i32 to %2 step %c1_i32  : i32 {
      %c0_7 = arith.constant 0 : index
      %c0_8 = arith.constant 0 : index
      %5 = vector.load %arg13[%c0_7, %c0_8] : memref<16x32xf32, #tpu.memory_space<vmem>>, vector<16x32xf32>
      %c0_9 = arith.constant 0 : index
      %c0_10 = arith.constant 0 : index
      %6 = vector.load %arg2[%c0_9, %c0_10] : memref<1x32xf32, #tpu.memory_space<vmem>>, vector<1x32xf32>
      %c0_11 = arith.constant 0 : index
      %c0_12 = arith.constant 0 : index
      %7 = vector.load %arg3[%c0_11, %c0_12] : memref<1x32xf32, #tpu.memory_space<vmem>>, vector<1x32xf32>
      %cst = arith.constant dense<0.000000e+00> : vector<16xf32>
      %8 = vector.multi_reduction <add>, %5, %cst [1] : vector<16x32xf32> to vector<16xf32>
      %9 = vector.shape_cast %8 : vector<16xf32> to vector<16x1xf32>
      %cst_13 = arith.constant 3.200000e+01 : f32
      %10 = vector.broadcast %cst_13 : f32 to vector<16x1xf32>
      %11 = arith.divf %9, %10 : vector<16x1xf32>
      %12 = vector.broadcast %11 : vector<16x1xf32> to vector<16x32xf32>
      %13 = arith.subf %5, %12 : vector<16x32xf32>
      %14 = arith.mulf %13, %13 : vector<16x32xf32>
      %cst_14 = arith.constant dense<0.000000e+00> : vector<16xf32>
      %15 = vector.multi_reduction <add>, %14, %cst_14 [1] : vector<16x32xf32> to vector<16xf32>
      %16 = vector.shape_cast %15 : vector<16xf32> to vector<16x1xf32>
      %cst_15 = arith.constant 3.200000e+01 : f32
      %17 = vector.broadcast %cst_15 : f32 to vector<16x1xf32>
      %18 = arith.divf %16, %17 : vector<16x1xf32>
      %cst_16 = arith.constant 9.99999974E-6 : f32
      %19 = vector.broadcast %cst_16 : f32 to vector<16x1xf32>
      %20 = arith.addf %18, %19 : vector<16x1xf32>
      %21 = math.rsqrt %20 : vector<16x1xf32>
      %22 = vector.broadcast %21 : vector<16x1xf32> to vector<16x32xf32>
      %23 = arith.mulf %13, %22 : vector<16x32xf32>
      %24 = vector.broadcast %6 : vector<1x32xf32> to vector<16x32xf32>
      %25 = arith.mulf %23, %24 : vector<16x32xf32>
      %26 = vector.broadcast %7 : vector<1x32xf32> to vector<16x32xf32>
      %27 = arith.addf %25, %26 : vector<16x32xf32>
      %28 = arith.truncf %27 : vector<16x32xf32> to vector<16x32xbf16>
      %c0_17 = arith.constant 0 : index
      %c0_18 = arith.constant 0 : index
      %29 = vector.load %arg4[%c0_17, %c0_18] : memref<32x96xbf16, #tpu.memory_space<vmem>>, vector<32x96xbf16>
      %cst_19 = arith.constant dense<0.000000e+00> : vector<16x96xf32>
      %30 = tpu.matmul %28, %29, %cst_19 {dimension_numbers = #tpu.dot_dimension_numbers<[1], [0], [0], [1], [0, 0, 1, 1], [], []>} : vector<16x32xbf16>, vector<32x96xbf16>, vector<16x96xf32> -> vector<16x96xf32>
      %c0_20 = arith.constant 0 : index
      %c0_21 = arith.constant 0 : index
      %31 = vector.load %arg5[%c0_20, %c0_21] : memref<1x96xf32, #tpu.memory_space<vmem>>, vector<1x96xf32>
      %32 = vector.broadcast %31 : vector<1x96xf32> to vector<16x96xf32>
      %33 = arith.addf %30, %32 : vector<16x96xf32>
      %34 = arith.truncf %33 : vector<16x96xf32> to vector<16x96xbf16>
      %35 = vector.extract_strided_slice %34 {offsets = [0, 0], sizes = [8, 8], strides = [1, 1]} : vector<16x96xbf16> to vector<8x8xbf16>
      %36 = vector.extract_strided_slice %34 {offsets = [0, 32], sizes = [8, 8], strides = [1, 1]} : vector<16x96xbf16> to vector<8x8xbf16>
      %37 = vector.extract_strided_slice %34 {offsets = [0, 64], sizes = [8, 8], strides = [1, 1]} : vector<16x96xbf16> to vector<8x8xbf16>
      %cst_22 = arith.constant dense<0.000000e+00> : vector<8x8xf32>
      %38 = tpu.matmul %35, %36, %cst_22 {dimension_numbers = #tpu.dot_dimension_numbers<[1], [1], [0], [0], [0, 0, 1, 0], [], []>} : vector<8x8xbf16>, vector<8x8xbf16>, vector<8x8xf32> -> vector<8x8xf32>
      %cst_23 = arith.constant 0.353553385 : f32
      %39 = vector.broadcast %cst_23 : f32 to vector<8x8xf32>
      %40 = arith.mulf %38, %39 : vector<8x8xf32>
      %cst_24 = arith.constant dense<0xFF800000> : vector<8xf32>
      %41 = vector.multi_reduction <maximumf>, %40, %cst_24 [1] : vector<8x8xf32> to vector<8xf32>
      %42 = vector.shape_cast %41 : vector<8xf32> to vector<8x1xf32>
      %43 = vector.broadcast %42 : vector<8x1xf32> to vector<8x8xf32>
      %44 = arith.subf %40, %43 : vector<8x8xf32>
      %45 = math.exp %44 : vector<8x8xf32>
      %cst_25 = arith.constant dense<0.000000e+00> : vector<8xf32>
      %46 = vector.multi_reduction <add>, %45, %cst_25 [1] : vector<8x8xf32> to vector<8xf32>
      %47 = vector.shape_cast %46 : vector<8xf32> to vector<8x1xf32>
      %48 = tpu.reciprocal %47 {approx = true} : vector<8x1xf32> -> vector<8x1xf32>
      %49 = arith.mulf %47, %48 : vector<8x1xf32>
      %cst_26 = arith.constant 2.000000e+00 : f32
      %50 = vector.broadcast %cst_26 : f32 to vector<8x1xf32>
      %51 = arith.subf %50, %49 : vector<8x1xf32>
      %52 = arith.mulf %48, %51 : vector<8x1xf32>
      %53 = vector.broadcast %52 : vector<8x1xf32> to vector<8x8xf32>
      %54 = arith.mulf %45, %53 : vector<8x8xf32>
      %55 = arith.truncf %54 : vector<8x8xf32> to vector<8x8xbf16>
      %cst_27 = arith.constant dense<0.000000e+00> : vector<8x8xf32>
      %56 = tpu.matmul %55, %37, %cst_27 {dimension_numbers = #tpu.dot_dimension_numbers<[1], [0], [0], [1], [0, 0, 1, 1], [], []>} : vector<8x8xbf16>, vector<8x8xbf16>, vector<8x8xf32> -> vector<8x8xf32>
      %57 = vector.extract_strided_slice %34 {offsets = [0, 8], sizes = [8, 8], strides = [1, 1]} : vector<16x96xbf16> to vector<8x8xbf16>
      %58 = vector.extract_strided_slice %34 {offsets = [0, 40], sizes = [8, 8], strides = [1, 1]} : vector<16x96xbf16> to vector<8x8xbf16>
      %59 = vector.extract_strided_slice %34 {offsets = [0, 72], sizes = [8, 8], strides = [1, 1]} : vector<16x96xbf16> to vector<8x8xbf16>
      %cst_28 = arith.constant dense<0.000000e+00> : vector<8x8xf32>
      %60 = tpu.matmul %57, %58, %cst_28 {dimension_numbers = #tpu.dot_dimension_numbers<[1], [1], [0], [0], [0, 0, 1, 0], [], []>} : vector<8x8xbf16>, vector<8x8xbf16>, vector<8x8xf32> -> vector<8x8xf32>
      %cst_29 = arith.constant 0.353553385 : f32
      %61 = vector.broadcast %cst_29 : f32 to vector<8x8xf32>
      %62 = arith.mulf %60, %61 : vector<8x8xf32>
      %cst_30 = arith.constant dense<0xFF800000> : vector<8xf32>
      %63 = vector.multi_reduction <maximumf>, %62, %cst_30 [1] : vector<8x8xf32> to vector<8xf32>
      %64 = vector.shape_cast %63 : vector<8xf32> to vector<8x1xf32>
      %65 = vector.broadcast %64 : vector<8x1xf32> to vector<8x8xf32>
      %66 = arith.subf %62, %65 : vector<8x8xf32>
      %67 = math.exp %66 : vector<8x8xf32>
      %cst_31 = arith.constant dense<0.000000e+00> : vector<8xf32>
      %68 = vector.multi_reduction <add>, %67, %cst_31 [1] : vector<8x8xf32> to vector<8xf32>
      %69 = vector.shape_cast %68 : vector<8xf32> to vector<8x1xf32>
      %70 = tpu.reciprocal %69 {approx = true} : vector<8x1xf32> -> vector<8x1xf32>
      %71 = arith.mulf %69, %70 : vector<8x1xf32>
      %cst_32 = arith.constant 2.000000e+00 : f32
      %72 = vector.broadcast %cst_32 : f32 to vector<8x1xf32>
      %73 = arith.subf %72, %71 : vector<8x1xf32>
      %74 = arith.mulf %70, %73 : vector<8x1xf32>
      %75 = vector.broadcast %74 : vector<8x1xf32> to vector<8x8xf32>
      %76 = arith.mulf %67, %75 : vector<8x8xf32>
      %77 = arith.truncf %76 : vector<8x8xf32> to vector<8x8xbf16>
      %cst_33 = arith.constant dense<0.000000e+00> : vector<8x8xf32>
      %78 = tpu.matmul %77, %59, %cst_33 {dimension_numbers = #tpu.dot_dimension_numbers<[1], [0], [0], [1], [0, 0, 1, 1], [], []>} : vector<8x8xbf16>, vector<8x8xbf16>, vector<8x8xf32> -> vector<8x8xf32>
      %79 = vector.extract_strided_slice %34 {offsets = [0, 16], sizes = [8, 8], strides = [1, 1]} : vector<16x96xbf16> to vector<8x8xbf16>
      %80 = vector.extract_strided_slice %34 {offsets = [0, 48], sizes = [8, 8], strides = [1, 1]} : vector<16x96xbf16> to vector<8x8xbf16>
      %81 = vector.extract_strided_slice %34 {offsets = [0, 80], sizes = [8, 8], strides = [1, 1]} : vector<16x96xbf16> to vector<8x8xbf16>
      %cst_34 = arith.constant dense<0.000000e+00> : vector<8x8xf32>
      %82 = tpu.matmul %79, %80, %cst_34 {dimension_numbers = #tpu.dot_dimension_numbers<[1], [1], [0], [0], [0, 0, 1, 0], [], []>} : vector<8x8xbf16>, vector<8x8xbf16>, vector<8x8xf32> -> vector<8x8xf32>
      %cst_35 = arith.constant 0.353553385 : f32
      %83 = vector.broadcast %cst_35 : f32 to vector<8x8xf32>
      %84 = arith.mulf %82, %83 : vector<8x8xf32>
      %cst_36 = arith.constant dense<0xFF800000> : vector<8xf32>
      %85 = vector.multi_reduction <maximumf>, %84, %cst_36 [1] : vector<8x8xf32> to vector<8xf32>
      %86 = vector.shape_cast %85 : vector<8xf32> to vector<8x1xf32>
      %87 = vector.broadcast %86 : vector<8x1xf32> to vector<8x8xf32>
      %88 = arith.subf %84, %87 : vector<8x8xf32>
      %89 = math.exp %88 : vector<8x8xf32>
      %cst_37 = arith.constant dense<0.000000e+00> : vector<8xf32>
      %90 = vector.multi_reduction <add>, %89, %cst_37 [1] : vector<8x8xf32> to vector<8xf32>
      %91 = vector.shape_cast %90 : vector<8xf32> to vector<8x1xf32>
      %92 = tpu.reciprocal %91 {approx = true} : vector<8x1xf32> -> vector<8x1xf32>
      %93 = arith.mulf %91, %92 : vector<8x1xf32>
      %cst_38 = arith.constant 2.000000e+00 : f32
      %94 = vector.broadcast %cst_38 : f32 to vector<8x1xf32>
      %95 = arith.subf %94, %93 : vector<8x1xf32>
      %96 = arith.mulf %92, %95 : vector<8x1xf32>
      %97 = vector.broadcast %96 : vector<8x1xf32> to vector<8x8xf32>
      %98 = arith.mulf %89, %97 : vector<8x8xf32>
      %99 = arith.truncf %98 : vector<8x8xf32> to vector<8x8xbf16>
      %cst_39 = arith.constant dense<0.000000e+00> : vector<8x8xf32>
      %100 = tpu.matmul %99, %81, %cst_39 {dimension_numbers = #tpu.dot_dimension_numbers<[1], [0], [0], [1], [0, 0, 1, 1], [], []>} : vector<8x8xbf16>, vector<8x8xbf16>, vector<8x8xf32> -> vector<8x8xf32>
      %101 = vector.extract_strided_slice %34 {offsets = [0, 24], sizes = [8, 8], strides = [1, 1]} : vector<16x96xbf16> to vector<8x8xbf16>
      %102 = vector.extract_strided_slice %34 {offsets = [0, 56], sizes = [8, 8], strides = [1, 1]} : vector<16x96xbf16> to vector<8x8xbf16>
      %103 = vector.extract_strided_slice %34 {offsets = [0, 88], sizes = [8, 8], strides = [1, 1]} : vector<16x96xbf16> to vector<8x8xbf16>
      %cst_40 = arith.constant dense<0.000000e+00> : vector<8x8xf32>
      %104 = tpu.matmul %101, %102, %cst_40 {dimension_numbers = #tpu.dot_dimension_numbers<[1], [1], [0], [0], [0, 0, 1, 0], [], []>} : vector<8x8xbf16>, vector<8x8xbf16>, vector<8x8xf32> -> vector<8x8xf32>
      %cst_41 = arith.constant 0.353553385 : f32
      %105 = vector.broadcast %cst_41 : f32 to vector<8x8xf32>
      %106 = arith.mulf %104, %105 : vector<8x8xf32>
      %cst_42 = arith.constant dense<0xFF800000> : vector<8xf32>
      %107 = vector.multi_reduction <maximumf>, %106, %cst_42 [1] : vector<8x8xf32> to vector<8xf32>
      %108 = vector.shape_cast %107 : vector<8xf32> to vector<8x1xf32>
      %109 = vector.broadcast %108 : vector<8x1xf32> to vector<8x8xf32>
      %110 = arith.subf %106, %109 : vector<8x8xf32>
      %111 = math.exp %110 : vector<8x8xf32>
      %cst_43 = arith.constant dense<0.000000e+00> : vector<8xf32>
      %112 = vector.multi_reduction <add>, %111, %cst_43 [1] : vector<8x8xf32> to vector<8xf32>
      %113 = vector.shape_cast %112 : vector<8xf32> to vector<8x1xf32>
      %114 = tpu.reciprocal %113 {approx = true} : vector<8x1xf32> -> vector<8x1xf32>
      %115 = arith.mulf %113, %114 : vector<8x1xf32>
      %cst_44 = arith.constant 2.000000e+00 : f32
      %116 = vector.broadcast %cst_44 : f32 to vector<8x1xf32>
      %117 = arith.subf %116, %115 : vector<8x1xf32>
      %118 = arith.mulf %114, %117 : vector<8x1xf32>
      %119 = vector.broadcast %118 : vector<8x1xf32> to vector<8x8xf32>
      %120 = arith.mulf %111, %119 : vector<8x8xf32>
      %121 = arith.truncf %120 : vector<8x8xf32> to vector<8x8xbf16>
      %cst_45 = arith.constant dense<0.000000e+00> : vector<8x8xf32>
      %122 = tpu.matmul %121, %103, %cst_45 {dimension_numbers = #tpu.dot_dimension_numbers<[1], [0], [0], [1], [0, 0, 1, 1], [], []>} : vector<8x8xbf16>, vector<8x8xbf16>, vector<8x8xf32> -> vector<8x8xf32>
      %123 = tpu.concatenate %56, %78, %100, %122 in 1 : vector<8x8xf32>, vector<8x8xf32>, vector<8x8xf32>, vector<8x8xf32> -> vector<8x32xf32>
      %c0_46 = arith.constant 0 : index
      %c0_47 = arith.constant 0 : index
      %124 = vector.load %arg14[%c0_46, %c0_47] : memref<16x32xf32, #tpu.memory_space<vmem>>, vector<8x32xf32>
      tpu.vector_store %arg14[%c0_46, %c0_47], %123 {strides = array<i32>} : memref<16x32xf32, #tpu.memory_space<vmem>>, vector<8x32xf32>,
      %125 = vector.extract_strided_slice %34 {offsets = [8, 0], sizes = [8, 8], strides = [1, 1]} : vector<16x96xbf16> to vector<8x8xbf16>
      %126 = vector.extract_strided_slice %34 {offsets = [8, 32], sizes = [8, 8], strides = [1, 1]} : vector<16x96xbf16> to vector<8x8xbf16>
      %127 = vector.extract_strided_slice %34 {offsets = [8, 64], sizes = [8, 8], strides = [1, 1]} : vector<16x96xbf16> to vector<8x8xbf16>
      %cst_48 = arith.constant dense<0.000000e+00> : vector<8x8xf32>
      %128 = tpu.matmul %125, %126, %cst_48 {dimension_numbers = #tpu.dot_dimension_numbers<[1], [1], [0], [0], [0, 0, 1, 0], [], []>} : vector<8x8xbf16>, vector<8x8xbf16>, vector<8x8xf32> -> vector<8x8xf32>
      %cst_49 = arith.constant 0.353553385 : f32
      %129 = vector.broadcast %cst_49 : f32 to vector<8x8xf32>
      %130 = arith.mulf %128, %129 : vector<8x8xf32>
      %cst_50 = arith.constant dense<0xFF800000> : vector<8xf32>
      %131 = vector.multi_reduction <maximumf>, %130, %cst_50 [1] : vector<8x8xf32> to vector<8xf32>
      %132 = vector.shape_cast %131 : vector<8xf32> to vector<8x1xf32>
      %133 = vector.broadcast %132 : vector<8x1xf32> to vector<8x8xf32>
      %134 = arith.subf %130, %133 : vector<8x8xf32>
      %135 = math.exp %134 : vector<8x8xf32>
      %cst_51 = arith.constant dense<0.000000e+00> : vector<8xf32>
      %136 = vector.multi_reduction <add>, %135, %cst_51 [1] : vector<8x8xf32> to vector<8xf32>
      %137 = vector.shape_cast %136 : vector<8xf32> to vector<8x1xf32>
      %138 = tpu.reciprocal %137 {approx = true} : vector<8x1xf32> -> vector<8x1xf32>
      %139 = arith.mulf %137, %138 : vector<8x1xf32>
      %cst_52 = arith.constant 2.000000e+00 : f32
      %140 = vector.broadcast %cst_52 : f32 to vector<8x1xf32>
      %141 = arith.subf %140, %139 : vector<8x1xf32>
      %142 = arith.mulf %138, %141 : vector<8x1xf32>
      %143 = vector.broadcast %142 : vector<8x1xf32> to vector<8x8xf32>
      %144 = arith.mulf %135, %143 : vector<8x8xf32>
      %145 = arith.truncf %144 : vector<8x8xf32> to vector<8x8xbf16>
      %cst_53 = arith.constant dense<0.000000e+00> : vector<8x8xf32>
      %146 = tpu.matmul %145, %127, %cst_53 {dimension_numbers = #tpu.dot_dimension_numbers<[1], [0], [0], [1], [0, 0, 1, 1], [], []>} : vector<8x8xbf16>, vector<8x8xbf16>, vector<8x8xf32> -> vector<8x8xf32>
      %147 = vector.extract_strided_slice %34 {offsets = [8, 8], sizes = [8, 8], strides = [1, 1]} : vector<16x96xbf16> to vector<8x8xbf16>
      %148 = vector.extract_strided_slice %34 {offsets = [8, 40], sizes = [8, 8], strides = [1, 1]} : vector<16x96xbf16> to vector<8x8xbf16>
      %149 = vector.extract_strided_slice %34 {offsets = [8, 72], sizes = [8, 8], strides = [1, 1]} : vector<16x96xbf16> to vector<8x8xbf16>
      %cst_54 = arith.constant dense<0.000000e+00> : vector<8x8xf32>
      %150 = tpu.matmul %147, %148, %cst_54 {dimension_numbers = #tpu.dot_dimension_numbers<[1], [1], [0], [0], [0, 0, 1, 0], [], []>} : vector<8x8xbf16>, vector<8x8xbf16>, vector<8x8xf32> -> vector<8x8xf32>
      %cst_55 = arith.constant 0.353553385 : f32
      %151 = vector.broadcast %cst_55 : f32 to vector<8x8xf32>
      %152 = arith.mulf %150, %151 : vector<8x8xf32>
      %cst_56 = arith.constant dense<0xFF800000> : vector<8xf32>
      %153 = vector.multi_reduction <maximumf>, %152, %cst_56 [1] : vector<8x8xf32> to vector<8xf32>
      %154 = vector.shape_cast %153 : vector<8xf32> to vector<8x1xf32>
      %155 = vector.broadcast %154 : vector<8x1xf32> to vector<8x8xf32>
      %156 = arith.subf %152, %155 : vector<8x8xf32>
      %157 = math.exp %156 : vector<8x8xf32>
      %cst_57 = arith.constant dense<0.000000e+00> : vector<8xf32>
      %158 = vector.multi_reduction <add>, %157, %cst_57 [1] : vector<8x8xf32> to vector<8xf32>
      %159 = vector.shape_cast %158 : vector<8xf32> to vector<8x1xf32>
      %160 = tpu.reciprocal %159 {approx = true} : vector<8x1xf32> -> vector<8x1xf32>
      %161 = arith.mulf %159, %160 : vector<8x1xf32>
      %cst_58 = arith.constant 2.000000e+00 : f32
      %162 = vector.broadcast %cst_58 : f32 to vector<8x1xf32>
      %163 = arith.subf %162, %161 : vector<8x1xf32>
      %164 = arith.mulf %160, %163 : vector<8x1xf32>
      %165 = vector.broadcast %164 : vector<8x1xf32> to vector<8x8xf32>
      %166 = arith.mulf %157, %165 : vector<8x8xf32>
      %167 = arith.truncf %166 : vector<8x8xf32> to vector<8x8xbf16>
      %cst_59 = arith.constant dense<0.000000e+00> : vector<8x8xf32>
      %168 = tpu.matmul %167, %149, %cst_59 {dimension_numbers = #tpu.dot_dimension_numbers<[1], [0], [0], [1], [0, 0, 1, 1], [], []>} : vector<8x8xbf16>, vector<8x8xbf16>, vector<8x8xf32> -> vector<8x8xf32>
      %169 = vector.extract_strided_slice %34 {offsets = [8, 16], sizes = [8, 8], strides = [1, 1]} : vector<16x96xbf16> to vector<8x8xbf16>
      %170 = vector.extract_strided_slice %34 {offsets = [8, 48], sizes = [8, 8], strides = [1, 1]} : vector<16x96xbf16> to vector<8x8xbf16>
      %171 = vector.extract_strided_slice %34 {offsets = [8, 80], sizes = [8, 8], strides = [1, 1]} : vector<16x96xbf16> to vector<8x8xbf16>
      %cst_60 = arith.constant dense<0.000000e+00> : vector<8x8xf32>
      %172 = tpu.matmul %169, %170, %cst_60 {dimension_numbers = #tpu.dot_dimension_numbers<[1], [1], [0], [0], [0, 0, 1, 0], [], []>} : vector<8x8xbf16>, vector<8x8xbf16>, vector<8x8xf32> -> vector<8x8xf32>
      %cst_61 = arith.constant 0.353553385 : f32
      %173 = vector.broadcast %cst_61 : f32 to vector<8x8xf32>
      %174 = arith.mulf %172, %173 : vector<8x8xf32>
      %cst_62 = arith.constant dense<0xFF800000> : vector<8xf32>
      %175 = vector.multi_reduction <maximumf>, %174, %cst_62 [1] : vector<8x8xf32> to vector<8xf32>
      %176 = vector.shape_cast %175 : vector<8xf32> to vector<8x1xf32>
      %177 = vector.broadcast %176 : vector<8x1xf32> to vector<8x8xf32>
      %178 = arith.subf %174, %177 : vector<8x8xf32>
      %179 = math.exp %178 : vector<8x8xf32>
      %cst_63 = arith.constant dense<0.000000e+00> : vector<8xf32>
      %180 = vector.multi_reduction <add>, %179, %cst_63 [1] : vector<8x8xf32> to vector<8xf32>
      %181 = vector.shape_cast %180 : vector<8xf32> to vector<8x1xf32>
      %182 = tpu.reciprocal %181 {approx = true} : vector<8x1xf32> -> vector<8x1xf32>
      %183 = arith.mulf %181, %182 : vector<8x1xf32>
      %cst_64 = arith.constant 2.000000e+00 : f32
      %184 = vector.broadcast %cst_64 : f32 to vector<8x1xf32>
      %185 = arith.subf %184, %183 : vector<8x1xf32>
      %186 = arith.mulf %182, %185 : vector<8x1xf32>
      %187 = vector.broadcast %186 : vector<8x1xf32> to vector<8x8xf32>
      %188 = arith.mulf %179, %187 : vector<8x8xf32>
      %189 = arith.truncf %188 : vector<8x8xf32> to vector<8x8xbf16>
      %cst_65 = arith.constant dense<0.000000e+00> : vector<8x8xf32>
      %190 = tpu.matmul %189, %171, %cst_65 {dimension_numbers = #tpu.dot_dimension_numbers<[1], [0], [0], [1], [0, 0, 1, 1], [], []>} : vector<8x8xbf16>, vector<8x8xbf16>, vector<8x8xf32> -> vector<8x8xf32>
      %191 = vector.extract_strided_slice %34 {offsets = [8, 24], sizes = [8, 8], strides = [1, 1]} : vector<16x96xbf16> to vector<8x8xbf16>
      %192 = vector.extract_strided_slice %34 {offsets = [8, 56], sizes = [8, 8], strides = [1, 1]} : vector<16x96xbf16> to vector<8x8xbf16>
      %193 = vector.extract_strided_slice %34 {offsets = [8, 88], sizes = [8, 8], strides = [1, 1]} : vector<16x96xbf16> to vector<8x8xbf16>
      %cst_66 = arith.constant dense<0.000000e+00> : vector<8x8xf32>
      %194 = tpu.matmul %191, %192, %cst_66 {dimension_numbers = #tpu.dot_dimension_numbers<[1], [1], [0], [0], [0, 0, 1, 0], [], []>} : vector<8x8xbf16>, vector<8x8xbf16>, vector<8x8xf32> -> vector<8x8xf32>
      %cst_67 = arith.constant 0.353553385 : f32
      %195 = vector.broadcast %cst_67 : f32 to vector<8x8xf32>
      %196 = arith.mulf %194, %195 : vector<8x8xf32>
      %cst_68 = arith.constant dense<0xFF800000> : vector<8xf32>
      %197 = vector.multi_reduction <maximumf>, %196, %cst_68 [1] : vector<8x8xf32> to vector<8xf32>
      %198 = vector.shape_cast %197 : vector<8xf32> to vector<8x1xf32>
      %199 = vector.broadcast %198 : vector<8x1xf32> to vector<8x8xf32>
      %200 = arith.subf %196, %199 : vector<8x8xf32>
      %201 = math.exp %200 : vector<8x8xf32>
      %cst_69 = arith.constant dense<0.000000e+00> : vector<8xf32>
      %202 = vector.multi_reduction <add>, %201, %cst_69 [1] : vector<8x8xf32> to vector<8xf32>
      %203 = vector.shape_cast %202 : vector<8xf32> to vector<8x1xf32>
      %204 = tpu.reciprocal %203 {approx = true} : vector<8x1xf32> -> vector<8x1xf32>
      %205 = arith.mulf %203, %204 : vector<8x1xf32>
      %cst_70 = arith.constant 2.000000e+00 : f32
      %206 = vector.broadcast %cst_70 : f32 to vector<8x1xf32>
      %207 = arith.subf %206, %205 : vector<8x1xf32>
      %208 = arith.mulf %204, %207 : vector<8x1xf32>
      %209 = vector.broadcast %208 : vector<8x1xf32> to vector<8x8xf32>
      %210 = arith.mulf %201, %209 : vector<8x8xf32>
      %211 = arith.truncf %210 : vector<8x8xf32> to vector<8x8xbf16>
      %cst_71 = arith.constant dense<0.000000e+00> : vector<8x8xf32>
      %212 = tpu.matmul %211, %193, %cst_71 {dimension_numbers = #tpu.dot_dimension_numbers<[1], [0], [0], [1], [0, 0, 1, 1], [], []>} : vector<8x8xbf16>, vector<8x8xbf16>, vector<8x8xf32> -> vector<8x8xf32>
      %213 = tpu.concatenate %146, %168, %190, %212 in 1 : vector<8x8xf32>, vector<8x8xf32>, vector<8x8xf32>, vector<8x8xf32> -> vector<8x32xf32>
      %c8 = arith.constant 8 : index
      %c0_72 = arith.constant 0 : index
      %214 = vector.load %arg14[%c8, %c0_72] : memref<16x32xf32, #tpu.memory_space<vmem>>, vector<8x32xf32>
      tpu.vector_store %arg14[%c8, %c0_72], %213 {strides = array<i32>} : memref<16x32xf32, #tpu.memory_space<vmem>>, vector<8x32xf32>,
      %c0_73 = arith.constant 0 : index
      %c0_74 = arith.constant 0 : index
      %215 = vector.load %arg14[%c0_73, %c0_74] : memref<16x32xf32, #tpu.memory_space<vmem>>, vector<16x32xf32>
      %216 = arith.addf %5, %215 : vector<16x32xf32>
      %c0_75 = arith.constant 0 : index
      %c0_76 = arith.constant 0 : index
      %217 = vector.load %arg6[%c0_75, %c0_76] : memref<1x32xf32, #tpu.memory_space<vmem>>, vector<1x32xf32>
      %c0_77 = arith.constant 0 : index
      %c0_78 = arith.constant 0 : index
      %218 = vector.load %arg7[%c0_77, %c0_78] : memref<1x32xf32, #tpu.memory_space<vmem>>, vector<1x32xf32>
      %cst_79 = arith.constant dense<0.000000e+00> : vector<16xf32>
      %219 = vector.multi_reduction <add>, %216, %cst_79 [1] : vector<16x32xf32> to vector<16xf32>
      %220 = vector.shape_cast %219 : vector<16xf32> to vector<16x1xf32>
      %cst_80 = arith.constant 3.200000e+01 : f32
      %221 = vector.broadcast %cst_80 : f32 to vector<16x1xf32>
      %222 = arith.divf %220, %221 : vector<16x1xf32>
      %223 = vector.broadcast %222 : vector<16x1xf32> to vector<16x32xf32>
      %224 = arith.subf %216, %223 : vector<16x32xf32>
      %225 = arith.mulf %224, %224 : vector<16x32xf32>
      %cst_81 = arith.constant dense<0.000000e+00> : vector<16xf32>
      %226 = vector.multi_reduction <add>, %225, %cst_81 [1] : vector<16x32xf32> to vector<16xf32>
      %227 = vector.shape_cast %226 : vector<16xf32> to vector<16x1xf32>
      %cst_82 = arith.constant 3.200000e+01 : f32
      %228 = vector.broadcast %cst_82 : f32 to vector<16x1xf32>
      %229 = arith.divf %227, %228 : vector<16x1xf32>
      %cst_83 = arith.constant 9.99999974E-6 : f32
      %230 = vector.broadcast %cst_83 : f32 to vector<16x1xf32>
      %231 = arith.addf %229, %230 : vector<16x1xf32>
      %232 = math.rsqrt %231 : vector<16x1xf32>
      %233 = vector.broadcast %232 : vector<16x1xf32> to vector<16x32xf32>
      %234 = arith.mulf %224, %233 : vector<16x32xf32>
      %235 = vector.broadcast %217 : vector<1x32xf32> to vector<16x32xf32>
      %236 = arith.mulf %234, %235 : vector<16x32xf32>
      %237 = vector.broadcast %218 : vector<1x32xf32> to vector<16x32xf32>
      %238 = arith.addf %236, %237 : vector<16x32xf32>
      %239 = arith.truncf %238 : vector<16x32xf32> to vector<16x32xbf16>
      %c0_84 = arith.constant 0 : index
      %c0_85 = arith.constant 0 : index
      %240 = vector.load %arg11[%c0_84, %c0_85] : memref<1x32xf32, #tpu.memory_space<vmem>>, vector<1x32xf32>
      %241 = vector.broadcast %240 : vector<1x32xf32> to vector<16x32xf32>
      %242 = arith.addf %216, %241 : vector<16x32xf32>
      %c0_86 = arith.constant 0 : index
      %c0_87 = arith.constant 0 : index
      %243 = vector.load %arg13[%c0_86, %c0_87] : memref<16x32xf32, #tpu.memory_space<vmem>>, vector<16x32xf32>
      tpu.vector_store %arg13[%c0_86, %c0_87], %242 {strides = array<i32>} : memref<16x32xf32, #tpu.memory_space<vmem>>, vector<16x32xf32>,
      %c0_88 = arith.constant 0 : index
      %c0_89 = arith.constant 0 : index
      %244 = vector.load %arg8[%c0_88, %c0_89] : memref<32x128xbf16, #tpu.memory_space<vmem>>, vector<32x128xbf16>
      %cst_90 = arith.constant dense<0.000000e+00> : vector<16x128xf32>
      %245 = tpu.matmul %239, %244, %cst_90 {dimension_numbers = #tpu.dot_dimension_numbers<[1], [0], [0], [1], [0, 0, 1, 1], [], []>} : vector<16x32xbf16>, vector<32x128xbf16>, vector<16x128xf32> -> vector<16x128xf32>
      %c0_91 = arith.constant 0 : index
      %c0_92 = arith.constant 0 : index
      %246 = vector.load %arg9[%c0_91, %c0_92] : memref<1x128xf32, #tpu.memory_space<vmem>>, vector<1x128xf32>
      %247 = vector.broadcast %246 : vector<1x128xf32> to vector<16x128xf32>
      %248 = arith.addf %245, %247 : vector<16x128xf32>
      %cst_93 = arith.constant 5.000000e-01 : f32
      %249 = vector.broadcast %cst_93 : f32 to vector<16x128xf32>
      %250 = arith.mulf %249, %248 : vector<16x128xf32>
      %cst_94 = arith.constant 0.707106769 : f32
      %251 = vector.broadcast %cst_94 : f32 to vector<16x128xf32>
      %252 = arith.mulf %248, %251 : vector<16x128xf32>
      %253 = math.absf %252 : vector<16x128xf32>
      %cst_95 = arith.constant 0.327591091 : f32
      %254 = vector.broadcast %cst_95 : f32 to vector<16x128xf32>
      %255 = arith.mulf %254, %253 : vector<16x128xf32>
      %cst_96 = arith.constant 1.000000e+00 : f32
      %256 = vector.broadcast %cst_96 : f32 to vector<16x128xf32>
      %257 = arith.addf %256, %255 : vector<16x128xf32>
      %258 = tpu.reciprocal %257 {approx = true} : vector<16x128xf32> -> vector<16x128xf32>
      %259 = arith.mulf %257, %258 : vector<16x128xf32>
      %cst_97 = arith.constant 2.000000e+00 : f32
      %260 = vector.broadcast %cst_97 : f32 to vector<16x128xf32>
      %261 = arith.subf %260, %259 : vector<16x128xf32>
      %262 = arith.mulf %258, %261 : vector<16x128xf32>
      %cst_98 = arith.constant 1.06140542 : f32
      %263 = vector.broadcast %cst_98 : f32 to vector<16x128xf32>
      %264 = arith.mulf %263, %262 : vector<16x128xf32>
      %cst_99 = arith.constant -1.45315206 : f32
      %265 = vector.broadcast %cst_99 : f32 to vector<16x128xf32>
      %266 = arith.addf %264, %265 : vector<16x128xf32>
      %267 = arith.mulf %266, %262 : vector<16x128xf32>
      %cst_100 = arith.constant 1.42141378 : f32
      %268 = vector.broadcast %cst_100 : f32 to vector<16x128xf32>
      %269 = arith.addf %267, %268 : vector<16x128xf32>
      %270 = arith.mulf %269, %262 : vector<16x128xf32>
      %cst_101 = arith.constant -0.284496725 : f32
      %271 = vector.broadcast %cst_101 : f32 to vector<16x128xf32>
      %272 = arith.addf %270, %271 : vector<16x128xf32>
      %273 = arith.mulf %272, %262 : vector<16x128xf32>
      %cst_102 = arith.constant 0.254829586 : f32
      %274 = vector.broadcast %cst_102 : f32 to vector<16x128xf32>
      %275 = arith.addf %273, %274 : vector<16x128xf32>
      %276 = arith.mulf %275, %262 : vector<16x128xf32>
      %cst_103 = arith.constant 0.000000e+00 : f32
      %277 = vector.broadcast %cst_103 : f32 to vector<16x128xf32>
      %278 = arith.subf %277, %253 : vector<16x128xf32>
      %279 = arith.mulf %278, %253 : vector<16x128xf32>
      %280 = math.exp %279 : vector<16x128xf32>
      %281 = arith.mulf %276, %280 : vector<16x128xf32>
      %cst_104 = arith.constant 1.000000e+00 : f32
      %282 = vector.broadcast %cst_104 : f32 to vector<16x128xf32>
      %283 = arith.subf %282, %281 : vector<16x128xf32>
      %cst_105 = arith.constant 0.000000e+00 : f32
      %284 = vector.broadcast %cst_105 : f32 to vector<16x128xf32>
      %285 = arith.cmpf oge, %252, %284 : vector<16x128xf32>
      %cst_106 = arith.constant 0.000000e+00 : f32
      %286 = vector.broadcast %cst_106 : f32 to vector<16x128xf32>
      %287 = arith.subf %286, %283 : vector<16x128xf32>
      %288 = arith.select %285, %283, %287 : vector<16x128xi1>, vector<16x128xf32>
      %cst_107 = arith.constant 1.000000e+00 : f32
      %289 = vector.broadcast %cst_107 : f32 to vector<16x128xf32>
      %290 = arith.addf %289, %288 : vector<16x128xf32>
      %291 = arith.mulf %250, %290 : vector<16x128xf32>
      %c0_108 = arith.constant 0 : index
      %c0_109 = arith.constant 0 : index
      %292 = vector.load %arg13[%c0_108, %c0_109] : memref<16x32xf32, #tpu.memory_space<vmem>>, vector<16x32xf32>
      %293 = arith.truncf %291 : vector<16x128xf32> to vector<16x128xbf16>
      %c0_110 = arith.constant 0 : index
      %c0_111 = arith.constant 0 : index
      %294 = vector.load %arg10[%c0_110, %c0_111] : memref<128x32xbf16, #tpu.memory_space<vmem>>, vector<128x32xbf16>
      %cst_112 = arith.constant dense<0.000000e+00> : vector<16x32xf32>
      %295 = tpu.matmul %293, %294, %cst_112 {dimension_numbers = #tpu.dot_dimension_numbers<[1], [0], [0], [1], [0, 0, 1, 1], [], []>} : vector<16x128xbf16>, vector<128x32xbf16>, vector<16x32xf32> -> vector<16x32xf32>
      %296 = arith.addf %292, %295 : vector<16x32xf32>
      %c0_113 = arith.constant 0 : index
      %c0_114 = arith.constant 0 : index
      %297 = vector.load %arg13[%c0_113, %c0_114] : memref<16x32xf32, #tpu.memory_space<vmem>>, vector<16x32xf32>
      tpu.vector_store %arg13[%c0_113, %c0_114], %296 {strides = array<i32>} : memref<16x32xf32, #tpu.memory_space<vmem>>, vector<16x32xf32>,
    }
    %c0_3 = arith.constant 0 : index
    %c0_4 = arith.constant 0 : index
    %3 = vector.load %arg13[%c0_3, %c0_4] : memref<16x32xf32, #tpu.memory_space<vmem>>, vector<16x32xf32>
    %c0_5 = arith.constant 0 : index
    %c0_6 = arith.constant 0 : index
    %4 = vector.load %arg12[%c0_5, %c0_6] : memref<16x32xf32, #tpu.memory_space<vmem>>, vector<16x32xf32>
    tpu.vector_store %arg12[%c0_5, %c0_6], %3 {strides = array<i32>} : memref<16x32xf32, #tpu.memory_space<vmem>>, vector<16x32xf32>,
    return
  }
  func.func @transform_0(%arg0: i32) -> (i32, i32) {
    %c0_i32 = arith.constant 0 : i32
    %c0_i32_0 = arith.constant 0 : i32
    return %arg0, %c0_i32 : i32, i32
  }
  func.func @transform_1(%arg0: i32) -> (i32, i32) {
    %c0_i32 = arith.constant 0 : i32
    %c0_i32_0 = arith.constant 0 : i32
    %c0_i32_1 = arith.constant 0 : i32
    return %c0_i32, %c0_i32_0 : i32, i32
  }
  func.func @transform_2(%arg0: i32) -> (i32, i32) {
    %c0_i32 = arith.constant 0 : i32
    %c0_i32_0 = arith.constant 0 : i32
    %c0_i32_1 = arith.constant 0 : i32
    return %c0_i32, %c0_i32_0 : i32, i32
  }
  func.func @transform_3(%arg0: i32) -> (i32, i32) {
    %c0_i32 = arith.constant 0 : i32
    %c0_i32_0 = arith.constant 0 : i32
    %c0_i32_1 = arith.constant 0 : i32
    return %c0_i32, %c0_i32_0 : i32, i32
  }
  func.func @transform_4(%arg0: i32) -> (i32, i32) {
    %c0_i32 = arith.constant 0 : i32
    %c0_i32_0 = arith.constant 0 : i32
    %c0_i32_1 = arith.constant 0 : i32
    return %c0_i32, %c0_i32_0 : i32, i32
  }
  func.func @transform_5(%arg0: i32) -> (i32, i32) {
    %c0_i32 = arith.constant 0 : i32
    %c0_i32_0 = arith.constant 0 : i32
    %c0_i32_1 = arith.constant 0 : i32
    return %c0_i32, %c0_i32_0 : i32, i32
  }
  func.func @transform_6(%arg0: i32) -> (i32, i32) {
    %c0_i32 = arith.constant 0 : i32
    %c0_i32_0 = arith.constant 0 : i32
    %c0_i32_1 = arith.constant 0 : i32
    return %c0_i32, %c0_i32_0 : i32, i32
  }
  func.func @transform_7(%arg0: i32) -> (i32, i32) {
    %c0_i32 = arith.constant 0 : i32
    %c0_i32_0 = arith.constant 0 : i32
    %c0_i32_1 = arith.constant 0 : i32
    return %c0_i32, %c0_i32_0 : i32, i32
  }
  func.func @transform_8(%arg0: i32) -> (i32, i32) {
    %c0_i32 = arith.constant 0 : i32
    %c0_i32_0 = arith.constant 0 : i32
    %c0_i32_1 = arith.constant 0 : i32
    return %c0_i32, %c0_i32_0 : i32, i32
  }
  func.func @transform_9(%arg0: i32) -> (i32, i32) {
    %c0_i32 = arith.constant 0 : i32
    %c0_i32_0 = arith.constant 0 : i32
    %c0_i32_1 = arith.constant 0 : i32
    return %c0_i32, %c0_i32_0 : i32, i32
  }
  func.func @transform_10(%arg0: i32) -> (i32, i32) {
    %c0_i32 = arith.constant 0 : i32
    %c0_i32_0 = arith.constant 0 : i32
    %c0_i32_1 = arith.constant 0 : i32
    return %c0_i32, %c0_i32_0 : i32, i32
  }
  func.func @transform_11(%arg0: i32) -> (i32, i32) {
    %c0_i32 = arith.constant 0 : i32
    %c0_i32_0 = arith.constant 0 : i32
    return %arg0, %c0_i32 : i32, i32
  }
}

</mosaic_0001>

<bundles_post_ra>
// kernel: tpu_custom_call.1
= control target key start
LH: loop header
LB: loop body
LE: loop exit
PB: predicated region body
PF: predicated region fallthrough
CT: control target
= control target key end

     0   :  { %16 = vsyncpa [#allocation5], 0  ;;  %vm42_vm0 = vcmask 261120   ;;  %s1857_s21 = smov 0   ;;  %s2160_s0 = inlined_call_operand.vmem [shape: f32[16,32], index: 0, kind: input, shape index: {}]   ;;  %s2161_s1 = inlined_call_operand.vmem [shape: f32[1,32], index: 1, kind: input, shape index: {}]   ;;  %s2162_s2 = inlined_call_operand.vmem [shape: f32[1,32], index: 2, kind: input, shape index: {}]   ;;  %s2163_s3 = inlined_call_operand.vmem [shape: bf16[32,96], index: 3, kind: input, shape index: {}]   ;;  %s2164_s4 = inlined_call_operand.vmem [shape: f32[1,96], index: 4, kind: input, shape index: {}]   ;;  %s2165_s5 = inlined_call_operand.vmem [shape: f32[1,32], index: 5, kind: input, shape index: {}]   ;;  %s2166_s6 = inlined_call_operand.vmem [shape: f32[1,32], index: 6, kind: input, shape index: {}]   ;;  %s2167_s7 = inlined_call_operand.vmem [shape: bf16[32,128], index: 7, kind: input, shape index: {}]   ;;  %s2168_s8 = inlined_call_operand.vmem [shape: f32[1,128], index: 8, kind: input, shape index: {}]   ;;  %s2169_s9 = inlined_call_operand.vmem [shape: bf16[128,32], index: 9, kind: input, shape index: {}]   ;;  %s2170_s10 = inlined_call_operand.vmem [shape: f32[1,32], index: 10, kind: input, shape index: {}]   ;;  %s2171_s11 = inlined_call_operand.hbm [shape: f32[16,32], index: 11, kind: output, shape index: {}]  }
   0x1   :  { %v40_v0 = vld [vmem:[%s2160_s0] sm:$0xff]  ;;  %v41_v1 = vld [vmem:[%s2160_s0 + $0x8] sm:$0xff] }
   0x2   :  { %43 = vst.msk [vmem:[#allocation2] sm:$0xff] %vm42_vm0, %v40_v0  ;;  %44 = vst.msk [vmem:[#allocation2 + $0x8] sm:$0xff] %vm42_vm0, %v41_v1 }
   0x3 LB: > { %v1678_v16 = vld [vmem:[%s2163_s3] sm:$0xff]   ;;  %v1770_v17 = vmov 0.0   ;;  %vm1771_vm1 = vmmov 0   ;;  %v1679_v18 = vld [vmem:[%s2163_s3 + $0x8] sm:$0xff]   ;;  %s1772_s12 = smov 96   ;;  %s1773_s13 = smov 88   ;;  %s1768_s21 = sphi %s1857_s21, %s50_s21  }
   0x4   : > { %1519 = vmatprep.subr.bf16.mxu1 %v1770_v17  ;;  %1523 = vmatprep.mubr.msk.bf16.mxu1 %vm1771_vm1, %v1770_v17  ;;  %v1435_v27 = vld [vmem:[%s2161_s1] ss:$0 sm:$0xff]  ;;  %s1774_s14 = smov 80   ;;  %s1775_s15 = smov 72   ;;  %vm170_vm2 = vcmask 64512   ;;  %vm238_vm3 = vcmask 1043456  }
   0x5   : > { %1520 = vmatpush3.bf16.msra.mxu1 %v1678_v16  ;;  %1545 = vmatprep.subr.bf16.mxu0 %v1770_v17  ;;  %v1436_v31 = vld [vmem:[%s2162_s2] ss:$0 sm:$0xff]  ;;  %s1776_s16 = smov 120   ;;  %s1777_s17 = smov 112   ;;  %vm637_vm4 = vcmask 130048   ;;  %vm639_vm5 = vcmask 195584  }
   0x6   : > { %1521 = vmatprep.subr.bf16.mxu1 %v1770_v17  ;;  %1547 = vmatprep.mubr.msk.bf16.mxu0 %vm1771_vm1, %v1770_v17  ;;  %v1437_v36 = vld [vmem:[%s2164_s4] ss:$0 sm:$0xff]  ;;  %s1778_s18 = smov 104   ;;  %s1779_s19 = smov 64  }
   0x7   : > { %s1780_s20 = smov 56   ;;  %s1781_s0 = smov 48  }
   0x8   : > { %s1782_s22 = smov 40   ;;  %s1783_s23 = smov 8  }
   0x9   : > { %v1862_v2 = vld [vmem:[#allocation2] sm:$0xff]  ;;  %v1864_v3 = vld [vmem:[#allocation2 + $0x8] sm:$0xff]  ;;  %1522 = vmatpush3.bf16.msra.mxu1 %v1679_v18  ;;  %s1784_s24 = smov 16   ;;  %s1785_s25 = smov 24  }
   0xa   : > { %v55_v4 = vsel %vm42_vm0, %v1862_v2, 0.0  ;;  %v58_v5 = vsel %vm42_vm0, %v1864_v3, 0.0  ;;  %1527 = vmatprep.subr.bf16.mxu1 %v1770_v17  ;;  %s50_s21 = sadd.s32 1, %s1768_s21  }
   0xb   : > { %56 = vadd.xlane.f32.xlu0 %v55_v4  ;;  %p47_p0 = scmp.ge.s32.totalorder %s50_s21, 2  }
   0xf   : > { %59 = vadd.xlane.f32.xlu0 %v58_v5 }
  0x98   : > { %v57_v6 = vpop.xlane.xlu0 %56 }
  0x99   : > { %v62_v7 = vmul.f32 0.03125, %v57_v6 }
  0x9b   : > { %v64_v8 = vsub.f32 %v1862_v2, %v62_v7 }
  0x9c   : > { %v60_v9 = vpop.xlane.xlu0 %59 }
  0x9d   : > { %v63_v10 = vmul.f32 0.03125, %v60_v9  ;;  %v66_v11 = vmul.f32 %v64_v8, %v64_v8 }
  0x9f   : > { %v65_v12 = vsub.f32 %v1864_v3, %v63_v10  ;;  %v68_v13 = vsel %vm42_vm0, %v66_v11, 0.0 }
  0xa0   : > { %69 = vadd.xlane.f32.xlu1 %v68_v13 }
  0xa1   : > { %v67_v14 = vmul.f32 %v65_v12, %v65_v12 }
  0xa3   : > { %v71_v15 = vsel %vm42_vm0, %v67_v14, 0.0 }
  0xa4   : > { %72 = vadd.xlane.f32.xlu1 %v71_v15 }
 0x12d   : > { %v70_v19 = vpop.xlane.xlu1 %69 }
 0x12e   : > { %v74_v20 = vmul.f32 0.03125, %v70_v19 }
 0x130   : > { %v76_v21 = vadd.f32 1e-05, %v74_v20 }
 0x131   : > { %v73_v22 = vpop.xlane.xlu1 %72 }
 0x132   : > { %1690 = vrsqrt.f32 %v76_v21  ;;  %v75_v23 = vmul.f32 0.03125, %v73_v22 }
 0x134   : > { %v77_v24 = vadd.f32 1e-05, %v75_v23 }
 0x136   : > { %1692 = vrsqrt.f32 %v77_v24 }
 0x13c   : > { %v1691_v25 = vpop.eup %1690 }
 0x13d   : > { %v80_v26 = vmul.f32 %v1691_v25, %v64_v8 }
 0x13f   : > { %v88_v30 = vmul.f32 %v1435_v27, %v80_v26 }
 0x140   : > { %v1693_v28 = vpop.eup %1692 }
 0x141   : > { %v81_v29 = vmul.f32 %v1693_v28, %v65_v12  ;;  %v96_v33 = vadd.f32 %v1436_v31, %v88_v30 }
 0x143   : > { %v89_v32 = vmul.f32 %v1435_v27, %v81_v29 }
 0x145   : > { %v97_v34 = vadd.f32 %v1436_v31, %v89_v32 }
 0x147   : > { %v98_v35 = vpack.c.bf16 %v97_v34, %v96_v33 }
 0x149   : > { %1524 = vmatmul.mubr.msk.bf16.vlgmr.msra.gmra.mrb[0].mxu1 %vm42_vm0, %v98_v35 }
 0x14a   : > { %1529 = vmatprep.mubr.msk.bf16.mxu1 %vm1771_vm1, %v1770_v17 }
 0x21c   : > { %v159_v37 = vpop.f32.mrb[0].mxu1 }
 0x21d   : > { %v1525_v38 = vpop.f32.mrb[1].mxu1  ;;  %v160_v40 = vadd.f32 %v1437_v36, %v159_v37 }
 0x21e   : > { %v162_v39 = vpop.f32.mrb[2].mxu1 }
 0x21f   : > { %v163_v41 = vadd.f32 %v1437_v36, %v162_v39  ;;  %v1526_v42 = vpop.f32.mrb[3].mxu1 }
 0x221   : > { %v1900_v43 = vpack.c.bf16 %v163_v41, %v160_v40 }
 0x223   : > { %168 = vrot.lane.b32.xlu0 %v1900_v43, %s1772_s12  ;;  %v1910_v44 = vrot.slane %v1900_v43, 4 }
 0x227   : > { %284 = vrot.lane.b32.xlu0 %v1900_v43, %s1773_s13 }
 0x22b   : > { %398 = vrot.lane.b32.xlu0 %v1900_v43, %s1774_s14 }
 0x22f   : > { %512 = vrot.lane.b32.xlu0 %v1900_v43, %s1775_s15 }
 0x233   : > { %643 = vrot.lane.b32.xlu0 %v1910_v44, %s1772_s12 }
 0x237   : > { %755 = vrot.lane.b32.xlu0 %v1910_v44, %s1776_s16 }
 0x23b   : > { %869 = vrot.lane.b32.xlu0 %v1910_v44, %s1777_s17 }
 0x23f   : > { %983 = vrot.lane.b32.xlu0 %v1910_v44, %s1778_s18 }
 0x295   : > { %v169_v45 = vpop.permute.xlu0 %168 }
 0x296   : > { %v175_v46 = vsel %vm170_vm2, %v169_v45, 0 }
 0x297   : > { %1528 = vmatpush3.bf16.xpose.msra.mxu1 %v175_v46 }
 0x298   : > { %1533 = vmatprep.subr.bf16.mxu1 %v1770_v17 }
 0x299   : > { %v285_v4 = vpop.permute.xlu0 %284 }
 0x29a   : > { %v290_v6 = vsel %vm170_vm2, %v285_v4, 0 }
 0x29d   : > { %v399_v7 = vpop.permute.xlu0 %398 }
 0x29e   : > { %1530 = vmatmul.mubr.msk.bf16.vlgmr.msra.gmra.mrb[4].mxu1 %vm170_vm2, %v1900_v43  ;;  %v404_v9 = vsel %vm170_vm2, %v399_v7, 0 }
 0x29f   : > { %1535 = vmatprep.mubr.msk.bf16.mxu1 %vm1771_vm1, %v1770_v17 }
 0x2a1   : > { %v513_v10 = vpop.permute.xlu0 %512 }
 0x2a2   : > { %v518_v12 = vsel %vm170_vm2, %v513_v10, 0 }
 0x2a5   : > { %v644_v13 = vpop.permute.xlu0 %643 }
 0x2a6   : > { %v649_v15 = vsel %vm170_vm2, %v644_v13, 0 }
 0x2a9   : > { %v756_v20 = vpop.permute.xlu0 %755 }
 0x2ad   : > { %v870_v23 = vpop.permute.xlu0 %869 }
 0x2b1   : > { %v984_v25 = vpop.permute.xlu0 %983 }
 0x371   : > { %v211_v47 = vpop.f32.mrb[4].mxu1 }
 0x372   : > { %v217_v48 = vmul.f32 0.35355338, %v211_v47  ;;  %v1531_v49 = vpop.f32.mrb[5].mxu1 }
 0x373   : > { %v214_v50 = vpop.f32.mrb[6].mxu1 }
 0x374   : > { %v1532_v51 = vpop.f32.mrb[7].mxu1  ;;  %v218_v52 = vsel %vm170_vm2, %v217_v48, -inf }
 0x375   : > { %219 = vmax.xlane.f32.xlu1 %v218_v52 }
 0x402   : > { %v220_v53 = vpop.xlane.xlu1 %219 }
 0x403   : > { %v221_v54 = vsub.f32 %v217_v48, %v220_v53 }
 0x405   : > { %v222_v55 = vmul.f32 1.442695, %v221_v54 }
 0x407   : > { %1694 = vpow2.f32 %v222_v55 }
 0x411   : > { %v1695_v56 = vpop.eup %1694 }
 0x412   : > { %v224_v57 = vsel %vm170_vm2, %v1695_v56, 0.0 }
 0x413   : > { %225 = vadd.xlane.f32.xlu1 %v224_v57 }
 0x424   : > { %233 = vrot.lane.b32.xlu1 %v1900_v43, %s1779_s19 }
 0x428   : > { %282 = vrot.lane.b32.xlu1 %v1900_v43, %s1776_s16  ;;  %s1786_s16 = smov (%p47_p0), [#allocation4]  }
 0x42c   : > { %396 = vrot.lane.b32.xlu1 %v1900_v43, %s1777_s17  ;;  %s1419_s17 = sshll.u32 (%p47_p0), %s1786_s16, 4  ;;  %s1420_s17 = int_to_ptr.vmem [resolvable:$true] %s1419_s17 }
 0x42d   :  { %p1743_p2 = scmp.lt.s32.totalorder (%p47_p0), %s1420_s17, %s1420_s17 }
 0x430   : > { %510 = vrot.lane.b32.xlu1 %v1900_v43, %s1778_s18  ;;  %s1738_s18 = scalar_lea.vmem (%p47_p0), %s1420_s17, 256 }
 0x431   :  { %p1739_p1 = scmp.ne.s32.totalorder (%p47_p0), %s1420_s17, %s1738_s18  ;;  %p1744_p3 = scmp.lt.s32.totalorder (%p47_p0), %s1738_s18, %s1738_s18 }
 0x433   :  { %p1745_p4 = por (%p47_p0), %p1744_p3, %p1743_p2 }
 0x434   : > { %757 = vrot.lane.b32.xlu1 %v1910_v44, %s1773_s13 }
 0x435   :  { %p1746_p5 = pnand (%p47_p0), %p1745_p4, %p1739_p1 }
 0x438   : > { %871 = vrot.lane.b32.xlu1 %v1910_v44, %s1774_s14 }
 0x43c   : > { %985 = vrot.lane.b32.xlu1 %v1910_v44, %s1775_s15 }
 0x4a0   : > { %v226_v58 = vpop.xlane.xlu1 %225 }
 0x4a1   : > { %1696 = vrcp.f32 %v226_v58 }
 0x4a4   : > { %v234_v59 = vpop.permute.xlu1 %233 }
 0x4a5   : > { %v240_v60 = vsel %vm238_vm3, %v234_v59, 0 }
 0x4a6   : > { %1534 = vmatpush3.bf16.msra.mxu1 %v240_v60 }
 0x4a7   : > { %1539 = vmatprep.subr.bf16.mxu1 %v1770_v17 }
 0x4a8   : > { %v283_v8 = vpop.permute.xlu1 %282 }
 0x4ab   : > { %v1697_v61 = vpop.eup %1696 }
 0x4ac   : > { %v228_v62 = vmul.f32 %v1697_v61, %v226_v58  ;;  %v397_v11 = vpop.permute.xlu1 %396 }
 0x4ae   : > { %v229_v63 = vsub.f32 2.0, %v228_v62 }
 0x4b0   : > { %v230_v0 = vmul.f32 %v1697_v61, %v229_v63  ;;  %v511_v14 = vpop.permute.xlu1 %510 }
 0x4b2   : > { %v231_v1 = vmul.f32 %v1695_v56, %v230_v0 }
 0x4b4   : > { %v232_v5 = vpack.c.bf16 %v231_v1, %v231_v1  ;;  %v758_v16 = vpop.permute.xlu1 %757 }
 0x4b5   : > { %v763_v18 = vsel %vm170_vm2, %v758_v16, 0 }
 0x4b6   : > { %1536 = vmatmul.mubr.msk.bf16.vlgmr.msra.gmra.mrb[8].mxu1 %vm170_vm2, %v232_v5 }
 0x4b7   : > { %1540 = vmatpush3.bf16.xpose.msra.mxu1 %v290_v6  ;;  %1541 = vmatprep.mubr.msk.bf16.mxu1 %vm1771_vm1, %v1770_v17 }
 0x4b8   : > { %1551 = vmatprep.subr.bf16.mxu1 %v1770_v17  ;;  %v872_v19 = vpop.permute.xlu1 %871 }
 0x4b9   : > { %v877_v21 = vsel %vm170_vm2, %v872_v19, 0 }
 0x4bc   : > { %v986_v22 = vpop.permute.xlu1 %985 }
 0x4bd   : > { %v991_v24 = vsel %vm170_vm2, %v986_v22, 0 }
 0x4be   : > { %1542 = vmatmul.mubr.msk.bf16.vlgmr.msra.gmra.mrb[12].mxu1 %vm170_vm2, %v283_v8 }
 0x4bf   : > { %1552 = vmatpush3.bf16.xpose.msra.mxu1 %v404_v9  ;;  %1553 = vmatprep.mubr.msk.bf16.mxu1 %vm1771_vm1, %v1770_v17 }
 0x4c0   : > { %1563 = vmatprep.subr.bf16.mxu1 %v1770_v17 }
 0x4c6   : > { %1554 = vmatmul.mubr.msk.bf16.vlgmr.msra.gmra.mrb[16].mxu1 %vm170_vm2, %v397_v11 }
 0x4c7   : > { %1564 = vmatpush3.bf16.xpose.msra.mxu1 %v518_v12  ;;  %1565 = vmatprep.mubr.msk.bf16.mxu1 %vm1771_vm1, %v1770_v17 }
 0x4c8   : > { %1575 = vmatprep.subr.bf16.mxu1 %v1770_v17 }
 0x4ce   : > { %1566 = vmatmul.mubr.msk.bf16.vlgmr.msra.gmra.mrb[20].mxu1 %vm170_vm2, %v511_v14 }
 0x4cf   : > { %1576 = vmatpush3.bf16.xpose.msra.mxu1 %v649_v15  ;;  %1577 = vmatprep.mubr.msk.bf16.mxu1 %vm1771_vm1, %v1770_v17 }
 0x4d0   : > { %1587 = vmatprep.subr.bf16.mxu1 %v1770_v17 }
 0x4d6   : > { %1578 = vmatmul.mubr.msk.bf16.vlgmr.msra.gmra.mrb[24].mxu1 %vm170_vm2, %v1910_v44 }
 0x4d7   : > { %1588 = vmatpush3.bf16.xpose.msra.mxu1 %v763_v18  ;;  %1589 = vmatprep.mubr.msk.bf16.mxu1 %vm1771_vm1, %v1770_v17 }
 0x4d8   : > { %1599 = vmatprep.subr.bf16.mxu1 %v1770_v17 }
 0x4de   : > { %1590 = vmatmul.mubr.msk.bf16.vlgmr.msra.gmra.mrb[28].mxu1 %vm170_vm2, %v756_v20 }
 0x4df   : > { %1600 = vmatpush3.bf16.xpose.msra.mxu1 %v877_v21  ;;  %1601 = vmatprep.mubr.msk.bf16.mxu1 %vm1771_vm1, %v1770_v17 }
 0x4e0   : > { %1611 = vmatprep.subr.bf16.mxu1 %v1770_v17 }
 0x4e6   : > { %1602 = vmatmul.mubr.msk.bf16.vlgmr.msra.gmra.mrb[32].mxu1 %vm170_vm2, %v870_v23 }
 0x4e7   : > { %1612 = vmatpush3.bf16.xpose.msra.mxu1 %v991_v24  ;;  %1613 = vmatprep.mubr.msk.bf16.mxu1 %vm1771_vm1, %v1770_v17 }
 0x4e8   : > { %1623 = vmatprep.subr.bf16.mxu1 %v1770_v17 }
 0x4ee   : > { %1614 = vmatmul.mubr.msk.bf16.vlgmr.msra.gmra.mrb[36].mxu1 %vm170_vm2, %v984_v25 }
 0x4ef   : > { %1627 = vmatprep.mubr.msk.bf16.mxu1 %vm1771_vm1, %v1770_v17 }
 0x589   : > { %v1976_v26 = vpop.f32.mrb[8].mxu1 }
 0x58a   : > { %v1537_v27 = vpop.f32.mrb[9].mxu1 }
 0x58b   : > { %v279_v28 = vpop.f32.mrb[10].mxu1 }
 0x58c   : > { %v1538_v29 = vpop.f32.mrb[11].mxu1 }
 0x591   : > { %v326_v30 = vpop.f32.mrb[12].mxu1 }
 0x592   : > { %v332_v31 = vmul.f32 0.35355338, %v326_v30  ;;  %v1543_v32 = vpop.f32.mrb[13].mxu1 }
 0x593   : > { %v329_v33 = vpop.f32.mrb[14].mxu1 }
 0x594   : > { %v1544_v34 = vpop.f32.mrb[15].mxu1  ;;  %v333_v35 = vsel %vm170_vm2, %v332_v31, -inf }
 0x595   : > { %334 = vmax.xlane.f32.xlu1 %v333_v35 }
 0x599   : > { %v440_v36 = vpop.f32.mrb[16].mxu1 }
 0x59a   : > { %v446_v37 = vmul.f32 0.35355338, %v440_v36  ;;  %v1555_v38 = vpop.f32.mrb[17].mxu1 }
 0x59b   : > { %v443_v39 = vpop.f32.mrb[18].mxu1 }
 0x59c   : > { %v1556_v40 = vpop.f32.mrb[19].mxu1  ;;  %v447_v41 = vsel %vm170_vm2, %v446_v37, -inf }
 0x59d   : > { %448 = vmax.xlane.f32.xlu0 %v447_v41 }
 0x5a1   : > { %v554_v42 = vpop.f32.mrb[20].mxu1 }
 0x5a2   : > { %v560_v45 = vmul.f32 0.35355338, %v554_v42  ;;  %v1567_v46 = vpop.f32.mrb[21].mxu1 }
 0x5a3   : > { %v557_v47 = vpop.f32.mrb[22].mxu1 }
 0x5a4   : > { %v1568_v48 = vpop.f32.mrb[23].mxu1  ;;  %v561_v49 = vsel %vm170_vm2, %v560_v45, -inf }
 0x5a5   : > { %562 = vmax.xlane.f32.xlu0 %v561_v49 }
 0x5a9   : > { %v685_v50 = vpop.f32.mrb[24].mxu1 }
 0x5aa   : > { %v691_v51 = vmul.f32 0.35355338, %v685_v50  ;;  %v1579_v52 = vpop.f32.mrb[25].mxu1 }
 0x5ab   : > { %v688_v53 = vpop.f32.mrb[26].mxu1 }
 0x5ac   : > { %v1580_v54 = vpop.f32.mrb[27].mxu1  ;;  %v692_v55 = vsel %vm170_vm2, %v691_v51, -inf }
 0x5ad   : > { %693 = vmax.xlane.f32.xlu0 %v692_v55 }
 0x5b1   : > { %v799_v56 = vpop.f32.mrb[28].mxu1 }
 0x5b2   : > { %v805_v57 = vmul.f32 0.35355338, %v799_v56  ;;  %v1591_v58 = vpop.f32.mrb[29].mxu1 }
 0x5b3   : > { %v802_v59 = vpop.f32.mrb[30].mxu1 }
 0x5b4   : > { %v1592_v60 = vpop.f32.mrb[31].mxu1  ;;  %v806_v61 = vsel %vm170_vm2, %v805_v57, -inf }
 0x5b5   : > { %807 = vmax.xlane.f32.xlu1 %v806_v61 }
 0x5b9   : > { %v913_v62 = vpop.f32.mrb[32].mxu1 }
 0x5ba   : > { %v919_v63 = vmul.f32 0.35355338, %v913_v62  ;;  %v1603_v0 = vpop.f32.mrb[33].mxu1 }
 0x5bb   : > { %v916_v1 = vpop.f32.mrb[34].mxu1 }
 0x5bc   : > { %v1604_v4 = vpop.f32.mrb[35].mxu1  ;;  %v920_v5 = vsel %vm170_vm2, %v919_v63, -inf }
 0x5bd   : > { %921 = vmax.xlane.f32.xlu0 %v920_v5 }
 0x5c1   : > { %v1027_v6 = vpop.f32.mrb[36].mxu1 }
 0x5c2   : > { %v1033_v7 = vmul.f32 0.35355338, %v1027_v6  ;;  %v1615_v8 = vpop.f32.mrb[37].mxu1 }
 0x5c3   : > { %v1030_v9 = vpop.f32.mrb[38].mxu1 }
 0x5c4   : > { %v1616_v10 = vpop.f32.mrb[39].mxu1  ;;  %v1034_v11 = vsel %vm170_vm2, %v1033_v7, -inf }
 0x5c5   : > { %1035 = vmax.xlane.f32.xlu1 %v1034_v11 }
 0x5d3   : > { %348 = vrot.lane.b32.xlu0 %v1900_v43, %s1780_s20 }
 0x622   : > { %v335_v12 = vpop.xlane.xlu1 %334 }
 0x623   : > { %v336_v13 = vsub.f32 %v332_v31, %v335_v12 }
 0x625   : > { %v337_v14 = vmul.f32 1.442695, %v336_v13 }
 0x627   : > { %1698 = vpow2.f32 %v337_v14 }
 0x62a   : > { %v449_v15 = vpop.xlane.xlu0 %448 }
 0x62b   : > { %v450_v16 = vsub.f32 %v446_v37, %v449_v15 }
 0x62d   : > { %v451_v18 = vmul.f32 1.442695, %v450_v16 }
 0x62f   : > { %1700 = vpow2.f32 %v451_v18 }
 0x631   : > { %v1987_v19 = vpop.eup %1698 }
 0x632   : > { %v563_v20 = vpop.xlane.xlu0 %562  ;;  %v339_v21 = vsel %vm170_vm2, %v1987_v19, 0.0 }
 0x633   : > { %v564_v22 = vsub.f32 %v560_v45, %v563_v20  ;;  %340 = vadd.xlane.f32.xlu0 %v339_v21 }
 0x635   : > { %v565_v23 = vmul.f32 1.442695, %v564_v22 }
 0x637   : > { %1702 = vpow2.f32 %v565_v23 }
 0x639   : > { %v1991_v24 = vpop.eup %1700 }
 0x63a   : > { %v453_v25 = vsel %vm170_vm2, %v1991_v24, 0.0  ;;  %v694_v29 = vpop.xlane.xlu0 %693 }
 0x63b   : > { %454 = vadd.xlane.f32.xlu1 %v453_v25  ;;  %v695_v33 = vsub.f32 %v691_v51, %v694_v29 }
 0x63d   : > { %v696_v35 = vmul.f32 1.442695, %v695_v33 }
 0x63f   : > { %1704 = vpow2.f32 %v696_v35 }
 0x641   : > { %v1995_v27 = vpop.eup %1702 }
 0x642   : > { %v567_v28 = vsel %vm170_vm2, %v1995_v27, 0.0  ;;  %v808_v34 = vpop.xlane.xlu1 %807 }
 0x643   : > { %568 = vadd.xlane.f32.xlu0 %v567_v28  ;;  %v809_v36 = vsub.f32 %v805_v57, %v808_v34 }
 0x645   : > { %v810_v39 = vmul.f32 1.442695, %v809_v36 }
 0x647   : > { %1706 = vpow2.f32 %v810_v39 }
 0x649   : > { %v2005_v45 = vpop.eup %1704 }
 0x64a   : > { %v922_v30 = vpop.xlane.xlu0 %921  ;;  %v698_v46 = vsel %vm170_vm2, %v2005_v45, 0.0 }
 0x64b   : > { %v923_v38 = vsub.f32 %v919_v63, %v922_v30 }
 0x64c   : > { %462 = vrot.lane.b32.xlu1 %v1900_v43, %s1781_s0 }
 0x64d   : > { %v924_v41 = vmul.f32 1.442695, %v923_v38 }
 0x64e   : > { %v349_v31 = vpop.permute.xlu0 %348 }
 0x64f   : > { %v354_v32 = vsel %vm238_vm3, %v349_v31, 0  ;;  %1708 = vpow2.f32 %v924_v41 }
 0x650   : > { %1546 = vmatpush3.bf16.msra.mxu0 %v354_v32 }
 0x651   : > { %1557 = vmatprep.subr.bf16.mxu0 %v1770_v17 }
 0x652   : > { %v1036_v37 = vpop.xlane.xlu1 %1035 }
 0x653   : > { %v1037_v40 = vsub.f32 %v1033_v7, %v1036_v37 }
 0x655   : > { %v1038_v42 = vmul.f32 1.442695, %v1037_v40 }
 0x657   : > { %1710 = vpow2.f32 %v1038_v42 }
 0x659   : > { %576 = vrot.lane.b32.xlu0 %v1900_v43, %s1782_s22  ;;  %v2009_v43 = vpop.eup %1706 }
 0x65a   : > { %v2011_v47 = vpop.eup %1708  ;;  %v812_v48 = vsel %vm170_vm2, %v2009_v43, 0.0 }
 0x65b   : > { %v926_v50 = vsel %vm170_vm2, %v2011_v47, 0.0 }
 0x661   : > { %v2015_v49 = vpop.eup %1710 }
 0x662   : > { %v1040_v51 = vsel %vm170_vm2, %v2015_v49, 0.0 }
 0x670   : > { %699 = vadd.xlane.f32.xlu1 %v698_v46 }
 0x674   : > { %813 = vadd.xlane.f32.xlu1 %v812_v48 }
 0x678   : > { %927 = vadd.xlane.f32.xlu1 %v926_v50  ;;  %1041 = vadd.xlane.f32.xlu0 %v1040_v51 }
 0x689   : > { %821 = vrot.lane.b32.xlu1 %v1910_v44, %s1780_s20 }
 0x68d   : > { %935 = vrot.lane.b32.xlu1 %v1910_v44, %s1781_s0 }
 0x68e   : > { %707 = vrot.lane.b32.xlu0 %v1910_v44, %s1779_s19 }
 0x691   : > { %1049 = vrot.lane.b32.xlu1 %v1910_v44, %s1782_s22 }
 0x6c0   : > { %v341_v52 = vpop.xlane.xlu0 %340 }
 0x6c1   : > { %1712 = vrcp.f32 %v341_v52 }
 0x6c8   : > { %v455_v53 = vpop.xlane.xlu1 %454 }
 0x6c9   : > { %1714 = vrcp.f32 %v455_v53 }
 0x6cb   : > { %v1713_v54 = vpop.eup %1712 }
 0x6cc   : > { %v343_v55 = vmul.f32 %v1713_v54, %v341_v52  ;;  %v463_v61 = vpop.permute.xlu1 %462 }
 0x6cd   : > { %v468_v1 = vsel %vm238_vm3, %v463_v61, 0 }
 0x6ce   : > { %v344_v56 = vsub.f32 2.0, %v343_v55 }
 0x6d0   : > { %v345_v57 = vmul.f32 %v1713_v54, %v344_v56  ;;  %v569_v58 = vpop.xlane.xlu0 %568 }
 0x6d1   : > { %1716 = vrcp.f32 %v569_v58 }
 0x6d2   : > { %v346_v59 = vmul.f32 %v1987_v19, %v345_v57 }
 0x6d3   : > { %v1715_v60 = vpop.eup %1714 }
 0x6d4   : > { %v347_v62 = vpack.c.bf16 %v346_v59, %v346_v59  ;;  %v457_v63 = vmul.f32 %v1715_v60, %v455_v53  ;;  %v577_v6 = vpop.permute.xlu0 %576 }
 0x6d5   : > { %v582_v10 = vsel %vm238_vm3, %v577_v6, 0 }
 0x6d6   : > { %v458_v0 = vsub.f32 2.0, %v457_v63  ;;  %1548 = vmatmul.mubr.msk.bf16.vlgmr.msra.gmra.mrb[0].mxu0 %vm170_vm2, %v347_v62 }
 0x6d7   : > { %1558 = vmatpush3.bf16.msra.mxu0 %v468_v1  ;;  %1559 = vmatprep.mubr.msk.bf16.mxu0 %vm1771_vm1, %v1770_v17 }
 0x6d8   : > { %v459_v44 = vmul.f32 %v1715_v60, %v458_v0  ;;  %1569 = vmatprep.subr.bf16.mxu0 %v1770_v17 }
 0x6da   : > { %v460_v4 = vmul.f32 %v1991_v24, %v459_v44 }
 0x6db   : > { %v1717_v5 = vpop.eup %1716 }
 0x6dc   : > { %v461_v7 = vpack.c.bf16 %v460_v4, %v460_v4  ;;  %v571_v8 = vmul.f32 %v1717_v5, %v569_v58 }
 0x6de   : > { %v572_v9 = vsub.f32 2.0, %v571_v8  ;;  %1560 = vmatmul.mubr.msk.bf16.vlgmr.msra.gmra.mrb[4].mxu0 %vm170_vm2, %v461_v7 }
 0x6df   : > { %1570 = vmatpush3.bf16.msra.mxu0 %v582_v10  ;;  %1571 = vmatprep.mubr.msk.bf16.mxu0 %vm1771_vm1, %v1770_v17 }
 0x6e0   : > { %v573_v11 = vmul.f32 %v1717_v5, %v572_v9  ;;  %1581 = vmatprep.subr.bf16.mxu0 %v1770_v17 }
 0x6e2   : > { %v574_v12 = vmul.f32 %v1995_v27, %v573_v11 }
 0x6e4   : > { %v575_v13 = vpack.c.bf16 %v574_v12, %v574_v12 }
 0x6e6   : > { %1572 = vmatmul.mubr.msk.bf16.vlgmr.msra.gmra.mrb[8].mxu0 %vm170_vm2, %v575_v13 }
 0x6e7   : > { %1583 = vmatprep.mubr.msk.bf16.mxu0 %vm1771_vm1, %v1770_v17 }
 0x6fd   : > { %v700_v14 = vpop.xlane.xlu1 %699 }
 0x6fe   : > { %1718 = vrcp.f32 %v700_v14 }
 0x701   : > { %v814_v15 = vpop.xlane.xlu1 %813 }
 0x702   : > { %1720 = vrcp.f32 %v814_v15 }
 0x705   : > { %v1042_v16 = vpop.xlane.xlu0 %1041  ;;  %v928_v18 = vpop.xlane.xlu1 %927 }
 0x706   : > { %1722 = vrcp.f32 %v928_v18 }
 0x707   : > { %1724 = vrcp.f32 %v1042_v16 }
 0x708   : > { %v1719_v19 = vpop.eup %1718 }
 0x709   : > { %v702_v20 = vmul.f32 %v1719_v19, %v700_v14  ;;  %v708_v21 = vpop.permute.xlu0 %707  ;;  %v822_v30 = vpop.permute.xlu1 %821 }
 0x70a   : > { %v713_v22 = vsel %vm238_vm3, %v708_v21, 0  ;;  %v827_v35 = vsel %vm238_vm3, %v822_v30, 0 }
 0x70b   : > { %v703_v23 = vsub.f32 2.0, %v702_v20  ;;  %1582 = vmatpush3.bf16.msra.mxu0 %v713_v22 }
 0x70c   : > { %v1721_v24 = vpop.eup %1720  ;;  %1593 = vmatprep.subr.bf16.mxu0 %v1770_v17 }
 0x70d   : > { %v704_v25 = vmul.f32 %v1719_v19, %v703_v23  ;;  %v816_v27 = vmul.f32 %v1721_v24, %v814_v15  ;;  %v936_v39 = vpop.permute.xlu1 %935 }
 0x70f   : > { %v705_v28 = vmul.f32 %v2005_v45, %v704_v25  ;;  %v817_v29 = vsub.f32 2.0, %v816_v27  ;;  %v941_v45 = vsel %vm238_vm3, %v936_v39, 0  ;;  %v1459_v27 = vld [vmem:[%s2170_s10] ss:$0 sm:$0xff] }
 0x710   : > { %v1723_v31 = vpop.eup %1722 }
 0x711   : > { %v706_v32 = vpack.c.bf16 %v705_v28, %v705_v28  ;;  %v818_v33 = vmul.f32 %v1721_v24, %v817_v29  ;;  %v930_v34 = vmul.f32 %v1723_v31, %v928_v18  ;;  %v1725_v38 = vpop.eup %1724 }
 0x712   : > { %v1044_v41 = vmul.f32 %v1725_v38, %v1042_v16 }
 0x713   : > { %1584 = vmatmul.mubr.msk.bf16.vlgmr.msra.gmra.mrb[12].mxu0 %vm170_vm2, %v706_v32  ;;  %v819_v36 = vmul.f32 %v2009_v43, %v818_v33  ;;  %v931_v37 = vsub.f32 2.0, %v930_v34  ;;  %v1050_v43 = vpop.permute.xlu1 %1049 }
 0x714   : > { %1594 = vmatpush3.bf16.msra.mxu0 %v827_v35  ;;  %1595 = vmatprep.mubr.msk.bf16.mxu0 %vm1771_vm1, %v1770_v17  ;;  %v1045_v46 = vsub.f32 2.0, %v1044_v41  ;;  %v1055_v52 = vsel %vm238_vm3, %v1050_v43, 0 }
 0x715   : > { %1605 = vmatprep.subr.bf16.mxu0 %v1770_v17  ;;  %v820_v40 = vpack.c.bf16 %v819_v36, %v819_v36  ;;  %v932_v42 = vmul.f32 %v1723_v31, %v931_v37 }
 0x716   : > { %v1046_v50 = vmul.f32 %v1725_v38, %v1045_v46 }
 0x717   : > { %v933_v48 = vmul.f32 %v2011_v47, %v932_v42 }
 0x718   : > { %v1047_v53 = vmul.f32 %v2015_v49, %v1046_v50 }
 0x719   : > { %v934_v51 = vpack.c.bf16 %v933_v48, %v933_v48 }
 0x71a   : > { %v1048_v54 = vpack.c.bf16 %v1047_v53, %v1047_v53 }
 0x71b   : > { %1596 = vmatmul.mubr.msk.bf16.vlgmr.msra.gmra.mrb[16].mxu0 %vm170_vm2, %v820_v40 }
 0x71c   : > { %1606 = vmatpush3.bf16.msra.mxu0 %v941_v45  ;;  %1607 = vmatprep.mubr.msk.bf16.mxu0 %vm1771_vm1, %v1770_v17 }
 0x71d   : > { %1617 = vmatprep.subr.bf16.mxu0 %v1770_v17 }
 0x723   : > { %1608 = vmatmul.mubr.msk.bf16.vlgmr.msra.gmra.mrb[20].mxu0 %vm170_vm2, %v934_v51 }
 0x724   : > { %1618 = vmatpush3.bf16.msra.mxu0 %v1055_v52  ;;  %1619 = vmatprep.mubr.msk.bf16.mxu0 %vm1771_vm1, %v1770_v17  ;;  %v1681_v52 = vld [vmem:[%s2167_s7 + $0x8] sm:$0xff]  }
 0x725   : > { %1631 = vmatprep.subr.bf16.mxu0 %v1770_v17 }
 0x72b   : > { %1620 = vmatmul.mubr.msk.bf16.vlgmr.msra.gmra.mrb[24].mxu0 %vm170_vm2, %v1048_v54 }
 0x72c   : > { %1647 = vmatprep.mubr.msk.bf16.mxu0 %vm1771_vm1, %v1770_v17 }
 0x7a9   : > { %v390_v47 = vpop.f32.mrb[0].mxu0 }
 0x7aa   : > { %v1549_v55 = vpop.f32.mrb[1].mxu0  ;;  %625 = vrot.lane.b32.xlu0 %v390_v47, %s1783_s23 }
 0x7ab   : > { %v393_v56 = vpop.f32.mrb[2].mxu0 }
 0x7ac   : > { %v1550_v57 = vpop.f32.mrb[3].mxu0 }
 0x7b1   : > { %v504_v58 = vpop.f32.mrb[4].mxu0 }
 0x7b2   : > { %629 = vrot.lane.b32.xlu0 %v504_v58, %s1784_s24  ;;  %v1561_v59 = vpop.f32.mrb[5].mxu0 }
 0x7b3   : > { %v507_v60 = vpop.f32.mrb[6].mxu0 }
 0x7b4   : > { %v1562_v49 = vpop.f32.mrb[7].mxu0  ;;  %v1457_v60 = vld [vmem:[%s2165_s5] ss:$0 sm:$0xff] }
 0x7b9   : > { %v618_v61 = vpop.f32.mrb[8].mxu0 }
 0x7ba   : > { %633 = vrot.lane.b32.xlu0 %v618_v61, %s1785_s25  ;;  %v1573_v62 = vpop.f32.mrb[9].mxu0 }
 0x7bb   : > { %v621_v63 = vpop.f32.mrb[10].mxu0 }
 0x7bc   : > { %v1574_v0 = vpop.f32.mrb[11].mxu0  ;;  %v1458_v63 = vld [vmem:[%s2166_s6] ss:$0 sm:$0xff] }
 0x7e6   : > { %v749_v1 = vpop.f32.mrb[12].mxu0 }
 0x7e7   : > { %v1585_v44 = vpop.f32.mrb[13].mxu0 }
 0x7e8   : > { %v752_v4 = vpop.f32.mrb[14].mxu0 }
 0x7e9   : > { %v1586_v5 = vpop.f32.mrb[15].mxu0 }
 0x7ea   : > { %v1682_v5 = vld [vmem:[%s2169_s9] sm:$0xff]  }
 0x7eb   : > { %1632 = vmatpush3.bf16.msra.mxu0 %v1682_v5 }
 0x7ec   : > { %1633 = vmatprep.subr.bf16.mxu0 %v1770_v17 }
 0x7ee   : > { %v863_v6 = vpop.f32.mrb[16].mxu0 }
 0x7ef   : > { %1098 = vrot.lane.b32.xlu1 %v863_v6, %s1783_s23  ;;  %v1597_v7 = vpop.f32.mrb[17].mxu0  ;;  %v1683_v6 = vld [vmem:[%s2169_s9 + $0x8] sm:$0xff]  }
 0x7f0   : > { %v866_v8 = vpop.f32.mrb[18].mxu0  ;;  %1634 = vmatpush3.bf16.msra.mxu0 %v1683_v6  ;;  %v1684_v7 = vld [vmem:[%s2169_s9 + $0x10] sm:$0xff]  }
 0x7f1   : > { %v1598_v9 = vpop.f32.mrb[19].mxu0  ;;  %1635 = vmatprep.subr.bf16.mxu0 %v1770_v17  ;;  %v1685_v8 = vld [vmem:[%s2169_s9 + $0x18] sm:$0xff]  }
 0x7f2   : > { %v1686_v9 = vld [vmem:[%s2169_s9 + $0x20] sm:$0xff]  }
 0x7f4   : > { %1636 = vmatpush3.bf16.msra.mxu0 %v1684_v7 }
 0x7f5   : > { %1637 = vmatprep.subr.bf16.mxu0 %v1770_v17 }
 0x7f6   : > { %v977_v10 = vpop.f32.mrb[20].mxu0 }
 0x7f7   : > { %1102 = vrot.lane.b32.xlu1 %v977_v10, %s1784_s24  ;;  %v1609_v11 = vpop.f32.mrb[21].mxu0  ;;  %v1687_v10 = vld [vmem:[%s2169_s9 + $0x28] sm:$0xff]  }
 0x7f8   : > { %v980_v12 = vpop.f32.mrb[22].mxu0  ;;  %1638 = vmatpush3.bf16.msra.mxu0 %v1685_v8  ;;  %v1688_v11 = vld [vmem:[%s2169_s9 + $0x30] sm:$0xff]  }
 0x7f9   : > { %v1610_v13 = vpop.f32.mrb[23].mxu0  ;;  %1639 = vmatprep.subr.bf16.mxu0 %v1770_v17  ;;  %v1689_v12 = vld [vmem:[%s2169_s9 + $0x38] sm:$0xff]  }
 0x7fa   : > { %v1460_v13 = vld [vmem:[%s2168_s8] ss:$0 sm:$0xff] }
 0x7fc   : > { %1640 = vmatpush3.bf16.msra.mxu0 %v1686_v9 }
 0x7fd   : > { %1641 = vmatprep.subr.bf16.mxu0 %v1770_v17 }
 0x7fe   : > { %v1091_v14 = vpop.f32.mrb[24].mxu0 }
 0x7ff   : > { %1106 = vrot.lane.b32.xlu1 %v1091_v14, %s1785_s25  ;;  %v1621_v15 = vpop.f32.mrb[25].mxu0 }
 0x800   : > { %v1094_v16 = vpop.f32.mrb[26].mxu0  ;;  %1642 = vmatpush3.bf16.msra.mxu0 %v1687_v10 }
 0x801   : > { %v1622_v18 = vpop.f32.mrb[27].mxu0  ;;  %1643 = vmatprep.subr.bf16.mxu0 %v1770_v17 }
 0x804   : > { %1644 = vmatpush3.bf16.msra.mxu0 %v1688_v11 }
 0x805   : > { %1645 = vmatprep.subr.bf16.mxu0 %v1770_v17 }
 0x808   : > { %1646 = vmatpush3.bf16.msra.mxu0 %v1689_v12 }
 0x81c   : > { %v626_v19 = vpop.permute.xlu0 %625 }
 0x81d   : > { %v636_v21 = vsel %vm170_vm2, %v1976_v26, %v626_v19 }
 0x824   : > { %v630_v20 = vpop.permute.xlu0 %629 }
 0x825   : > { %v638_v22 = vsel %vm637_vm4, %v636_v21, %v630_v20 }
 0x82c   : > { %v634_v23 = vpop.permute.xlu0 %633 }
 0x82d   : > { %v640_v24 = vsel %vm639_vm5, %v638_v22, %v634_v23 }
 0x82e   : > { %641 = vst.msk [vmem:[#allocation3] sm:$0xff] %vm42_vm0, %v640_v24 }
 0x835   : > { %v1113_v25 = vld [vmem:[#allocation3] sm:$0xff] }
 0x836   : > { %v1115_v28 = vadd.f32 %v1113_v25, %v1862_v2 }
 0x838   : > { %v1119_v29 = vsel %vm42_vm0, %v1115_v28, 0.0  ;;  %v1169_v30 = vadd.f32 %v1459_v27, %v1115_v28 }
 0x839   : > { %1120 = vadd.xlane.f32.xlu0 %v1119_v29 }
 0x83a   : > { %1171 = vst.msk [vmem:[#allocation2] sm:$0xff] %vm42_vm0, %v1169_v30 }
 0x861   : > { %v1099_v26 = vpop.permute.xlu1 %1098 }
 0x862   : > { %v1109_v32 = vsel %vm170_vm2, %v749_v1, %v1099_v26 }
 0x869   : > { %v1103_v31 = vpop.permute.xlu1 %1102 }
 0x86a   : > { %v1110_v33 = vsel %vm637_vm4, %v1109_v32, %v1103_v31 }
 0x871   : > { %v1107_v34 = vpop.permute.xlu1 %1106 }
 0x872   : > { %v1111_v35 = vsel %vm639_vm5, %v1110_v33, %v1107_v34 }
 0x873   : > { %1112 = vst.msk [vmem:[#allocation3 + $0x8] sm:$0xff] %vm42_vm0, %v1111_v35 }
 0x87a   : > { %v1114_v36 = vld [vmem:[#allocation3 + $0x8] sm:$0xff] }
 0x87b   : > { %v1116_v2 = vadd.f32 %v1114_v36, %v1864_v3  ;;  %v1680_v3 = vld [vmem:[%s2167_s7] sm:$0xff]  }
 0x87c   : > { %1624 = vmatpush3.bf16.msra.mxu1 %v1680_v3 }
 0x87d   : > { %v1122_v37 = vsel %vm42_vm0, %v1116_v2, 0.0  ;;  %v1170_v38 = vadd.f32 %v1459_v27, %v1116_v2  ;;  %1625 = vmatprep.subr.bf16.mxu1 %v1770_v17 }
 0x87e   : > { %1123 = vadd.xlane.f32.xlu1 %v1122_v37 }
 0x87f   : > { %1172 = vst.msk [vmem:[#allocation2 + $0x8] sm:$0xff] %vm42_vm0, %v1170_v38 }
 0x880   : > { %1626 = vmatpush3.bf16.msra.mxu1 %v1681_v52 }
 0x8c6   : > { %v1121_v39 = vpop.xlane.xlu0 %1120 }
 0x8c7   : > { %v1125_v40 = vmul.f32 0.03125, %v1121_v39 }
 0x8c9   : > { %v1127_v41 = vsub.f32 %v1115_v28, %v1125_v40 }
 0x8cb   : > { %v1129_v42 = vmul.f32 %v1127_v41, %v1127_v41 }
 0x8cd   : > { %v1131_v45 = vsel %vm42_vm0, %v1129_v42, 0.0 }
 0x8ce   : > { %1132 = vadd.xlane.f32.xlu0 %v1131_v45 }
 0x90b   : > { %v1124_v46 = vpop.xlane.xlu1 %1123 }
 0x90c   : > { %v1126_v48 = vmul.f32 0.03125, %v1124_v46 }
 0x90e   : > { %v1128_v43 = vsub.f32 %v1116_v2, %v1126_v48 }
 0x910   : > { %v1130_v50 = vmul.f32 %v1128_v43, %v1128_v43 }
 0x912   : > { %v1134_v51 = vsel %vm42_vm0, %v1130_v50, 0.0 }
 0x913   : > { %1135 = vadd.xlane.f32.xlu0 %v1134_v51 }
 0x95b   : > { %v1133_v53 = vpop.xlane.xlu0 %1132 }
 0x95c   : > { %v1137_v54 = vmul.f32 0.03125, %v1133_v53 }
 0x95e   : > { %v1139_v47 = vadd.f32 1e-05, %v1137_v54 }
 0x960   : > { %1726 = vrsqrt.f32 %v1139_v47 }
 0x96a   : > { %v1727_v58 = vpop.eup %1726 }
 0x96b   : > { %v1143_v59 = vmul.f32 %v1727_v58, %v1127_v41 }
 0x96d   : > { %v1151_v62 = vmul.f32 %v1457_v60, %v1143_v59 }
 0x96f   : > { %v1159_v1 = vadd.f32 %v1458_v63, %v1151_v62 }
 0x9a0   : > { %v1136_v55 = vpop.xlane.xlu0 %1135 }
 0x9a1   : > { %v1138_v56 = vmul.f32 0.03125, %v1136_v55 }
 0x9a3   : > { %v1140_v57 = vadd.f32 1e-05, %v1138_v56 }
 0x9a5   : > { %1728 = vrsqrt.f32 %v1140_v57 }
 0x9af   : > { %v1729_v49 = vpop.eup %1728 }
 0x9b0   : > { %v1144_v61 = vmul.f32 %v1729_v49, %v1128_v43 }
 0x9b2   : > { %v1152_v0 = vmul.f32 %v1457_v60, %v1144_v61 }
 0x9b4   : > { %v1160_v44 = vadd.f32 %v1458_v63, %v1152_v0 }
 0x9b6   : > { %v1161_v4 = vpack.c.bf16 %v1160_v44, %v1159_v1 }
 0x9b8   : > { %1628 = vmatmul.mubr.msk.bf16.vlgmr.msra.gmra.mrb[40].mxu1 %vm42_vm0, %v1161_v4 }
 0xa8b   : > { %v1233_v14 = vpop.f32.mrb[40].mxu1 }
 0xa8c   : > { %v2137_v15 = vadd.f32 %v1460_v13, %v1233_v14  ;;  %v1629_v16 = vpop.f32.mrb[41].mxu1 }
 0xa8d   : > { %v1236_v18 = vpop.f32.mrb[42].mxu1 }
 0xa8e   : > { %v1242_v19 = vmul.f32 0.70710677, %v2137_v15  ;;  %v1237_v20 = vadd.f32 %v1460_v13, %v1236_v18  ;;  %v1630_v21 = vpop.f32.mrb[43].mxu1  ;;  %v1240_v7 = vmul.f32 0.5, %v2137_v15  ;;  %v1298_v13 = vld [vmem:[#allocation2] sm:$0xff] }
 0xa8f   : > { %v1299_v21 = vld [vmem:[#allocation2 + $0x8] sm:$0xff] }
 0xa90   : > { %v1244_v22 = vand.u32 2147483647, %v1242_v19  ;;  %v1243_v17 = vmul.f32 0.70710677, %v1237_v20  ;;  %vm1288_vm6 = vcmp.ge.f32.partialorder %v1242_v19, 0.0  ;;  %v1241_v8 = vmul.f32 0.5, %v1237_v20 }
 0xa92   : > { %v1246_v23 = vmul.f32 0.3275911, %v1244_v22  ;;  %v1245_v24 = vand.u32 2147483647, %v1243_v17  ;;  %v1276_v26 = vsub.f32 0.0, %v1244_v22  ;;  %vm1289_vm7 = vcmp.ge.f32.partialorder %v1243_v17, 0.0 }
 0xa94   : > { %v1248_v25 = vadd.f32 1.0, %v1246_v23  ;;  %v1247_v27 = vmul.f32 0.3275911, %v1245_v24  ;;  %v1277_v35 = vsub.f32 0.0, %v1245_v24  ;;  %v1278_v36 = vmul.f32 %v1276_v26, %v1244_v22 }
 0xa96   : > { %1730 = vrcp.f32 %v1248_v25  ;;  %v1249_v28 = vadd.f32 1.0, %v1247_v27  ;;  %v1279_v40 = vmul.f32 %v1277_v35, %v1245_v24  ;;  %v1280_v41 = vmul.f32 1.442695, %v1278_v36 }
 0xa98   : > { %1732 = vrcp.f32 %v1249_v28  ;;  %v1282_v43 = vmul.f32 1.442695, %v1279_v40 }
 0xa99   : > { %1734 = vpow2.f32 %v1280_v41 }
 0xa9a   : > { %1736 = vpow2.f32 %v1282_v43 }
 0xaa0   : > { %v1731_v29 = vpop.eup %1730 }
 0xaa1   : > { %v1252_v30 = vmul.f32 %v1731_v29, %v1248_v25 }
 0xaa2   : > { %v1733_v31 = vpop.eup %1732 }
 0xaa3   : > { %v1254_v32 = vsub.f32 2.0, %v1252_v30  ;;  %v1253_v33 = vmul.f32 %v1733_v31, %v1249_v28  ;;  %v1735_v58 = vpop.eup %1734 }
 0xaa4   : > { %v1737_v61 = vpop.eup %1736 }
 0xaa5   : > { %v1256_v34 = vmul.f32 %v1731_v29, %v1254_v32  ;;  %v1255_v2 = vsub.f32 2.0, %v1253_v33 }
 0xaa7   : > { %v1258_v37 = vmul.f32 1.0614054, %v1256_v34  ;;  %v1257_v38 = vmul.f32 %v1733_v31, %v1255_v2 }
 0xaa9   : > { %v1260_v39 = vadd.f32 -1.4531521, %v1258_v37  ;;  %v1259_v42 = vmul.f32 1.0614054, %v1257_v38 }
 0xaab   : > { %v1262_v45 = vmul.f32 %v1260_v39, %v1256_v34  ;;  %v1261_v46 = vadd.f32 -1.4531521, %v1259_v42 }
 0xaad   : > { %v1264_v48 = vadd.f32 1.4214138, %v1262_v45  ;;  %v1263_v50 = vmul.f32 %v1261_v46, %v1257_v38 }
 0xaaf   : > { %v1266_v51 = vmul.f32 %v1264_v48, %v1256_v34  ;;  %v1265_v3 = vadd.f32 1.4214138, %v1263_v50 }
 0xab1   : > { %v1268_v52 = vadd.f32 -0.28449672, %v1266_v51  ;;  %v1267_v53 = vmul.f32 %v1265_v3, %v1257_v38 }
 0xab3   : > { %v1270_v54 = vmul.f32 %v1268_v52, %v1256_v34  ;;  %v1269_v47 = vadd.f32 -0.28449672, %v1267_v53 }
 0xab5   : > { %v1272_v55 = vadd.f32 0.2548296, %v1270_v54  ;;  %v1271_v56 = vmul.f32 %v1269_v47, %v1257_v38 }
 0xab7   : > { %v1274_v57 = vmul.f32 %v1272_v55, %v1256_v34  ;;  %v1273_v59 = vadd.f32 0.2548296, %v1271_v56 }
 0xab9   : > { %v1284_v60 = vmul.f32 %v1735_v58, %v1274_v57  ;;  %v1275_v49 = vmul.f32 %v1273_v59, %v1257_v38 }
 0xabb   : > { %v1286_v62 = vsub.f32 1.0, %v1284_v60  ;;  %v1285_v63 = vmul.f32 %v1737_v61, %v1275_v49 }
 0xabd   : > { %v1290_v0 = vsub.f32 0.0, %v1286_v62  ;;  %v1287_v1 = vsub.f32 1.0, %v1285_v63 }
 0xabf   : > { %v1292_v44 = vsel %vm1288_vm6, %v1286_v62, %v1290_v0  ;;  %v1291_v4 = vsub.f32 0.0, %v1287_v1 }
 0xac0   : > { %v1294_v5 = vadd.f32 1.0, %v1292_v44 }
 0xac1   : > { %v1293_v6 = vsel %vm1289_vm7, %v1287_v1, %v1291_v4 }
 0xac2   : > { %v1295_v9 = vadd.f32 1.0, %v1293_v6  ;;  %v1296_v10 = vmul.f32 %v1294_v5, %v1240_v7 }
 0xac4   : > { %v1297_v11 = vmul.f32 %v1295_v9, %v1241_v8 }
 0xac6   : > { %v1300_v12 = vpack.c.bf16 %v1297_v11, %v1296_v10 }
 0xac8   : > { %1648 = vmatmul.mubr.bf16.vlgmr.msra.gmra.mrb[28].mxu0 %v1300_v12 }
 0xb9a   :  { %49 = sbr.rel (!%p47_p0) target bundleno = 3 (0x3), region = 71 }
 0xb9b   : > { %v1399_v14 = vpop.f32.mrb[28].mxu0 }
 0xb9c   : > { %v1406_v16 = vadd.f32 %v1399_v14, %v1298_v13  ;;  %v1649_v18 = vpop.f32.mrb[29].mxu0 }
 0xb9d   : > { %v1402_v19 = vpop.f32.mrb[30].mxu0 }
 0xb9e   : > { %1408 = vst.msk [vmem:[#allocation2] sm:$0xff] %vm42_vm0, %v1406_v16  ;;  %v1407_v22 = vadd.f32 %v1402_v19, %v1299_v21  ;;  %v1650_v23 = vpop.f32.mrb[31].mxu0 }
 0xba0   : > { %1409 = vst.msk [vmem:[#allocation2 + $0x8] sm:$0xff] %vm42_vm0, %v1407_v22 }
 0xba5   :  { %v1410_v15 = vld [vmem:[#allocation2] sm:$0xff] }
 0xba6   :  { %1412 = vst.msk [vmem:[#allocation4] sm:$0xff] %vm42_vm0, %v1410_v15 }
 0xba7   :  { %v1411_v20 = vld [vmem:[#allocation2 + $0x8] sm:$0xff] }
 0xba8   :  { %1413 = vst.msk [vmem:[#allocation4 + $0x8] sm:$0xff] %vm42_vm0, %v1411_v20 }
 0xba9   :  { %1749 = shalt.err (!%p1746_p5)
}
 0xbaa   :  { %s1750_s21 = scalar_lea.hbm %s2171_s11, 256 }
 0xbab   :  { %p1751_p6 = scmp.ne.s32.totalorder %s2171_s11, %s1750_s21  ;;  %p1754_p7 = scmp.lt.u32.totalorder %s1750_s21, %s2171_s11 }
 0xbad   :  { %p1756_p8 = pnand %p1754_p7, %p1751_p6 }
 0xbaf   :  { %1759 = shalt.err (!%p1756_p8)
}
 0xbb0   :  { %s1787_s5 = smov 128   ;;  %s1788_s6 = smov 8  }
 0xbb1   :  { %1425 = dma.vmem_to_hbm [thread:$0]  %s1420_s17, 256, %s2171_s11, [#allocation5], %s1787_s5, %s1787_s5, %s1788_s6  }
 0xbb2   :  { %1764 = dma.done.wait [#allocation5], 256  }
 0xbb3   :  { %1765 = vsyncadd [#allocation5], 4294967040 }
 0xbb4   :  { %1429 = vsyncpa [#allocation5], 1 }

// kernel: tpu_custom_call.1
= control target key start
LH: loop header
LB: loop body
LE: loop exit
PB: predicated region body
PF: predicated region fallthrough
CT: control target
= control target key end

     0   :  { %16 = vsyncpa [#allocation5], 0  ;;  %vm42_vm0 = vcmask 261120   ;;  %s1857_s21 = smov 0   ;;  %s2160_s0 = inlined_call_operand.vmem [shape: f32[16,32], index: 0, kind: input, shape index: {}]   ;;  %s2161_s1 = inlined_call_operand.vmem [shape: f32[1,32], index: 1, kind: input, shape index: {}]   ;;  %s2162_s2 = inlined_call_operand.vmem [shape: f32[1,32], index: 2, kind: input, shape index: {}]   ;;  %s2163_s3 = inlined_call_operand.vmem [shape: bf16[32,96], index: 3, kind: input, shape index: {}]   ;;  %s2164_s4 = inlined_call_operand.vmem [shape: f32[1,96], index: 4, kind: input, shape index: {}]   ;;  %s2165_s5 = inlined_call_operand.vmem [shape: f32[1,32], index: 5, kind: input, shape index: {}]   ;;  %s2166_s6 = inlined_call_operand.vmem [shape: f32[1,32], index: 6, kind: input, shape index: {}]   ;;  %s2167_s7 = inlined_call_operand.vmem [shape: bf16[32,128], index: 7, kind: input, shape index: {}]   ;;  %s2168_s8 = inlined_call_operand.vmem [shape: f32[1,128], index: 8, kind: input, shape index: {}]   ;;  %s2169_s9 = inlined_call_operand.vmem [shape: bf16[128,32], index: 9, kind: input, shape index: {}]   ;;  %s2170_s10 = inlined_call_operand.vmem [shape: f32[1,32], index: 10, kind: input, shape index: {}]   ;;  %s2171_s11 = inlined_call_operand.hbm [shape: f32[16,32], index: 11, kind: output, shape index: {}]  }
   0x1   :  { %v40_v0 = vld [vmem:[%s2160_s0] sm:$0xff]  ;;  %v41_v1 = vld [vmem:[%s2160_s0 + $0x8] sm:$0xff] }
   0x2   :  { %43 = vst.msk [vmem:[#allocation2] sm:$0xff] %vm42_vm0, %v40_v0  ;;  %44 = vst.msk [vmem:[#allocation2 + $0x8] sm:$0xff] %vm42_vm0, %v41_v1 }
   0x3 LB: > { %v1678_v16 = vld [vmem:[%s2163_s3] sm:$0xff]   ;;  %v1770_v17 = vmov 0.0   ;;  %vm1771_vm1 = vmmov 0   ;;  %v1679_v18 = vld [vmem:[%s2163_s3 + $0x8] sm:$0xff]   ;;  %s1772_s12 = smov 96   ;;  %s1773_s13 = smov 88   ;;  %s1768_s21 = sphi %s1857_s21, %s50_s21  }
   0x4   : > { %1519 = vmatprep.subr.bf16.mxu1 %v1770_v17  ;;  %1523 = vmatprep.mubr.msk.bf16.mxu1 %vm1771_vm1, %v1770_v17  ;;  %v1435_v27 = vld [vmem:[%s2161_s1] ss:$0 sm:$0xff]  ;;  %s1774_s14 = smov 80   ;;  %s1775_s15 = smov 72   ;;  %vm170_vm2 = vcmask 64512   ;;  %vm238_vm3 = vcmask 1043456  }
   0x5   : > { %1520 = vmatpush3.bf16.msra.mxu1 %v1678_v16  ;;  %1545 = vmatprep.subr.bf16.mxu0 %v1770_v17  ;;  %v1436_v31 = vld [vmem:[%s2162_s2] ss:$0 sm:$0xff]  ;;  %s1776_s16 = smov 120   ;;  %s1777_s17 = smov 112   ;;  %vm637_vm4 = vcmask 130048   ;;  %vm639_vm5 = vcmask 195584  }
   0x6   : > { %1521 = vmatprep.subr.bf16.mxu1 %v1770_v17  ;;  %1547 = vmatprep.mubr.msk.bf16.mxu0 %vm1771_vm1, %v1770_v17  ;;  %v1437_v36 = vld [vmem:[%s2164_s4] ss:$0 sm:$0xff]  ;;  %s1778_s18 = smov 104   ;;  %s1779_s19 = smov 64  }
   0x7   : > { %s1780_s20 = smov 56   ;;  %s1781_s0 = smov 48  }
   0x8   : > { %s1782_s22 = smov 40   ;;  %s1783_s23 = smov 8  }
   0x9   : > { %v1862_v2 = vld [vmem:[#allocation2] sm:$0xff]  ;;  %v1864_v3 = vld [vmem:[#allocation2 + $0x8] sm:$0xff]  ;;  %1522 = vmatpush3.bf16.msra.mxu1 %v1679_v18  ;;  %s1784_s24 = smov 16   ;;  %s1785_s25 = smov 24  }
   0xa   : > { %v55_v4 = vsel %vm42_vm0, %v1862_v2, 0.0  ;;  %v58_v5 = vsel %vm42_vm0, %v1864_v3, 0.0  ;;  %1527 = vmatprep.subr.bf16.mxu1 %v1770_v17  ;;  %s50_s21 = sadd.s32 1, %s1768_s21  }
   0xb   : > { %56 = vadd.xlane.f32.xlu0 %v55_v4  ;;  %p47_p0 = scmp.ge.s32.totalorder %s50_s21, 2  }
   0xf   : > { %59 = vadd.xlane.f32.xlu0 %v58_v5 }
  0x98   : > { %v57_v6 = vpop.xlane.xlu0 %56 }
  0x99   : > { %v62_v7 = vmul.f32 0.03125, %v57_v6 }
  0x9b   : > { %v64_v8 = vsub.f32 %v1862_v2, %v62_v7 }
  0x9c   : > { %v60_v9 = vpop.xlane.xlu0 %59 }
  0x9d   : > { %v63_v10 = vmul.f32 0.03125, %v60_v9  ;;  %v66_v11 = vmul.f32 %v64_v8, %v64_v8 }
  0x9f   : > { %v65_v12 = vsub.f32 %v1864_v3, %v63_v10  ;;  %v68_v13 = vsel %vm42_vm0, %v66_v11, 0.0 }
  0xa0   : > { %69 = vadd.xlane.f32.xlu1 %v68_v13 }
  0xa1   : > { %v67_v14 = vmul.f32 %v65_v12, %v65_v12 }
  0xa3   : > { %v71_v15 = vsel %vm42_vm0, %v67_v14, 0.0 }
  0xa4   : > { %72 = vadd.xlane.f32.xlu1 %v71_v15 }
 0x12d   : > { %v70_v19 = vpop.xlane.xlu1 %69 }
 0x12e   : > { %v74_v20 = vmul.f32 0.03125, %v70_v19 }
 0x130   : > { %v76_v21 = vadd.f32 1e-05, %v74_v20 }
 0x131   : > { %v73_v22 = vpop.xlane.xlu1 %72 }
 0x132   : > { %1690 = vrsqrt.f32 %v76_v21  ;;  %v75_v23 = vmul.f32 0.03125, %v73_v22 }
 0x134   : > { %v77_v24 = vadd.f32 1e-05, %v75_v23 }
 0x136   : > { %1692 = vrsqrt.f32 %v77_v24 }
 0x13c   : > { %v1691_v25 = vpop.eup %1690 }
 0x13d   : > { %v80_v26 = vmul.f32 %v1691_v25, %v64_v8 }
 0x13f   : > { %v88_v30 = vmul.f32 %v1435_v27, %v80_v26 }
 0x140   : > { %v1693_v28 = vpop.eup %1692 }
 0x141   : > { %v81_v29 = vmul.f32 %v1693_v28, %v65_v12  ;;  %v96_v33 = vadd.f32 %v1436_v31, %v88_v30 }
 0x143   : > { %v89_v32 = vmul.f32 %v1435_v27, %v81_v29 }
 0x145   : > { %v97_v34 = vadd.f32 %v1436_v31, %v89_v32 }
 0x147   : > { %v98_v35 = vpack.c.bf16 %v97_v34, %v96_v33 }
 0x149   : > { %1524 = vmatmul.mubr.msk.bf16.vlgmr.msra.gmra.mrb[0].mxu1 %vm42_vm0, %v98_v35 }
 0x14a   : > { %1529 = vmatprep.mubr.msk.bf16.mxu1 %vm1771_vm1, %v1770_v17 }
 0x21c   : > { %v159_v37 = vpop.f32.mrb[0].mxu1 }
 0x21d   : > { %v1525_v38 = vpop.f32.mrb[1].mxu1  ;;  %v160_v40 = vadd.f32 %v1437_v36, %v159_v37 }
 0x21e   : > { %v162_v39 = vpop.f32.mrb[2].mxu1 }
 0x21f   : > { %v163_v41 = vadd.f32 %v1437_v36, %v162_v39  ;;  %v1526_v42 = vpop.f32.mrb[3].mxu1 }
 0x221   : > { %v1900_v43 = vpack.c.bf16 %v163_v41, %v160_v40 }
 0x223   : > { %168 = vrot.lane.b32.xlu0 %v1900_v43, %s1772_s12  ;;  %v1910_v44 = vrot.slane %v1900_v43, 4 }
 0x227   : > { %284 = vrot.lane.b32.xlu0 %v1900_v43, %s1773_s13 }
 0x22b   : > { %398 = vrot.lane.b32.xlu0 %v1900_v43, %s1774_s14 }
 0x22f   : > { %512 = vrot.lane.b32.xlu0 %v1900_v43, %s1775_s15 }
 0x233   : > { %643 = vrot.lane.b32.xlu0 %v1910_v44, %s1772_s12 }
 0x237   : > { %755 = vrot.lane.b32.xlu0 %v1910_v44, %s1776_s16 }
 0x23b   : > { %869 = vrot.lane.b32.xlu0 %v1910_v44, %s1777_s17 }
 0x23f   : > { %983 = vrot.lane.b32.xlu0 %v1910_v44, %s1778_s18 }
 0x295   : > { %v169_v45 = vpop.permute.xlu0 %168 }
 0x296   : > { %v175_v46 = vsel %vm170_vm2, %v169_v45, 0 }
 0x297   : > { %1528 = vmatpush3.bf16.xpose.msra.mxu1 %v175_v46 }
 0x298   : > { %1533 = vmatprep.subr.bf16.mxu1 %v1770_v17 }
 0x299   : > { %v285_v4 = vpop.permute.xlu0 %284 }
 0x29a   : > { %v290_v6 = vsel %vm170_vm2, %v285_v4, 0 }
 0x29d   : > { %v399_v7 = vpop.permute.xlu0 %398 }
 0x29e   : > { %1530 = vmatmul.mubr.msk.bf16.vlgmr.msra.gmra.mrb[4].mxu1 %vm170_vm2, %v1900_v43  ;;  %v404_v9 = vsel %vm170_vm2, %v399_v7, 0 }
 0x29f   : > { %1535 = vmatprep.mubr.msk.bf16.mxu1 %vm1771_vm1, %v1770_v17 }
 0x2a1   : > { %v513_v10 = vpop.permute.xlu0 %512 }
 0x2a2   : > { %v518_v12 = vsel %vm170_vm2, %v513_v10, 0 }
 0x2a5   : > { %v644_v13 = vpop.permute.xlu0 %643 }
 0x2a6   : > { %v649_v15 = vsel %vm170_vm2, %v644_v13, 0 }
 0x2a9   : > { %v756_v20 = vpop.permute.xlu0 %755 }
 0x2ad   : > { %v870_v23 = vpop.permute.xlu0 %869 }
 0x2b1   : > { %v984_v25 = vpop.permute.xlu0 %983 }
 0x371   : > { %v211_v47 = vpop.f32.mrb[4].mxu1 }
 0x372   : > { %v217_v48 = vmul.f32 0.35355338, %v211_v47  ;;  %v1531_v49 = vpop.f32.mrb[5].mxu1 }
 0x373   : > { %v214_v50 = vpop.f32.mrb[6].mxu1 }
 0x374   : > { %v1532_v51 = vpop.f32.mrb[7].mxu1  ;;  %v218_v52 = vsel %vm170_vm2, %v217_v48, -inf }
 0x375   : > { %219 = vmax.xlane.f32.xlu1 %v218_v52 }
 0x402   : > { %v220_v53 = vpop.xlane.xlu1 %219 }
 0x403   : > { %v221_v54 = vsub.f32 %v217_v48, %v220_v53 }
 0x405   : > { %v222_v55 = vmul.f32 1.442695, %v221_v54 }
 0x407   : > { %1694 = vpow2.f32 %v222_v55 }
 0x411   : > { %v1695_v56 = vpop.eup %1694 }
 0x412   : > { %v224_v57 = vsel %vm170_vm2, %v1695_v56, 0.0 }
 0x413   : > { %225 = vadd.xlane.f32.xlu1 %v224_v57 }
 0x424   : > { %233 = vrot.lane.b32.xlu1 %v1900_v43, %s1779_s19 }
 0x428   : > { %282 = vrot.lane.b32.xlu1 %v1900_v43, %s1776_s16  ;;  %s1786_s16 = smov (%p47_p0), [#allocation4]  }
 0x42c   : > { %396 = vrot.lane.b32.xlu1 %v1900_v43, %s1777_s17  ;;  %s1419_s17 = sshll.u32 (%p47_p0), %s1786_s16, 4  ;;  %s1420_s17 = int_to_ptr.vmem [resolvable:$true] %s1419_s17 }
 0x42d   :  { %p1743_p2 = scmp.lt.s32.totalorder (%p47_p0), %s1420_s17, %s1420_s17 }
 0x430   : > { %510 = vrot.lane.b32.xlu1 %v1900_v43, %s1778_s18  ;;  %s1738_s18 = scalar_lea.vmem (%p47_p0), %s1420_s17, 256 }
 0x431   :  { %p1739_p1 = scmp.ne.s32.totalorder (%p47_p0), %s1420_s17, %s1738_s18  ;;  %p1744_p3 = scmp.lt.s32.totalorder (%p47_p0), %s1738_s18, %s1738_s18 }
 0x433   :  { %p1745_p4 = por (%p47_p0), %p1744_p3, %p1743_p2 }
 0x434   : > { %757 = vrot.lane.b32.xlu1 %v1910_v44, %s1773_s13 }
 0x435   :  { %p1746_p5 = pnand (%p47_p0), %p1745_p4, %p1739_p1 }
 0x438   : > { %871 = vrot.lane.b32.xlu1 %v1910_v44, %s1774_s14 }
 0x43c   : > { %985 = vrot.lane.b32.xlu1 %v1910_v44, %s1775_s15 }
 0x4a0   : > { %v226_v58 = vpop.xlane.xlu1 %225 }
 0x4a1   : > { %1696 = vrcp.f32 %v226_v58 }
 0x4a4   : > { %v234_v59 = vpop.permute.xlu1 %233 }
 0x4a5   : > { %v240_v60 = vsel %vm238_vm3, %v234_v59, 0 }
 0x4a6   : > { %1534 = vmatpush3.bf16.msra.mxu1 %v240_v60 }
 0x4a7   : > { %1539 = vmatprep.subr.bf16.mxu1 %v1770_v17 }
 0x4a8   : > { %v283_v8 = vpop.permute.xlu1 %282 }
 0x4ab   : > { %v1697_v61 = vpop.eup %1696 }
 0x4ac   : > { %v228_v62 = vmul.f32 %v1697_v61, %v226_v58  ;;  %v397_v11 = vpop.permute.xlu1 %396 }
 0x4ae   : > { %v229_v63 = vsub.f32 2.0, %v228_v62 }
 0x4b0   : > { %v230_v0 = vmul.f32 %v1697_v61, %v229_v63  ;;  %v511_v14 = vpop.permute.xlu1 %510 }
 0x4b2   : > { %v231_v1 = vmul.f32 %v1695_v56, %v230_v0 }
 0x4b4   : > { %v232_v5 = vpack.c.bf16 %v231_v1, %v231_v1  ;;  %v758_v16 = vpop.permute.xlu1 %757 }
 0x4b5   : > { %v763_v18 = vsel %vm170_vm2, %v758_v16, 0 }
 0x4b6   : > { %1536 = vmatmul.mubr.msk.bf16.vlgmr.msra.gmra.mrb[8].mxu1 %vm170_vm2, %v232_v5 }
 0x4b7   : > { %1540 = vmatpush3.bf16.xpose.msra.mxu1 %v290_v6  ;;  %1541 = vmatprep.mubr.msk.bf16.mxu1 %vm1771_vm1, %v1770_v17 }
 0x4b8   : > { %1551 = vmatprep.subr.bf16.mxu1 %v1770_v17  ;;  %v872_v19 = vpop.permute.xlu1 %871 }
 0x4b9   : > { %v877_v21 = vsel %vm170_vm2, %v872_v19, 0 }
 0x4bc   : > { %v986_v22 = vpop.permute.xlu1 %985 }
 0x4bd   : > { %v991_v24 = vsel %vm170_vm2, %v986_v22, 0 }
 0x4be   : > { %1542 = vmatmul.mubr.msk.bf16.vlgmr.msra.gmra.mrb[12].mxu1 %vm170_vm2, %v283_v8 }
 0x4bf   : > { %1552 = vmatpush3.bf16.xpose.msra.mxu1 %v404_v9  ;;  %1553 = vmatprep.mubr.msk.bf16.mxu1 %vm1771_vm1, %v1770_v17 }
 0x4c0   : > { %1563 = vmatprep.subr.bf16.mxu1 %v1770_v17 }
 0x4c6   : > { %1554 = vmatmul.mubr.msk.bf16.vlgmr.msra.gmra.mrb[16].mxu1 %vm170_vm2, %v397_v11 }
 0x4c7   : > { %1564 = vmatpush3.bf16.xpose.msra.mxu1 %v518_v12  ;;  %1565 = vmatprep.mubr.msk.bf16.mxu1 %vm1771_vm1, %v1770_v17 }
 0x4c8   : > { %1575 = vmatprep.subr.bf16.mxu1 %v1770_v17 }
 0x4ce   : > { %1566 = vmatmul.mubr.msk.bf16.vlgmr.msra.gmra.mrb[20].mxu1 %vm170_vm2, %v511_v14 }
 0x4cf   : > { %1576 = vmatpush3.bf16.xpose.msra.mxu1 %v649_v15  ;;  %1577 = vmatprep.mubr.msk.bf16.mxu1 %vm1771_vm1, %v1770_v17 }
 0x4d0   : > { %1587 = vmatprep.subr.bf16.mxu1 %v1770_v17 }
 0x4d6   : > { %1578 = vmatmul.mubr.msk.bf16.vlgmr.msra.gmra.mrb[24].mxu1 %vm170_vm2, %v1910_v44 }
 0x4d7   : > { %1588 = vmatpush3.bf16.xpose.msra.mxu1 %v763_v18  ;;  %1589 = vmatprep.mubr.msk.bf16.mxu1 %vm1771_vm1, %v1770_v17 }
 0x4d8   : > { %1599 = vmatprep.subr.bf16.mxu1 %v1770_v17 }
 0x4de   : > { %1590 = vmatmul.mubr.msk.bf16.vlgmr.msra.gmra.mrb[28].mxu1 %vm170_vm2, %v756_v20 }
 0x4df   : > { %1600 = vmatpush3.bf16.xpose.msra.mxu1 %v877_v21  ;;  %1601 = vmatprep.mubr.msk.bf16.mxu1 %vm1771_vm1, %v1770_v17 }
 0x4e0   : > { %1611 = vmatprep.subr.bf16.mxu1 %v1770_v17 }
 0x4e6   : > { %1602 = vmatmul.mubr.msk.bf16.vlgmr.msra.gmra.mrb[32].mxu1 %vm170_vm2, %v870_v23 }
 0x4e7   : > { %1612 = vmatpush3.bf16.xpose.msra.mxu1 %v991_v24  ;;  %1613 = vmatprep.mubr.msk.bf16.mxu1 %vm1771_vm1, %v1770_v17 }
 0x4e8   : > { %1623 = vmatprep.subr.bf16.mxu1 %v1770_v17 }
 0x4ee   : > { %1614 = vmatmul.mubr.msk.bf16.vlgmr.msra.gmra.mrb[36].mxu1 %vm170_vm2, %v984_v25 }
 0x4ef   : > { %1627 = vmatprep.mubr.msk.bf16.mxu1 %vm1771_vm1, %v1770_v17 }
 0x589   : > { %v1976_v26 = vpop.f32.mrb[8].mxu1 }
 0x58a   : > { %v1537_v27 = vpop.f32.mrb[9].mxu1 }
 0x58b   : > { %v279_v28 = vpop.f32.mrb[10].mxu1 }
 0x58c   : > { %v1538_v29 = vpop.f32.mrb[11].mxu1 }
 0x591   : > { %v326_v30 = vpop.f32.mrb[12].mxu1 }
 0x592   : > { %v332_v31 = vmul.f32 0.35355338, %v326_v30  ;;  %v1543_v32 = vpop.f32.mrb[13].mxu1 }
 0x593   : > { %v329_v33 = vpop.f32.mrb[14].mxu1 }
 0x594   : > { %v1544_v34 = vpop.f32.mrb[15].mxu1  ;;  %v333_v35 = vsel %vm170_vm2, %v332_v31, -inf }
 0x595   : > { %334 = vmax.xlane.f32.xlu1 %v333_v35 }
 0x599   : > { %v440_v36 = vpop.f32.mrb[16].mxu1 }
 0x59a   : > { %v446_v37 = vmul.f32 0.35355338, %v440_v36  ;;  %v1555_v38 = vpop.f32.mrb[17].mxu1 }
 0x59b   : > { %v443_v39 = vpop.f32.mrb[18].mxu1 }
 0x59c   : > { %v1556_v40 = vpop.f32.mrb[19].mxu1  ;;  %v447_v41 = vsel %vm170_vm2, %v446_v37, -inf }
 0x59d   : > { %448 = vmax.xlane.f32.xlu0 %v447_v41 }
 0x5a1   : > { %v554_v42 = vpop.f32.mrb[20].mxu1 }
 0x5a2   : > { %v560_v45 = vmul.f32 0.35355338, %v554_v42  ;;  %v1567_v46 = vpop.f32.mrb[21].mxu1 }
 0x5a3   : > { %v557_v47 = vpop.f32.mrb[22].mxu1 }
 0x5a4   : > { %v1568_v48 = vpop.f32.mrb[23].mxu1  ;;  %v561_v49 = vsel %vm170_vm2, %v560_v45, -inf }
 0x5a5   : > { %562 = vmax.xlane.f32.xlu0 %v561_v49 }
 0x5a9   : > { %v685_v50 = vpop.f32.mrb[24].mxu1 }
 0x5aa   : > { %v691_v51 = vmul.f32 0.35355338, %v685_v50  ;;  %v1579_v52 = vpop.f32.mrb[25].mxu1 }
 0x5ab   : > { %v688_v53 = vpop.f32.mrb[26].mxu1 }
 0x5ac   : > { %v1580_v54 = vpop.f32.mrb[27].mxu1  ;;  %v692_v55 = vsel %vm170_vm2, %v691_v51, -inf }
 0x5ad   : > { %693 = vmax.xlane.f32.xlu0 %v692_v55 }
 0x5b1   : > { %v799_v56 = vpop.f32.mrb[28].mxu1 }
 0x5b2   : > { %v805_v57 = vmul.f32 0.35355338, %v799_v56  ;;  %v1591_v58 = vpop.f32.mrb[29].mxu1 }
 0x5b3   : > { %v802_v59 = vpop.f32.mrb[30].mxu1 }
 0x5b4   : > { %v1592_v60 = vpop.f32.mrb[31].mxu1  ;;  %v806_v61 = vsel %vm170_vm2, %v805_v57, -inf }
 0x5b5   : > { %807 = vmax.xlane.f32.xlu1 %v806_v61 }
 0x5b9   : > { %v913_v62 = vpop.f32.mrb[32].mxu1 }
 0x5ba   : > { %v919_v63 = vmul.f32 0.35355338, %v913_v62  ;;  %v1603_v0 = vpop.f32.mrb[33].mxu1 }
 0x5bb   : > { %v916_v1 = vpop.f32.mrb[34].mxu1 }
 0x5bc   : > { %v1604_v4 = vpop.f32.mrb[35].mxu1  ;;  %v920_v5 = vsel %vm170_vm2, %v919_v63, -inf }
 0x5bd   : > { %921 = vmax.xlane.f32.xlu0 %v920_v5 }
 0x5c1   : > { %v1027_v6 = vpop.f32.mrb[36].mxu1 }
 0x5c2   : > { %v1033_v7 = vmul.f32 0.35355338, %v1027_v6  ;;  %v1615_v8 = vpop.f32.mrb[37].mxu1 }
 0x5c3   : > { %v1030_v9 = vpop.f32.mrb[38].mxu1 }
 0x5c4   : > { %v1616_v10 = vpop.f32.mrb[39].mxu1  ;;  %v1034_v11 = vsel %vm170_vm2, %v1033_v7, -inf }
 0x5c5   : > { %1035 = vmax.xlane.f32.xlu1 %v1034_v11 }
 0x5d3   : > { %348 = vrot.lane.b32.xlu0 %v1900_v43, %s1780_s20 }
 0x622   : > { %v335_v12 = vpop.xlane.xlu1 %334 }
 0x623   : > { %v336_v13 = vsub.f32 %v332_v31, %v335_v12 }
 0x625   : > { %v337_v14 = vmul.f32 1.442695, %v336_v13 }
 0x627   : > { %1698 = vpow2.f32 %v337_v14 }
 0x62a   : > { %v449_v15 = vpop.xlane.xlu0 %448 }
 0x62b   : > { %v450_v16 = vsub.f32 %v446_v37, %v449_v15 }
 0x62d   : > { %v451_v18 = vmul.f32 1.442695, %v450_v16 }
 0x62f   : > { %1700 = vpow2.f32 %v451_v18 }
 0x631   : > { %v1987_v19 = vpop.eup %1698 }
 0x632   : > { %v563_v20 = vpop.xlane.xlu0 %562  ;;  %v339_v21 = vsel %vm170_vm2, %v1987_v19, 0.0 }
 0x633   : > { %v564_v22 = vsub.f32 %v560_v45, %v563_v20  ;;  %340 = vadd.xlane.f32.xlu0 %v339_v21 }
 0x635   : > { %v565_v23 = vmul.f32 1.442695, %v564_v22 }
 0x637   : > { %1702 = vpow2.f32 %v565_v23 }
 0x639   : > { %v1991_v24 = vpop.eup %1700 }
 0x63a   : > { %v453_v25 = vsel %vm170_vm2, %v1991_v24, 0.0  ;;  %v694_v29 = vpop.xlane.xlu0 %693 }
 0x63b   : > { %454 = vadd.xlane.f32.xlu1 %v453_v25  ;;  %v695_v33 = vsub.f32 %v691_v51, %v694_v29 }
 0x63d   : > { %v696_v35 = vmul.f32 1.442695, %v695_v33 }
 0x63f   : > { %1704 = vpow2.f32 %v696_v35 }
 0x641   : > { %v1995_v27 = vpop.eup %1702 }
 0x642   : > { %v567_v28 = vsel %vm170_vm2, %v1995_v27, 0.0  ;;  %v808_v34 = vpop.xlane.xlu1 %807 }
 0x643   : > { %568 = vadd.xlane.f32.xlu0 %v567_v28  ;;  %v809_v36 = vsub.f32 %v805_v57, %v808_v34 }
 0x645   : > { %v810_v39 = vmul.f32 1.442695, %v809_v36 }
 0x647   : > { %1706 = vpow2.f32 %v810_v39 }
 0x649   : > { %v2005_v45 = vpop.eup %1704 }
 0x64a   : > { %v922_v30 = vpop.xlane.xlu0 %921  ;;  %v698_v46 = vsel %vm170_vm2, %v2005_v45, 0.0 }
 0x64b   : > { %v923_v38 = vsub.f32 %v919_v63, %v922_v30 }
 0x64c   : > { %462 = vrot.lane.b32.xlu1 %v1900_v43, %s1781_s0 }
 0x64d   : > { %v924_v41 = vmul.f32 1.442695, %v923_v38 }
 0x64e   : > { %v349_v31 = vpop.permute.xlu0 %348 }
 0x64f   : > { %v354_v32 = vsel %vm238_vm3, %v349_v31, 0  ;;  %1708 = vpow2.f32 %v924_v41 }
 0x650   : > { %1546 = vmatpush3.bf16.msra.mxu0 %v354_v32 }
 0x651   : > { %1557 = vmatprep.subr.bf16.mxu0 %v1770_v17 }
 0x652   : > { %v1036_v37 = vpop.xlane.xlu1 %1035 }
 0x653   : > { %v1037_v40 = vsub.f32 %v1033_v7, %v1036_v37 }
 0x655   : > { %v1038_v42 = vmul.f32 1.442695, %v1037_v40 }
 0x657   : > { %1710 = vpow2.f32 %v1038_v42 }
 0x659   : > { %576 = vrot.lane.b32.xlu0 %v1900_v43, %s1782_s22  ;;  %v2009_v43 = vpop.eup %1706 }
 0x65a   : > { %v2011_v47 = vpop.eup %1708  ;;  %v812_v48 = vsel %vm170_vm2, %v2009_v43, 0.0 }
 0x65b   : > { %v926_v50 = vsel %vm170_vm2, %v2011_v47, 0.0 }
 0x661   : > { %v2015_v49 = vpop.eup %1710 }
 0x662   : > { %v1040_v51 = vsel %vm170_vm2, %v2015_v49, 0.0 }
 0x670   : > { %699 = vadd.xlane.f32.xlu1 %v698_v46 }
 0x674   : > { %813 = vadd.xlane.f32.xlu1 %v812_v48 }
 0x678   : > { %927 = vadd.xlane.f32.xlu1 %v926_v50  ;;  %1041 = vadd.xlane.f32.xlu0 %v1040_v51 }
 0x689   : > { %821 = vrot.lane.b32.xlu1 %v1910_v44, %s1780_s20 }
 0x68d   : > { %935 = vrot.lane.b32.xlu1 %v1910_v44, %s1781_s0 }
 0x68e   : > { %707 = vrot.lane.b32.xlu0 %v1910_v44, %s1779_s19 }
 0x691   : > { %1049 = vrot.lane.b32.xlu1 %v1910_v44, %s1782_s22 }
 0x6c0   : > { %v341_v52 = vpop.xlane.xlu0 %340 }
 0x6c1   : > { %1712 = vrcp.f32 %v341_v52 }
 0x6c8   : > { %v455_v53 = vpop.xlane.xlu1 %454 }
 0x6c9   : > { %1714 = vrcp.f32 %v455_v53 }
 0x6cb   : > { %v1713_v54 = vpop.eup %1712 }
 0x6cc   : > { %v343_v55 = vmul.f32 %v1713_v54, %v341_v52  ;;  %v463_v61 = vpop.permute.xlu1 %462 }
 0x6cd   : > { %v468_v1 = vsel %vm238_vm3, %v463_v61, 0 }
 0x6ce   : > { %v344_v56 = vsub.f32 2.0, %v343_v55 }
 0x6d0   : > { %v345_v57 = vmul.f32 %v1713_v54, %v344_v56  ;;  %v569_v58 = vpop.xlane.xlu0 %568 }
 0x6d1   : > { %1716 = vrcp.f32 %v569_v58 }
 0x6d2   : > { %v346_v59 = vmul.f32 %v1987_v19, %v345_v57 }
 0x6d3   : > { %v1715_v60 = vpop.eup %1714 }
 0x6d4   : > { %v347_v62 = vpack.c.bf16 %v346_v59, %v346_v59  ;;  %v457_v63 = vmul.f32 %v1715_v60, %v455_v53  ;;  %v577_v6 = vpop.permute.xlu0 %576 }
 0x6d5   : > { %v582_v10 = vsel %vm238_vm3, %v577_v6, 0 }
 0x6d6   : > { %v458_v0 = vsub.f32 2.0, %v457_v63  ;;  %1548 = vmatmul.mubr.msk.bf16.vlgmr.msra.gmra.mrb[0].mxu0 %vm170_vm2, %v347_v62 }
 0x6d7   : > { %1558 = vmatpush3.bf16.msra.mxu0 %v468_v1  ;;  %1559 = vmatprep.mubr.msk.bf16.mxu0 %vm1771_vm1, %v1770_v17 }
 0x6d8   : > { %v459_v44 = vmul.f32 %v1715_v60, %v458_v0  ;;  %1569 = vmatprep.subr.bf16.mxu0 %v1770_v17 }
 0x6da   : > { %v460_v4 = vmul.f32 %v1991_v24, %v459_v44 }
 0x6db   : > { %v1717_v5 = vpop.eup %1716 }
 0x6dc   : > { %v461_v7 = vpack.c.bf16 %v460_v4, %v460_v4  ;;  %v571_v8 = vmul.f32 %v1717_v5, %v569_v58 }
 0x6de   : > { %v572_v9 = vsub.f32 2.0, %v571_v8  ;;  %1560 = vmatmul.mubr.msk.bf16.vlgmr.msra.gmra.mrb[4].mxu0 %vm170_vm2, %v461_v7 }
 0x6df   : > { %1570 = vmatpush3.bf16.msra.mxu0 %v582_v10  ;;  %1571 = vmatprep.mubr.msk.bf16.mxu0 %vm1771_vm1, %v1770_v17 }
 0x6e0   : > { %v573_v11 = vmul.f32 %v1717_v5, %v572_v9  ;;  %1581 = vmatprep.subr.bf16.mxu0 %v1770_v17 }
 0x6e2   : > { %v574_v12 = vmul.f32 %v1995_v27, %v573_v11 }
 0x6e4   : > { %v575_v13 = vpack.c.bf16 %v574_v12, %v574_v12 }
 0x6e6   : > { %1572 = vmatmul.mubr.msk.bf16.vlgmr.msra.gmra.mrb[8].mxu0 %vm170_vm2, %v575_v13 }
 0x6e7   : > { %1583 = vmatprep.mubr.msk.bf16.mxu0 %vm1771_vm1, %v1770_v17 }
 0x6fd   : > { %v700_v14 = vpop.xlane.xlu1 %699 }
 0x6fe   : > { %1718 = vrcp.f32 %v700_v14 }
 0x701   : > { %v814_v15 = vpop.xlane.xlu1 %813 }
 0x702   : > { %1720 = vrcp.f32 %v814_v15 }
 0x705   : > { %v1042_v16 = vpop.xlane.xlu0 %1041  ;;  %v928_v18 = vpop.xlane.xlu1 %927 }
 0x706   : > { %1722 = vrcp.f32 %v928_v18 }
 0x707   : > { %1724 = vrcp.f32 %v1042_v16 }
 0x708   : > { %v1719_v19 = vpop.eup %1718 }
 0x709   : > { %v702_v20 = vmul.f32 %v1719_v19, %v700_v14  ;;  %v708_v21 = vpop.permute.xlu0 %707  ;;  %v822_v30 = vpop.permute.xlu1 %821 }
 0x70a   : > { %v713_v22 = vsel %vm238_vm3, %v708_v21, 0  ;;  %v827_v35 = vsel %vm238_vm3, %v822_v30, 0 }
 0x70b   : > { %v703_v23 = vsub.f32 2.0, %v702_v20  ;;  %1582 = vmatpush3.bf16.msra.mxu0 %v713_v22 }
 0x70c   : > { %v1721_v24 = vpop.eup %1720  ;;  %1593 = vmatprep.subr.bf16.mxu0 %v1770_v17 }
 0x70d   : > { %v704_v25 = vmul.f32 %v1719_v19, %v703_v23  ;;  %v816_v27 = vmul.f32 %v1721_v24, %v814_v15  ;;  %v936_v39 = vpop.permute.xlu1 %935 }
 0x70f   : > { %v705_v28 = vmul.f32 %v2005_v45, %v704_v25  ;;  %v817_v29 = vsub.f32 2.0, %v816_v27  ;;  %v941_v45 = vsel %vm238_vm3, %v936_v39, 0  ;;  %v1459_v27 = vld [vmem:[%s2170_s10] ss:$0 sm:$0xff] }
 0x710   : > { %v1723_v31 = vpop.eup %1722 }
 0x711   : > { %v706_v32 = vpack.c.bf16 %v705_v28, %v705_v28  ;;  %v818_v33 = vmul.f32 %v1721_v24, %v817_v29  ;;  %v930_v34 = vmul.f32 %v1723_v31, %v928_v18  ;;  %v1725_v38 = vpop.eup %1724 }
 0x712   : > { %v1044_v41 = vmul.f32 %v1725_v38, %v1042_v16 }
 0x713   : > { %1584 = vmatmul.mubr.msk.bf16.vlgmr.msra.gmra.mrb[12].mxu0 %vm170_vm2, %v706_v32  ;;  %v819_v36 = vmul.f32 %v2009_v43, %v818_v33  ;;  %v931_v37 = vsub.f32 2.0, %v930_v34  ;;  %v1050_v43 = vpop.permute.xlu1 %1049 }
 0x714   : > { %1594 = vmatpush3.bf16.msra.mxu0 %v827_v35  ;;  %1595 = vmatprep.mubr.msk.bf16.mxu0 %vm1771_vm1, %v1770_v17  ;;  %v1045_v46 = vsub.f32 2.0, %v1044_v41  ;;  %v1055_v52 = vsel %vm238_vm3, %v1050_v43, 0 }
 0x715   : > { %1605 = vmatprep.subr.bf16.mxu0 %v1770_v17  ;;  %v820_v40 = vpack.c.bf16 %v819_v36, %v819_v36  ;;  %v932_v42 = vmul.f32 %v1723_v31, %v931_v37 }
 0x716   : > { %v1046_v50 = vmul.f32 %v1725_v38, %v1045_v46 }
 0x717   : > { %v933_v48 = vmul.f32 %v2011_v47, %v932_v42 }
 0x718   : > { %v1047_v53 = vmul.f32 %v2015_v49, %v1046_v50 }
 0x719   : > { %v934_v51 = vpack.c.bf16 %v933_v48, %v933_v48 }
 0x71a   : > { %v1048_v54 = vpack.c.bf16 %v1047_v53, %v1047_v53 }
 0x71b   : > { %1596 = vmatmul.mubr.msk.bf16.vlgmr.msra.gmra.mrb[16].mxu0 %vm170_vm2, %v820_v40 }
 0x71c   : > { %1606 = vmatpush3.bf16.msra.mxu0 %v941_v45  ;;  %1607 = vmatprep.mubr.msk.bf16.mxu0 %vm1771_vm1, %v1770_v17 }
 0x71d   : > { %1617 = vmatprep.subr.bf16.mxu0 %v1770_v17 }
 0x723   : > { %1608 = vmatmul.mubr.msk.bf16.vlgmr.msra.gmra.mrb[20].mxu0 %vm170_vm2, %v934_v51 }
 0x724   : > { %1618 = vmatpush3.bf16.msra.mxu0 %v1055_v52  ;;  %1619 = vmatprep.mubr.msk.bf16.mxu0 %vm1771_vm1, %v1770_v17  ;;  %v1681_v52 = vld [vmem:[%s2167_s7 + $0x8] sm:$0xff]  }
 0x725   : > { %1631 = vmatprep.subr.bf16.mxu0 %v1770_v17 }
 0x72b   : > { %1620 = vmatmul.mubr.msk.bf16.vlgmr.msra.gmra.mrb[24].mxu0 %vm170_vm2, %v1048_v54 }
 0x72c   : > { %1647 = vmatprep.mubr.msk.bf16.mxu0 %vm1771_vm1, %v1770_v17 }
 0x7a9   : > { %v390_v47 = vpop.f32.mrb[0].mxu0 }
 0x7aa   : > { %v1549_v55 = vpop.f32.mrb[1].mxu0  ;;  %625 = vrot.lane.b32.xlu0 %v390_v47, %s1783_s23 }
 0x7ab   : > { %v393_v56 = vpop.f32.mrb[2].mxu0 }
 0x7ac   : > { %v1550_v57 = vpop.f32.mrb[3].mxu0 }
 0x7b1   : > { %v504_v58 = vpop.f32.mrb[4].mxu0 }
 0x7b2   : > { %629 = vrot.lane.b32.xlu0 %v504_v58, %s1784_s24  ;;  %v1561_v59 = vpop.f32.mrb[5].mxu0 }
 0x7b3   : > { %v507_v60 = vpop.f32.mrb[6].mxu0 }
 0x7b4   : > { %v1562_v49 = vpop.f32.mrb[7].mxu0  ;;  %v1457_v60 = vld [vmem:[%s2165_s5] ss:$0 sm:$0xff] }
 0x7b9   : > { %v618_v61 = vpop.f32.mrb[8].mxu0 }
 0x7ba   : > { %633 = vrot.lane.b32.xlu0 %v618_v61, %s1785_s25  ;;  %v1573_v62 = vpop.f32.mrb[9].mxu0 }
 0x7bb   : > { %v621_v63 = vpop.f32.mrb[10].mxu0 }
 0x7bc   : > { %v1574_v0 = vpop.f32.mrb[11].mxu0  ;;  %v1458_v63 = vld [vmem:[%s2166_s6] ss:$0 sm:$0xff] }
 0x7e6   : > { %v749_v1 = vpop.f32.mrb[12].mxu0 }
 0x7e7   : > { %v1585_v44 = vpop.f32.mrb[13].mxu0 }
 0x7e8   : > { %v752_v4 = vpop.f32.mrb[14].mxu0 }
 0x7e9   : > { %v1586_v5 = vpop.f32.mrb[15].mxu0 }
 0x7ea   : > { %v1682_v5 = vld [vmem:[%s2169_s9] sm:$0xff]  }
 0x7eb   : > { %1632 = vmatpush3.bf16.msra.mxu0 %v1682_v5 }
 0x7ec   : > { %1633 = vmatprep.subr.bf16.mxu0 %v1770_v17 }
 0x7ee   : > { %v863_v6 = vpop.f32.mrb[16].mxu0 }
 0x7ef   : > { %1098 = vrot.lane.b32.xlu1 %v863_v6, %s1783_s23  ;;  %v1597_v7 = vpop.f32.mrb[17].mxu0  ;;  %v1683_v6 = vld [vmem:[%s2169_s9 + $0x8] sm:$0xff]  }
 0x7f0   : > { %v866_v8 = vpop.f32.mrb[18].mxu0  ;;  %1634 = vmatpush3.bf16.msra.mxu0 %v1683_v6  ;;  %v1684_v7 = vld [vmem:[%s2169_s9 + $0x10] sm:$0xff]  }
 0x7f1   : > { %v1598_v9 = vpop.f32.mrb[19].mxu0  ;;  %1635 = vmatprep.subr.bf16.mxu0 %v1770_v17  ;;  %v1685_v8 = vld [vmem:[%s2169_s9 + $0x18] sm:$0xff]  }
 0x7f2   : > { %v1686_v9 = vld [vmem:[%s2169_s9 + $0x20] sm:$0xff]  }
 0x7f4   : > { %1636 = vmatpush3.bf16.msra.mxu0 %v1684_v7 }
 0x7f5   : > { %1637 = vmatprep.subr.bf16.mxu0 %v1770_v17 }
 0x7f6   : > { %v977_v10 = vpop.f32.mrb[20].mxu0 }
 0x7f7   : > { %1102 = vrot.lane.b32.xlu1 %v977_v10, %s1784_s24  ;;  %v1609_v11 = vpop.f32.mrb[21].mxu0  ;;  %v1687_v10 = vld [vmem:[%s2169_s9 + $0x28] sm:$0xff]  }
 0x7f8   : > { %v980_v12 = vpop.f32.mrb[22].mxu0  ;;  %1638 = vmatpush3.bf16.msra.mxu0 %v1685_v8  ;;  %v1688_v11 = vld [vmem:[%s2169_s9 + $0x30] sm:$0xff]  }
 0x7f9   : > { %v1610_v13 = vpop.f32.mrb[23].mxu0  ;;  %1639 = vmatprep.subr.bf16.mxu0 %v1770_v17  ;;  %v1689_v12 = vld [vmem:[%s2169_s9 + $0x38] sm:$0xff]  }
 0x7fa   : > { %v1460_v13 = vld [vmem:[%s2168_s8] ss:$0 sm:$0xff] }
 0x7fc   : > { %1640 = vmatpush3.bf16.msra.mxu0 %v1686_v9 }
 0x7fd   : > { %1641 = vmatprep.subr.bf16.mxu0 %v1770_v17 }
 0x7fe   : > { %v1091_v14 = vpop.f32.mrb[24].mxu0 }
 0x7ff   : > { %1106 = vrot.lane.b32.xlu1 %v1091_v14, %s1785_s25  ;;  %v1621_v15 = vpop.f32.mrb[25].mxu0 }
 0x800   : > { %v1094_v16 = vpop.f32.mrb[26].mxu0  ;;  %1642 = vmatpush3.bf16.msra.mxu0 %v1687_v10 }
 0x801   : > { %v1622_v18 = vpop.f32.mrb[27].mxu0  ;;  %1643 = vmatprep.subr.bf16.mxu0 %v1770_v17 }
 0x804   : > { %1644 = vmatpush3.bf16.msra.mxu0 %v1688_v11 }
 0x805   : > { %1645 = vmatprep.subr.bf16.mxu0 %v1770_v17 }
 0x808   : > { %1646 = vmatpush3.bf16.msra.mxu0 %v1689_v12 }
 0x81c   : > { %v626_v19 = vpop.permute.xlu0 %625 }
 0x81d   : > { %v636_v21 = vsel %vm170_vm2, %v1976_v26, %v626_v19 }
 0x824   : > { %v630_v20 = vpop.permute.xlu0 %629 }
 0x825   : > { %v638_v22 = vsel %vm637_vm4, %v636_v21, %v630_v20 }
 0x82c   : > { %v634_v23 = vpop.permute.xlu0 %633 }
 0x82d   : > { %v640_v24 = vsel %vm639_vm5, %v638_v22, %v634_v23 }
 0x82e   : > { %641 = vst.msk [vmem:[#allocation3] sm:$0xff] %vm42_vm0, %v640_v24 }
 0x835   : > { %v1113_v25 = vld [vmem:[#allocation3] sm:$0xff] }
 0x836   : > { %v1115_v28 = vadd.f32 %v1113_v25, %v1862_v2 }
 0x838   : > { %v1119_v29 = vsel %vm42_vm0, %v1115_v28, 0.0  ;;  %v1169_v30 = vadd.f32 %v1459_v27, %v1115_v28 }
 0x839   : > { %1120 = vadd.xlane.f32.xlu0 %v1119_v29 }
 0x83a   : > { %1171 = vst.msk [vmem:[#allocation2] sm:$0xff] %vm42_vm0, %v1169_v30 }
 0x861   : > { %v1099_v26 = vpop.permute.xlu1 %1098 }
 0x862   : > { %v1109_v32 = vsel %vm170_vm2, %v749_v1, %v1099_v26 }
 0x869   : > { %v1103_v31 = vpop.permute.xlu1 %1102 }
 0x86a   : > { %v1110_v33 = vsel %vm637_vm4, %v1109_v32, %v1103_v31 }
 0x871   : > { %v1107_v34 = vpop.permute.xlu1 %1106 }
 0x872   : > { %v1111_v35 = vsel %vm639_vm5, %v1110_v33, %v1107_v34 }
 0x873   : > { %1112 = vst.msk [vmem:[#allocation3 + $0x8] sm:$0xff] %vm42_vm0, %v1111_v35 }
 0x87a   : > { %v1114_v36 = vld [vmem:[#allocation3 + $0x8] sm:$0xff] }
 0x87b   : > { %v1116_v2 = vadd.f32 %v1114_v36, %v1864_v3  ;;  %v1680_v3 = vld [vmem:[%s2167_s7] sm:$0xff]  }
 0x87c   : > { %1624 = vmatpush3.bf16.msra.mxu1 %v1680_v3 }
 0x87d   : > { %v1122_v37 = vsel %vm42_vm0, %v1116_v2, 0.0  ;;  %v1170_v38 = vadd.f32 %v1459_v27, %v1116_v2  ;;  %1625 = vmatprep.subr.bf16.mxu1 %v1770_v17 }
 0x87e   : > { %1123 = vadd.xlane.f32.xlu1 %v1122_v37 }
 0x87f   : > { %1172 = vst.msk [vmem:[#allocation2 + $0x8] sm:$0xff] %vm42_vm0, %v1170_v38 }
 0x880   : > { %1626 = vmatpush3.bf16.msra.mxu1 %v1681_v52 }
 0x8c6   : > { %v1121_v39 = vpop.xlane.xlu0 %1120 }
 0x8c7   : > { %v1125_v40 = vmul.f32 0.03125, %v1121_v39 }
 0x8c9   : > { %v1127_v41 = vsub.f32 %v1115_v28, %v1125_v40 }
 0x8cb   : > { %v1129_v42 = vmul.f32 %v1127_v41, %v1127_v41 }
 0x8cd   : > { %v1131_v45 = vsel %vm42_vm0, %v1129_v42, 0.0 }
 0x8ce   : > { %1132 = vadd.xlane.f32.xlu0 %v1131_v45 }
 0x90b   : > { %v1124_v46 = vpop.xlane.xlu1 %1123 }
 0x90c   : > { %v1126_v48 = vmul.f32 0.03125, %v1124_v46 }
 0x90e   : > { %v1128_v43 = vsub.f32 %v1116_v2, %v1126_v48 }
 0x910   : > { %v1130_v50 = vmul.f32 %v1128_v43, %v1128_v43 }
 0x912   : > { %v1134_v51 = vsel %vm42_vm0, %v1130_v50, 0.0 }
 0x913   : > { %1135 = vadd.xlane.f32.xlu0 %v1134_v51 }
 0x95b   : > { %v1133_v53 = vpop.xlane.xlu0 %1132 }
 0x95c   : > { %v1137_v54 = vmul.f32 0.03125, %v1133_v53 }
 0x95e   : > { %v1139_v47 = vadd.f32 1e-05, %v1137_v54 }
 0x960   : > { %1726 = vrsqrt.f32 %v1139_v47 }
 0x96a   : > { %v1727_v58 = vpop.eup %1726 }
 0x96b   : > { %v1143_v59 = vmul.f32 %v1727_v58, %v1127_v41 }
 0x96d   : > { %v1151_v62 = vmul.f32 %v1457_v60, %v1143_v59 }
 0x96f   : > { %v1159_v1 = vadd.f32 %v1458_v63, %v1151_v62 }
 0x9a0   : > { %v1136_v55 = vpop.xlane.xlu0 %1135 }
 0x9a1   : > { %v1138_v56 = vmul.f32 0.03125, %v1136_v55 }
 0x9a3   : > { %v1140_v57 = vadd.f32 1e-05, %v1138_v56 }
 0x9a5   : > { %1728 = vrsqrt.f32 %v1140_v57 }
 0x9af   : > { %v1729_v49 = vpop.eup %1728 }
 0x9b0   : > { %v1144_v61 = vmul.f32 %v1729_v49, %v1128_v43 }
 0x9b2   : > { %v1152_v0 = vmul.f32 %v1457_v60, %v1144_v61 }
 0x9b4   : > { %v1160_v44 = vadd.f32 %v1458_v63, %v1152_v0 }
 0x9b6   : > { %v1161_v4 = vpack.c.bf16 %v1160_v44, %v1159_v1 }
 0x9b8   : > { %1628 = vmatmul.mubr.msk.bf16.vlgmr.msra.gmra.mrb[40].mxu1 %vm42_vm0, %v1161_v4 }
 0xa8b   : > { %v1233_v14 = vpop.f32.mrb[40].mxu1 }
 0xa8c   : > { %v2137_v15 = vadd.f32 %v1460_v13, %v1233_v14  ;;  %v1629_v16 = vpop.f32.mrb[41].mxu1 }
 0xa8d   : > { %v1236_v18 = vpop.f32.mrb[42].mxu1 }
 0xa8e   : > { %v1242_v19 = vmul.f32 0.70710677, %v2137_v15  ;;  %v1237_v20 = vadd.f32 %v1460_v13, %v1236_v18  ;;  %v1630_v21 = vpop.f32.mrb[43].mxu1  ;;  %v1240_v7 = vmul.f32 0.5, %v2137_v15  ;;  %v1298_v13 = vld [vmem:[#allocation2] sm:$0xff] }
 0xa8f   : > { %v1299_v21 = vld [vmem:[#allocation2 + $0x8] sm:$0xff] }
 0xa90   : > { %v1244_v22 = vand.u32 2147483647, %v1242_v19  ;;  %v1243_v17 = vmul.f32 0.70710677, %v1237_v20  ;;  %vm1288_vm6 = vcmp.ge.f32.partialorder %v1242_v19, 0.0  ;;  %v1241_v8 = vmul.f32 0.5, %v1237_v20 }
 0xa92   : > { %v1246_v23 = vmul.f32 0.3275911, %v1244_v22  ;;  %v1245_v24 = vand.u32 2147483647, %v1243_v17  ;;  %v1276_v26 = vsub.f32 0.0, %v1244_v22  ;;  %vm1289_vm7 = vcmp.ge.f32.partialorder %v1243_v17, 0.0 }
 0xa94   : > { %v1248_v25 = vadd.f32 1.0, %v1246_v23  ;;  %v1247_v27 = vmul.f32 0.3275911, %v1245_v24  ;;  %v1277_v35 = vsub.f32 0.0, %v1245_v24  ;;  %v1278_v36 = vmul.f32 %v1276_v26, %v1244_v22 }
 0xa96   : > { %1730 = vrcp.f32 %v1248_v25  ;;  %v1249_v28 = vadd.f32 1.0, %v1247_v27  ;;  %v1279_v40 = vmul.f32 %v1277_v35, %v1245_v24  ;;  %v1280_v41 = vmul.f32 1.442695, %v1278_v36 }
 0xa98   : > { %1732 = vrcp.f32 %v1249_v28  ;;  %v1282_v43 = vmul.f32 1.442695, %v1279_v40 }
 0xa99   : > { %1734 = vpow2.f32 %v1280_v41 }
 0xa9a   : > { %1736 = vpow2.f32 %v1282_v43 }
 0xaa0   : > { %v1731_v29 = vpop.eup %1730 }
 0xaa1   : > { %v1252_v30 = vmul.f32 %v1731_v29, %v1248_v25 }
 0xaa2   : > { %v1733_v31 = vpop.eup %1732 }
 0xaa3   : > { %v1254_v32 = vsub.f32 2.0, %v1252_v30  ;;  %v1253_v33 = vmul.f32 %v1733_v31, %v1249_v28  ;;  %v1735_v58 = vpop.eup %1734 }
 0xaa4   : > { %v1737_v61 = vpop.eup %1736 }
 0xaa5   : > { %v1256_v34 = vmul.f32 %v1731_v29, %v1254_v32  ;;  %v1255_v2 = vsub.f32 2.0, %v1253_v33 }
 0xaa7   : > { %v1258_v37 = vmul.f32 1.0614054, %v1256_v34  ;;  %v1257_v38 = vmul.f32 %v1733_v31, %v1255_v2 }
 0xaa9   : > { %v1260_v39 = vadd.f32 -1.4531521, %v1258_v37  ;;  %v1259_v42 = vmul.f32 1.0614054, %v1257_v38 }
 0xaab   : > { %v1262_v45 = vmul.f32 %v1260_v39, %v1256_v34  ;;  %v1261_v46 = vadd.f32 -1.4531521, %v1259_v42 }
 0xaad   : > { %v1264_v48 = vadd.f32 1.4214138, %v1262_v45  ;;  %v1263_v50 = vmul.f32 %v1261_v46, %v1257_v38 }
 0xaaf   : > { %v1266_v51 = vmul.f32 %v1264_v48, %v1256_v34  ;;  %v1265_v3 = vadd.f32 1.4214138, %v1263_v50 }
 0xab1   : > { %v1268_v52 = vadd.f32 -0.28449672, %v1266_v51  ;;  %v1267_v53 = vmul.f32 %v1265_v3, %v1257_v38 }
 0xab3   : > { %v1270_v54 = vmul.f32 %v1268_v52, %v1256_v34  ;;  %v1269_v47 = vadd.f32 -0.28449672, %v1267_v53 }
 0xab5   : > { %v1272_v55 = vadd.f32 0.2548296, %v1270_v54  ;;  %v1271_v56 = vmul.f32 %v1269_v47, %v1257_v38 }
 0xab7   : > { %v1274_v57 = vmul.f32 %v1272_v55, %v1256_v34  ;;  %v1273_v59 = vadd.f32 0.2548296, %v1271_v56 }
 0xab9   : > { %v1284_v60 = vmul.f32 %v1735_v58, %v1274_v57  ;;  %v1275_v49 = vmul.f32 %v1273_v59, %v1257_v38 }
 0xabb   : > { %v1286_v62 = vsub.f32 1.0, %v1284_v60  ;;  %v1285_v63 = vmul.f32 %v1737_v61, %v1275_v49 }
 0xabd   : > { %v1290_v0 = vsub.f32 0.0, %v1286_v62  ;;  %v1287_v1 = vsub.f32 1.0, %v1285_v63 }
 0xabf   : > { %v1292_v44 = vsel %vm1288_vm6, %v1286_v62, %v1290_v0  ;;  %v1291_v4 = vsub.f32 0.0, %v1287_v1 }
 0xac0   : > { %v1294_v5 = vadd.f32 1.0, %v1292_v44 }
 0xac1   : > { %v1293_v6 = vsel %vm1289_vm7, %v1287_v1, %v1291_v4 }
 0xac2   : > { %v1295_v9 = vadd.f32 1.0, %v1293_v6  ;;  %v1296_v10 = vmul.f32 %v1294_v5, %v1240_v7 }
 0xac4   : > { %v1297_v11 = vmul.f32 %v1295_v9, %v1241_v8 }
 0xac6   : > { %v1300_v12 = vpack.c.bf16 %v1297_v11, %v1296_v10 }
 0xac8   : > { %1648 = vmatmul.mubr.bf16.vlgmr.msra.gmra.mrb[28].mxu0 %v1300_v12 }
 0xb9a   :  { %49 = sbr.rel (!%p47_p0) target bundleno = 3 (0x3), region = 71 }
 0xb9b   : > { %v1399_v14 = vpop.f32.mrb[28].mxu0 }
 0xb9c   : > { %v1406_v16 = vadd.f32 %v1399_v14, %v1298_v13  ;;  %v1649_v18 = vpop.f32.mrb[29].mxu0 }
 0xb9d   : > { %v1402_v19 = vpop.f32.mrb[30].mxu0 }
 0xb9e   : > { %1408 = vst.msk [vmem:[#allocation2] sm:$0xff] %vm42_vm0, %v1406_v16  ;;  %v1407_v22 = vadd.f32 %v1402_v19, %v1299_v21  ;;  %v1650_v23 = vpop.f32.mrb[31].mxu0 }
 0xba0   : > { %1409 = vst.msk [vmem:[#allocation2 + $0x8] sm:$0xff] %vm42_vm0, %v1407_v22 }
 0xba5   :  { %v1410_v15 = vld [vmem:[#allocation2] sm:$0xff] }
 0xba6   :  { %1412 = vst.msk [vmem:[#allocation4] sm:$0xff] %vm42_vm0, %v1410_v15 }
 0xba7   :  { %v1411_v20 = vld [vmem:[#allocation2 + $0x8] sm:$0xff] }
 0xba8   :  { %1413 = vst.msk [vmem:[#allocation4 + $0x8] sm:$0xff] %vm42_vm0, %v1411_v20 }
 0xba9   :  { %1749 = shalt.err (!%p1746_p5)
}
 0xbaa   :  { %s1750_s21 = scalar_lea.hbm %s2171_s11, 256 }
 0xbab   :  { %p1751_p6 = scmp.ne.s32.totalorder %s2171_s11, %s1750_s21  ;;  %p1754_p7 = scmp.lt.u32.totalorder %s1750_s21, %s2171_s11 }
 0xbad   :  { %p1756_p8 = pnand %p1754_p7, %p1751_p6 }
 0xbaf   :  { %1759 = shalt.err (!%p1756_p8)
}
 0xbb0   :  { %s1787_s5 = smov 128   ;;  %s1788_s6 = smov 8  }
 0xbb1   :  { %1425 = dma.vmem_to_hbm [thread:$0]  %s1420_s17, 256, %s2171_s11, [#allocation5], %s1787_s5, %s1787_s5, %s1788_s6  }
 0xbb2   :  { %1764 = dma.done.wait [#allocation5], 256  }
 0xbb3   :  { %1765 = vsyncadd [#allocation5], 4294967040 }
 0xbb4   :  { %1429 = vsyncpa [#allocation5], 1 }

</bundles_post_ra>
